<compile_context>
chip_gen: v6e
topology: v6e:2x2x1
jax: 0.10.0
libtpu: 0.0.40
codegen_flags: <defaults>
</compile_context>

<pallas_src>
import functools

import numpy as np
import jax
import jax.numpy as jnp
from jax.experimental import pallas as pl
from jax.experimental.pallas import tpu as pltpu

EMB_DIM = 300      # forced by pretrain_name in GINPTEmbedder.__init__ (gnn_h_dim = 300)
HID_DIM = 600
EMB_PAD = 384      # 300 -> 3*128 (lane-dense)
HID_PAD = 640      # 600 -> 5*128
NUM_LAYERS = 5
BN_EPS = 1e-5
TILE_M = 128       # destination-node row tile (multiple of 128 keeps P's last dim lane-aligned)


def _round_up(x, m):
    return (x + m - 1) // m * m


def _pad_to(x, shape):
    return jnp.pad(x, [(0, t - s) for s, t in zip(x.shape, shape)])


# ---------------------------------------------------------------------------
# Fused Pallas kernel: 5 GIN layers (message passing + MLP + folded BN) + pool
# ---------------------------------------------------------------------------
def fused_gin_kernel(h0_ref, a_ref, efagg_ref, w1_ref, b1_ref, w2_ref, b2_ref,
                     p_ref, out_ref, h_cur, h_nxt, gh_acc, *, tile_m):
    l = pl.program_id(0)
    i = pl.program_id(1)
    num_layers = pl.num_programs(0)
    n_tiles = pl.num_programs(1)
    is_last_layer = l == num_layers - 1
    is_first_tile = i == 0
    is_last_tile = i == n_tiles - 1

    # Load the initial node features into the layer carry (once, at grid start).
    @pl.when((l == 0) & is_first_tile)
    def _():
        h_cur[...] = h0_ref[...]

    # agg[v] = sum_u A[v, u] * h[u]  +  sum_{e: dst(e)=v} edge_feat[e]
    agg = jnp.dot(a_ref[...], h_cur[...], preferred_element_type=jnp.float32)
    agg = agg + efagg_ref[...]

    # MLP: Linear(300,600) -> ReLU -> Linear(600,300), eval-BN folded into W2/b2.
    h1 = jnp.maximum(
        jnp.dot(agg, w1_ref[...], preferred_element_type=jnp.float32) + b1_ref[...],
        0.0)
    h2 = jnp.dot(h1, w2_ref[...], preferred_element_type=jnp.float32) + b2_ref[...]

    # Non-final layers: inter-layer ReLU, write this row tile of the next h.
    @pl.when(jnp.logical_not(is_last_layer))
    def _():
        row0 = pl.multiple_of(i * tile_m, tile_m)
        h_nxt[pl.ds(row0, tile_m), :] = jnp.maximum(h2, 0.0)

    # End of a non-final layer: promote next h to the carry.
    @pl.when(jnp.logical_not(is_last_layer) & is_last_tile)
    def _():
        h_cur[...] = h_nxt[...]

    # Final layer: accumulate MyAvgPooling (P @ h) over row tiles; pool ReLU at end.
    @pl.when(is_last_layer & is_first_tile)
    def _():
        gh_acc[...] = jnp.zeros_like(gh_acc)

    @pl.when(is_last_layer)
    def _():
        gh_acc[...] += jnp.dot(p_ref[...], h2, preferred_element_type=jnp.float32)

    @pl.when(is_last_layer & is_last_tile)
    def _():
        out_ref[...] = jnp.maximum(gh_acc[...], 0.0)


# ---------------------------------------------------------------------------
# Deterministic synthetic parameters (shapes match dgllife pretrained GIN)
# ---------------------------------------------------------------------------
def init_params(key):
    def nrm(k, shape, scale=0.05):
        return scale * jax.random.normal(k, shape, dtype=jnp.float32)

    keys = iter(jax.random.split(key, 2 + NUM_LAYERS * 5))
    params = {
        "atom_emb": nrm(next(keys), (120, EMB_DIM)),
        "chir_emb": nrm(next(keys), (3, EMB_DIM)),
        "layers": [],
    }
    for _ in range(NUM_LAYERS):
        params["layers"].append({
            "bond_emb": nrm(next(keys), (6, EMB_DIM)),
            "dir_emb":  nrm(next(keys), (3, EMB_DIM)),
            "w1": nrm(next(keys), (EMB_DIM, HID_DIM)),
            "b1": jnp.zeros((1, HID_DIM), jnp.float32),
            "w2": nrm(next(keys), (HID_DIM, EMB_DIM)),
            "b2": jnp.zeros((1, EMB_DIM), jnp.float32),
            "gamma": jnp.ones((1, EMB_DIM), jnp.float32),
            "beta":  jnp.zeros((1, EMB_DIM), jnp.float32),
            "mean":  nrm(next(keys), (1, EMB_DIM), 0.01),
            "var":   jnp.ones((1, EMB_DIM), jnp.float32),
        })
    return params


# ---------------------------------------------------------------------------
# Forward pass wrapper (XLA-side prep: gathers, dense operators, BN folding)
# ---------------------------------------------------------------------------
def gin_pt_embedder_forward(params, atom_type, chirality, bond_type, bond_dir,
                            edge_src, edge_dst, batch_num_nodes):
    n = int(atom_type.shape[0])
    n_graphs = len(batch_num_nodes)
    n_pad = _round_up(max(n, TILE_M), TILE_M)
    g_pad = _round_up(max(n_graphs, 8), 8)
    n_tiles = n_pad // TILE_M

    # node features (sum of categorical node embeddings), zero padded to lanes
    h0 = params["atom_emb"][atom_type] + params["chir_emb"][chirality]
    h0 = _pad_to(h0.astype(jnp.float32), (n_pad, EMB_PAD))

    # dense adjacency: A[dst, src] = edge multiplicity
    A = jnp.zeros((n_pad, n_pad), jnp.float32).at[edge_dst, edge_src].add(1.0)

    # per-layer edge aggregates + BN-folded MLP weights, stacked on a leading L axis
    ef_aggs, w1s, b1s, w2s, b2s = [], [], [], [], []
    for lp in params["layers"]:
        ef = lp["bond_emb"][bond_type] + lp["dir_emb"][bond_dir]            # (E, 300)
        ef_agg = jnp.zeros((n, EMB_DIM), jnp.float32).at[edge_dst].add(ef)  # segment sum
        ef_aggs.append(_pad_to(ef_agg, (n_pad, EMB_PAD)))
        scale = lp["gamma"][0] * jax.lax.rsqrt(lp["var"][0] + BN_EPS)       # (300,)
        w2f = lp["w2"] * scale[None, :]
        b2f = (lp["b2"][0] - lp["mean"][0]) * scale + lp["beta"][0]
        w1s.append(_pad_to(lp["w1"], (EMB_PAD, HID_PAD)))
        b1s.append(_pad_to(lp["b1"], (1, HID_PAD)))
        w2s.append(_pad_to(w2f, (HID_PAD, EMB_PAD)))
        b2s.append(_pad_to(b2f[None, :], (1, EMB_PAD)))
    ef_agg = jnp.stack(ef_aggs)    # (L, n_pad, EMB_PAD)
    W1 = jnp.stack(w1s)            # (L, EMB_PAD, HID_PAD)
    B1 = jnp.stack(b1s)            # (L, 1, HID_PAD)
    W2 = jnp.stack(w2s)            # (L, HID_PAD, EMB_PAD)
    B2 = jnp.stack(b2s)            # (L, 1, EMB_PAD)

    # MyAvgPooling matrix: P[g, v] = 1/|V_g| for v in graph g (zero-node guard)
    P_np = np.zeros((g_pad, n_pad), np.float32)
    start = 0
    for g, cnt in enumerate(batch_num_nodes):
        if cnt > 0:
            P_np[g, start:start + cnt] = 1.0 / cnt
        start += cnt
    P = jnp.asarray(P_np)

    flops = (NUM_LAYERS * (2 * n_pad * n_pad * EMB_PAD
                           + 2 * n_pad * EMB_PAD * HID_PAD
                           + 2 * n_pad * HID_PAD * EMB_PAD)
             + 2 * g_pad * n_pad * EMB_PAD)
    bytes_accessed = 4 * (h0.size + NUM_LAYERS * A.size + ef_agg.size
                          + W1.size + B1.size + W2.size + B2.size
                          + NUM_LAYERS * P.size + g_pad * EMB_PAD)

    gh = pl.pallas_call(
        functools.partial(fused_gin_kernel, tile_m=TILE_M),
        out_shape=jax.ShapeDtypeStruct((g_pad, EMB_PAD), jnp.float32),
        grid_spec=pltpu.PrefetchScalarGridSpec(
            num_scalar_prefetch=0,
            grid=(NUM_LAYERS, n_tiles),
            in_specs=[
                pl.BlockSpec((n_pad, EMB_PAD), lambda l, i: (0, 0)),            # h0 (resident)
                pl.BlockSpec((TILE_M, n_pad), lambda l, i: (i, 0)),             # A row tile
                pl.BlockSpec((pl.Squeezed(), TILE_M, EMB_PAD), lambda l, i: (l, i, 0)),  # ef_agg
                pl.BlockSpec((pl.Squeezed(), EMB_PAD, HID_PAD), lambda l, i: (l, 0, 0)), # W1
                pl.BlockSpec((pl.Squeezed(), 1, HID_PAD), lambda l, i: (l, 0, 0)),       # b1
                pl.BlockSpec((pl.Squeezed(), HID_PAD, EMB_PAD), lambda l, i: (l, 0, 0)), # W2'
                pl.BlockSpec((pl.Squeezed(), 1, EMB_PAD), lambda l, i: (l, 0, 0)),       # b2'
                pl.BlockSpec((g_pad, TILE_M), lambda l, i: (0, i)),             # P column tile
            ],
            out_specs=pl.BlockSpec((g_pad, EMB_PAD), lambda l, i: (0, 0)),
            scratch_shapes=[
                pltpu.VMEM((n_pad, EMB_PAD), jnp.float32),   # h_cur (layer carry)
                pltpu.VMEM((n_pad, EMB_PAD), jnp.float32),   # h_nxt
                pltpu.VMEM((g_pad, EMB_PAD), jnp.float32),   # pooled accumulator
            ],
        ),
        compiler_params=pltpu.CompilerParams(
            # Both axes sequential: layer l+1 and the pooled accumulator depend on
            # ALL row tiles of layer l, and the h carry lives in per-core VMEM.
            dimension_semantics=("arbitrary", "arbitrary")),
        cost_estimate=pl.CostEstimate(flops=flops, transcendentals=0,
                                      bytes_accessed=bytes_accessed),
    )(h0, A, ef_agg, W1, B1, W2, B2, P)

    return gh[:n_graphs, :EMB_DIM]


# pure-JAX reference (same math, un-padded, BN not folded) for correctness check
def reference_forward(params, atom_type, chirality, bond_type, bond_dir,
                      edge_src, edge_dst, batch_num_nodes):
    n = atom_type.shape[0]
    e = edge_src.shape[0]
    h = params["atom_emb"][atom_type] + params["chir_emb"][chirality]
    A = jnp.zeros((n, n), jnp.float32).at[edge_dst, edge_src].add(1.0)
    S = jnp.zeros((n, e), jnp.float32).at[edge_dst, jnp.arange(e)].set(1.0)
    for l, lp in enumerate(params["layers"]):
        ef = lp["bond_emb"][bond_type] + lp["dir_emb"][bond_dir]
        agg = A @ h + S @ ef
        h1 = jnp.maximum(agg @ lp["w1"] + lp["b1"], 0.0)
        h2 = h1 @ lp["w2"] + lp["b2"]
        h = (h2 - lp["mean"]) / jnp.sqrt(lp["var"] + BN_EPS) * lp["gamma"] + lp["beta"]
        if l < NUM_LAYERS - 1:
            h = jnp.maximum(h, 0.0)
    n_graphs = len(batch_num_nodes)
    seg_id = np.repeat(np.arange(n_graphs), batch_num_nodes)
    counts = np.asarray(batch_num_nodes, np.float32)
    P = jnp.asarray(np.eye(n_graphs, dtype=np.float32)[seg_id].T / counts[:, None])
    return jnp.maximum(P @ h, 0.0)


if __name__ == "__main__":
    key = jax.random.PRNGKey(0)
    k_params, k_a, k_c, k_b, k_d = jax.random.split(key, 5)
    params = init_params(k_params)

    # batched "molecular" graph: 24 small rings, 204 nodes total -> 2 row tiles
    batch_num_nodes = [5, 6, 7, 8, 9, 10, 11, 12] * 3
    n_nodes = sum(batch_num_nodes)
    src_l, dst_l = [], []
    off = 0
    for sz in batch_num_nodes:
        for k in range(sz):
            u, v = off + k, off + (k + 1) % sz
            src_l += [u, v]
            dst_l += [v, u]
        off += sz
    edge_src = jnp.asarray(np.array(src_l, np.int32))
    edge_dst = jnp.asarray(np.array(dst_l, np.int32))
    n_edges = int(edge_src.shape[0])

    atom_type = jax.random.randint(k_a, (n_nodes,), 0, 120, dtype=jnp.int32)
    chirality = jax.random.randint(k_c, (n_nodes,), 0, 3, dtype=jnp.int32)
    bond_type = jax.random.randint(k_b, (n_edges,), 0, 6, dtype=jnp.int32)
    bond_dir = jax.random.randint(k_d, (n_edges,), 0, 3, dtype=jnp.int32)

    gh = gin_pt_embedder_forward(params, atom_type, chirality, bond_type,
                                 bond_dir, edge_src, edge_dst, batch_num_nodes)
    gh = jax.block_until_ready(gh)

    gh_ref = reference_forward(params, atom_type, chirality, bond_type,
                               bond_dir, edge_src, edge_dst, batch_num_nodes)
    assert gh.shape == (len(batch_num_nodes), EMB_DIM)
    np.testing.assert_allclose(np.asarray(gh), np.asarray(gh_ref),
                               rtol=2e-4, atol=2e-4)
    print("KERNEL_OK")
</pallas_src>

<mosaic_0001>
module attributes {stable_mosaic.version = 11 : i64} {
  func.func @fused_gin_kernel(%arg0: i32, %arg1: i32, %arg2: memref<256x384xf32, #tpu.memory_space<vmem>>, %arg3: memref<128x256xf32, #tpu.memory_space<vmem>>, %arg4: memref<1x128x384xf32, #tpu.memory_space<vmem>>, %arg5: memref<1x384x640xf32, #tpu.memory_space<vmem>>, %arg6: memref<1x1x640xf32, #tpu.memory_space<vmem>>, %arg7: memref<1x640x384xf32, #tpu.memory_space<vmem>>, %arg8: memref<1x1x384xf32, #tpu.memory_space<vmem>>, %arg9: memref<24x128xf32, #tpu.memory_space<vmem>>, %arg10: memref<24x384xf32, #tpu.memory_space<vmem>>, %arg11: memref<256x384xf32, #tpu.memory_space<vmem>>, %arg12: memref<256x384xf32, #tpu.memory_space<vmem>>, %arg13: memref<24x384xf32, #tpu.memory_space<vmem>>) attributes {dimension_semantics = [#tpu.dimension_semantics<arbitrary>, #tpu.dimension_semantics<arbitrary>], iteration_bounds = array<i64: 5, 2>, scalar_prefetch = 0 : i64, scratch_operands = 3 : i64, tpu.core_type = #tpu.core_type<tc>, window_params = [{pipeline_mode = #tpu.pipeline_mode<synchronous>, transform_indices = @transform_0, window_bounds = array<i64: 256, 384>}, {transform_indices = @transform_1, window_bounds = array<i64: 128, 256>}, {transform_indices = @transform_2, window_bounds = array<i64: 1, 128, 384>}, {transform_indices = @transform_3, window_bounds = array<i64: 1, 384, 640>}, {transform_indices = @transform_4, window_bounds = array<i64: 1, 1, 640>}, {transform_indices = @transform_5, window_bounds = array<i64: 1, 640, 384>}, {transform_indices = @transform_6, window_bounds = array<i64: 1, 1, 384>}, {transform_indices = @transform_7, window_bounds = array<i64: 24, 128>}, {pipeline_mode = #tpu.pipeline_mode<synchronous>, transform_indices = @transform_8, window_bounds = array<i64: 24, 384>}]} {
    %c4_i32 = arith.constant 4 : i32
    %0 = arith.cmpi eq, %arg0, %c4_i32 : i32
    %c0_i32 = arith.constant 0 : i32
    %1 = arith.cmpi eq, %arg1, %c0_i32 : i32
    %c1_i32 = arith.constant 1 : i32
    %2 = arith.cmpi eq, %arg1, %c1_i32 : i32
    %c0_i32_0 = arith.constant 0 : i32
    %3 = arith.cmpi eq, %arg0, %c0_i32_0 : i32
    %4 = arith.andi %3, %1 : i1
    %5 = arith.extui %4 : i1 to i32
    %c0_i32_1 = arith.constant 0 : i32
    %6 = arith.cmpi ne, %5, %c0_i32_1 : i32
    scf.if %6 {
      %c0_29 = arith.constant 0 : index
      %c0_30 = arith.constant 0 : index
      %44 = vector.load %arg2[%c0_29, %c0_30] : memref<256x384xf32, #tpu.memory_space<vmem>>, vector<256x384xf32>
      %c0_31 = arith.constant 0 : index
      %c0_32 = arith.constant 0 : index
      %45 = vector.load %arg11[%c0_31, %c0_32] : memref<256x384xf32, #tpu.memory_space<vmem>>, vector<256x384xf32>
      tpu.vector_store %arg11[%c0_31, %c0_32], %44 {strides = array<i32>} : memref<256x384xf32, #tpu.memory_space<vmem>>, vector<256x384xf32>,
    } else {
    }
    %c0 = arith.constant 0 : index
    %c0_2 = arith.constant 0 : index
    %7 = vector.load %arg3[%c0, %c0_2] : memref<128x256xf32, #tpu.memory_space<vmem>>, vector<128x256xf32>
    %c0_3 = arith.constant 0 : index
    %c0_4 = arith.constant 0 : index
    %8 = vector.load %arg11[%c0_3, %c0_4] : memref<256x384xf32, #tpu.memory_space<vmem>>, vector<256x384xf32>
    %cst = arith.constant dense<0.000000e+00> : vector<128x384xf32>
    %9 = tpu.matmul %7, %8, %cst {dimension_numbers = #tpu.dot_dimension_numbers<[1], [0], [0], [1], [0, 0, 1, 1], [], []>} : vector<128x256xf32>, vector<256x384xf32>, vector<128x384xf32> -> vector<128x384xf32>
    %c0_5 = arith.constant 0 : index
    %c0_6 = arith.constant 0 : index
    %c0_7 = arith.constant 0 : index
    %10 = vector.load %arg4[%c0_5, %c0_6, %c0_7] : memref<1x128x384xf32, #tpu.memory_space<vmem>>, vector<1x128x384xf32>
    %11 = vector.shape_cast %10 : vector<1x128x384xf32> to vector<128x384xf32>
    %12 = arith.addf %9, %11 : vector<128x384xf32>
    %c0_8 = arith.constant 0 : index
    %c0_9 = arith.constant 0 : index
    %c0_10 = arith.constant 0 : index
    %13 = vector.load %arg5[%c0_8, %c0_9, %c0_10] : memref<1x384x640xf32, #tpu.memory_space<vmem>>, vector<1x384x640xf32>
    %14 = vector.shape_cast %13 : vector<1x384x640xf32> to vector<384x640xf32>
    %cst_11 = arith.constant dense<0.000000e+00> : vector<128x640xf32>
    %15 = tpu.matmul %12, %14, %cst_11 {dimension_numbers = #tpu.dot_dimension_numbers<[1], [0], [0], [1], [0, 0, 1, 1], [], []>} : vector<128x384xf32>, vector<384x640xf32>, vector<128x640xf32> -> vector<128x640xf32>
    %c0_12 = arith.constant 0 : index
    %c0_13 = arith.constant 0 : index
    %c0_14 = arith.constant 0 : index
    %16 = vector.load %arg6[%c0_12, %c0_13, %c0_14] : memref<1x1x640xf32, #tpu.memory_space<vmem>>, vector<1x1x640xf32>
    %17 = vector.shape_cast %16 : vector<1x1x640xf32> to vector<1x640xf32>
    %18 = vector.broadcast %17 : vector<1x640xf32> to vector<128x640xf32>
    %19 = arith.addf %15, %18 : vector<128x640xf32>
    %cst_15 = arith.constant 0.000000e+00 : f32
    %20 = vector.broadcast %cst_15 : f32 to vector<128x640xf32>
    %21 = arith.maximumf %19, %20 : vector<128x640xf32>
    %c0_16 = arith.constant 0 : index
    %c0_17 = arith.constant 0 : index
    %c0_18 = arith.constant 0 : index
    %22 = vector.load %arg7[%c0_16, %c0_17, %c0_18] : memref<1x640x384xf32, #tpu.memory_space<vmem>>, vector<1x640x384xf32>
    %23 = vector.shape_cast %22 : vector<1x640x384xf32> to vector<640x384xf32>
    %cst_19 = arith.constant dense<0.000000e+00> : vector<128x384xf32>
    %24 = tpu.matmul %21, %23, %cst_19 {dimension_numbers = #tpu.dot_dimension_numbers<[1], [0], [0], [1], [0, 0, 1, 1], [], []>} : vector<128x640xf32>, vector<640x384xf32>, vector<128x384xf32> -> vector<128x384xf32>
    %c0_20 = arith.constant 0 : index
    %c0_21 = arith.constant 0 : index
    %c0_22 = arith.constant 0 : index
    %25 = vector.load %arg8[%c0_20, %c0_21, %c0_22] : memref<1x1x384xf32, #tpu.memory_space<vmem>>, vector<1x1x384xf32>
    %26 = vector.shape_cast %25 : vector<1x1x384xf32> to vector<1x384xf32>
    %27 = vector.broadcast %26 : vector<1x384xf32> to vector<128x384xf32>
    %28 = arith.addf %24, %27 : vector<128x384xf32>
    %true = arith.constant true
    %29 = arith.xori %0, %true : i1
    %30 = arith.extui %29 : i1 to i32
    %c0_i32_23 = arith.constant 0 : i32
    %31 = arith.cmpi ne, %30, %c0_i32_23 : i32
    scf.if %31 {
      %c128_i32 = arith.constant 128 : i32
      %44 = arith.muli %arg1, %c128_i32 : i32
      %45 = tpu.assume_multiple %44, 128 : i32
      %cst_29 = arith.constant 0.000000e+00 : f32
      %46 = vector.broadcast %cst_29 : f32 to vector<128x384xf32>
      %47 = arith.maximumf %28, %46 : vector<128x384xf32>
      %48 = arith.index_cast %45 : i32 to index
      %c0_30 = arith.constant 0 : index
      %49 = vector.load %arg12[%48, %c0_30] : memref<256x384xf32, #tpu.memory_space<vmem>>, vector<128x384xf32>
      tpu.vector_store %arg12[%48, %c0_30], %47 {strides = array<i32>} : memref<256x384xf32, #tpu.memory_space<vmem>>, vector<128x384xf32>,
    } else {
    }
    %true_24 = arith.constant true
    %32 = arith.xori %0, %true_24 : i1
    %33 = arith.andi %32, %2 : i1
    %34 = arith.extui %33 : i1 to i32
    %c0_i32_25 = arith.constant 0 : i32
    %35 = arith.cmpi ne, %34, %c0_i32_25 : i32
    scf.if %35 {
      %c0_29 = arith.constant 0 : index
      %c0_30 = arith.constant 0 : index
      %44 = vector.load %arg12[%c0_29, %c0_30] : memref<256x384xf32, #tpu.memory_space<vmem>>, vector<256x384xf32>
      %c0_31 = arith.constant 0 : index
      %c0_32 = arith.constant 0 : index
      %45 = vector.load %arg11[%c0_31, %c0_32] : memref<256x384xf32, #tpu.memory_space<vmem>>, vector<256x384xf32>
      tpu.vector_store %arg11[%c0_31, %c0_32], %44 {strides = array<i32>} : memref<256x384xf32, #tpu.memory_space<vmem>>, vector<256x384xf32>,
    } else {
    }
    %36 = arith.andi %0, %1 : i1
    %37 = arith.extui %36 : i1 to i32
    %c0_i32_26 = arith.constant 0 : i32
    %38 = arith.cmpi ne, %37, %c0_i32_26 : i32
    scf.if %38 {
      %cst_29 = arith.constant 0.000000e+00 : f32
      %44 = vector.broadcast %cst_29 : f32 to vector<24x384xf32>
      %c0_30 = arith.constant 0 : index
      %c0_31 = arith.constant 0 : index
      %45 = vector.load %arg13[%c0_30, %c0_31] : memref<24x384xf32, #tpu.memory_space<vmem>>, vector<24x384xf32>
      tpu.vector_store %arg13[%c0_30, %c0_31], %44 {strides = array<i32>} : memref<24x384xf32, #tpu.memory_space<vmem>>, vector<24x384xf32>,
    } else {
    }
    %39 = arith.extui %0 : i1 to i32
    %c0_i32_27 = arith.constant 0 : i32
    %40 = arith.cmpi ne, %39, %c0_i32_27 : i32
    scf.if %40 {
      %c0_29 = arith.constant 0 : index
      %c0_30 = arith.constant 0 : index
      %44 = vector.load %arg13[%c0_29, %c0_30] : memref<24x384xf32, #tpu.memory_space<vmem>>, vector<24x384xf32>
      %c0_31 = arith.constant 0 : index
      %c0_32 = arith.constant 0 : index
      %45 = vector.load %arg9[%c0_31, %c0_32] : memref<24x128xf32, #tpu.memory_space<vmem>>, vector<24x128xf32>
      %cst_33 = arith.constant dense<0.000000e+00> : vector<24x384xf32>
      %46 = tpu.matmul %45, %28, %cst_33 {dimension_numbers = #tpu.dot_dimension_numbers<[1], [0], [0], [1], [0, 0, 1, 1], [], []>} : vector<24x128xf32>, vector<128x384xf32>, vector<24x384xf32> -> vector<24x384xf32>
      %47 = arith.addf %44, %46 : vector<24x384xf32>
      %c0_34 = arith.constant 0 : index
      %c0_35 = arith.constant 0 : index
      %48 = vector.load %arg13[%c0_34, %c0_35] : memref<24x384xf32, #tpu.memory_space<vmem>>, vector<24x384xf32>
      tpu.vector_store %arg13[%c0_34, %c0_35], %47 {strides = array<i32>} : memref<24x384xf32, #tpu.memory_space<vmem>>, vector<24x384xf32>,
    } else {
    }
    %41 = arith.andi %0, %2 : i1
    %42 = arith.extui %41 : i1 to i32
    %c0_i32_28 = arith.constant 0 : i32
    %43 = arith.cmpi ne, %42, %c0_i32_28 : i32
    scf.if %43 {
      %c0_29 = arith.constant 0 : index
      %c0_30 = arith.constant 0 : index
      %44 = vector.load %arg13[%c0_29, %c0_30] : memref<24x384xf32, #tpu.memory_space<vmem>>, vector<24x384xf32>
      %cst_31 = arith.constant 0.000000e+00 : f32
      %45 = vector.broadcast %cst_31 : f32 to vector<24x384xf32>
      %46 = arith.maximumf %44, %45 : vector<24x384xf32>
      %c0_32 = arith.constant 0 : index
      %c0_33 = arith.constant 0 : index
      %47 = vector.load %arg10[%c0_32, %c0_33] : memref<24x384xf32, #tpu.memory_space<vmem>>, vector<24x384xf32>
      tpu.vector_store %arg10[%c0_32, %c0_33], %46 {strides = array<i32>} : memref<24x384xf32, #tpu.memory_space<vmem>>, vector<24x384xf32>,
    } else {
    }
    return
  }
  func.func @transform_0(%arg0: i32, %arg1: i32) -> (i32, i32) {
    %c0_i32 = arith.constant 0 : i32
    %c0_i32_0 = arith.constant 0 : i32
    %c0_i32_1 = arith.constant 0 : i32
    return %c0_i32, %c0_i32_0 : i32, i32
  }
  func.func @transform_1(%arg0: i32, %arg1: i32) -> (i32, i32) {
    %c0_i32 = arith.constant 0 : i32
    %c0_i32_0 = arith.constant 0 : i32
    return %arg1, %c0_i32 : i32, i32
  }
  func.func @transform_2(%arg0: i32, %arg1: i32) -> (i32, i32, i32) {
    %c0_i32 = arith.constant 0 : i32
    %c0_i32_0 = arith.constant 0 : i32
    return %arg0, %arg1, %c0_i32 : i32, i32, i32
  }
  func.func @transform_3(%arg0: i32, %arg1: i32) -> (i32, i32, i32) {
    %c0_i32 = arith.constant 0 : i32
    %c0_i32_0 = arith.constant 0 : i32
    %c0_i32_1 = arith.constant 0 : i32
    return %arg0, %c0_i32, %c0_i32_0 : i32, i32, i32
  }
  func.func @transform_4(%arg0: i32, %arg1: i32) -> (i32, i32, i32) {
    %c0_i32 = arith.constant 0 : i32
    %c0_i32_0 = arith.constant 0 : i32
    %c0_i32_1 = arith.constant 0 : i32
    return %arg0, %c0_i32, %c0_i32_0 : i32, i32, i32
  }
  func.func @transform_5(%arg0: i32, %arg1: i32) -> (i32, i32, i32) {
    %c0_i32 = arith.constant 0 : i32
    %c0_i32_0 = arith.constant 0 : i32
    %c0_i32_1 = arith.constant 0 : i32
    return %arg0, %c0_i32, %c0_i32_0 : i32, i32, i32
  }
  func.func @transform_6(%arg0: i32, %arg1: i32) -> (i32, i32, i32) {
    %c0_i32 = arith.constant 0 : i32
    %c0_i32_0 = arith.constant 0 : i32
    %c0_i32_1 = arith.constant 0 : i32
    return %arg0, %c0_i32, %c0_i32_0 : i32, i32, i32
  }
  func.func @transform_7(%arg0: i32, %arg1: i32) -> (i32, i32) {
    %c0_i32 = arith.constant 0 : i32
    %c0_i32_0 = arith.constant 0 : i32
    return %c0_i32, %arg1 : i32, i32
  }
  func.func @transform_8(%arg0: i32, %arg1: i32) -> (i32, i32) {
    %c0_i32 = arith.constant 0 : i32
    %c0_i32_0 = arith.constant 0 : i32
    %c0_i32_1 = arith.constant 0 : i32
    return %c0_i32, %c0_i32_0 : i32, i32
  }
}

</mosaic_0001>

<bundles_post_ra>
// kernel: tpu_custom_call.1
= control target key start
LH: loop header
LB: loop body
LE: loop exit
PB: predicated region body
PF: predicated region fallthrough
CT: control target
= control target key end

     0   :  { %s8463_s0 = inlined_call_operand.hbm [shape: f32[256,384], index: 0, kind: input, shape index: {}]   ;;  %s8464_s1 = inlined_call_operand.hbm [shape: f32[256,256], index: 1, kind: input, shape index: {}]   ;;  %s8465_s2 = inlined_call_operand.hbm [shape: f32[5,256,384], index: 2, kind: input, shape index: {}]   ;;  %s8466_s3 = inlined_call_operand.hbm [shape: f32[5,384,640], index: 3, kind: input, shape index: {}]   ;;  %s8467_s4 = inlined_call_operand.hbm [shape: f32[5,1,640], index: 4, kind: input, shape index: {}]   ;;  %s8468_s5 = inlined_call_operand.hbm [shape: f32[5,640,384], index: 5, kind: input, shape index: {}]   ;;  %s8469_s6 = inlined_call_operand.hbm [shape: f32[5,1,384], index: 6, kind: input, shape index: {}]   ;;  %s8470_s7 = inlined_call_operand.hbm [shape: f32[24,256], index: 7, kind: input, shape index: {}]   ;;  %s8471_s8 = inlined_call_operand.hbm [shape: f32[24,384], index: 8, kind: output, shape index: {}]  }
   0x1   :  { %8592 = sst [smem:[#allocation62_spill]] %s8463_s0 }
   0x2   :  { %8593 = sst [smem:[#allocation63_spill]] %s8464_s1 }
   0x3   :  { %8594 = sst [smem:[#allocation64_spill]] %s8465_s2 }
   0x4   :  { %8595 = sst [smem:[#allocation65_spill]] %s8466_s3 }
   0x5   :  { %8596 = sst [smem:[#allocation66_spill]] %s8467_s4 }
   0x6   :  { %8597 = sst [smem:[#allocation67_spill]] %s8468_s5 }
   0x7   :  { %8598 = sst [smem:[#allocation68_spill]] %s8469_s6 }
   0x8   :  { %8599 = sst [smem:[#allocation69_spill]] %s8470_s7 }
   0x9   :  { %8600 = sst [smem:[#allocation70_spill]] %s8471_s8 }
   0xa   :  { %13 = vsyncpa [#allocation6], 0 }
   0xb   :  { %14 = vsyncpa [#allocation9], 0 }
   0xc   :  { %16 = vsyncpa [#allocation9 + $0x1], 0 }
   0xd   :  { %17 = vsyncpa [#allocation12], 0 }
   0xe   :  { %19 = vsyncpa [#allocation12 + $0x1], 0 }
   0xf   :  { %20 = vsyncpa [#allocation15], 0 }
  0x10   :  { %22 = vsyncpa [#allocation15 + $0x1], 0 }
  0x11   :  { %23 = vsyncpa [#allocation18], 0 }
  0x12   :  { %25 = vsyncpa [#allocation18 + $0x1], 0 }
  0x13   :  { %26 = vsyncpa [#allocation7], 0  ;;  %s5709_s27 = smov 0   ;;  %s5711_s28 = smov 0  }
  0x14   :  { %s5713_s29 = smov 0   ;;  %s5715_s30 = smov 0  }
  0x15   :  { %s5717_s9 = smov 0   ;;  %s5719_s10 = smov 0  }
  0x16   :  { %s5721_s11 = smov 0   ;;  %s5723_s12 = smov 0  }
  0x17   :  { %s5725_s13 = smov 0   ;;  %s5727_s14 = smov 0  }
  0x18   :  { %s5729_s15 = smov 0   ;;  %s5731_s16 = smov 0  }
  0x19   :  { %s5733_s17 = smov 0   ;;  %s5735_s18 = smov 0  }
  0x1a LB: > { %8601 = sst [smem:[#allocation27_spill]] %s5595_s29  ;;  %s41_s19 = sadd.s32 1, %s5631_s16  ;;  %s5639_s18 = sphi %s5735_s18, %s32_s18   ;;  %s5635_s17 = sphi %s5733_s17, %s8826_s17   ;;  %s5631_s16 = sphi %s5731_s16, %s8825_s16   ;;  %s5627_s15 = sphi %s5729_s15, %s8824_s15   ;;  %s5623_s14 = sphi %s5727_s14, %s8823_s14   ;;  %s5619_s13 = sphi %s5725_s13, %s8822_s13   ;;  %s5615_s12 = sphi %s5723_s12, %s8832_s12   ;;  %s5611_s11 = sphi %s5721_s11, %s8831_s11   ;;  %s5607_s10 = sphi %s5719_s10, %s8820_s10   ;;  %s5603_s9 = sphi %s5717_s9, %s8830_s9   ;;  %s5599_s30 = sphi %s5715_s30, %s8829_s30   ;;  %s5595_s29 = sphi %s5713_s29, %s8818_s29   ;;  %s5591_s28 = sphi %s5711_s28, %s8828_s28   ;;  %s5587_s27 = sphi %s5709_s27, %s8827_s27  }
  0x1b   : > { %8602 = sst [smem:[#allocation28_spill]] %s5607_s10  ;;  %s44_s20 = sadd.s32 1, %s5635_s17 }
  0x1c   : > { %8603 = sst [smem:[#allocation29_spill]] %s5619_s13  ;;  %p42_p0 = scmp.ge.s32.totalorder %s41_s19, 2 }
  0x1d   : > { %8604 = sst [smem:[#allocation30_spill]] %s5623_s14  ;;  %s72_s21 = sadd.s32 1, %s5619_s13 }
  0x1e   : > { %8605 = sst [smem:[#allocation31_spill]] %s5627_s15  ;;  %p79_p1 = scmp.ne.s32.totalorder %s5619_s13, %s5615_s12 }
  0x1f   : > { %8606 = sst [smem:[#allocation32_spill]] %s5631_s16  ;;  %p8493_p2 = scmp.eq.s32.totalorder %s5639_s18, 0 }
  0x20   : > { %8607 = sst [smem:[#allocation33_spill]] %s5635_s17  ;;  %s8834_s19 = smov (%p42_p0, %s41_s19), 0 }
  0x21   : > { %8608 = sst [smem:[#allocation34_spill]] %s5639_s18  ;;  %s8836_s20 = smov (!%p42_p0, %s44_s20), %s5635_s17 }
  0x22   : > { %8609 = sst [smem:[#allocation35_spill]] %s8834_s19  ;;  %s69_s22 = ssub.s32 %s5631_s16, %s8834_s19 }
  0x23   : > { %p5792_p3 = por %p8493_p2, %p79_p1  ;;  %p46_p4 = scmp.ge.s32.totalorder %s8836_s20, 5 }
  0x24   : > { %p70_p5 = scmp.eq.s32.totalorder %s69_s22, 0  ;;  %p85_p6 = scmp.ne.s32.totalorder %s5615_s12, %s5611_s11 }
  0x25   : > { %s8838_s20 = smov (%p46_p4, %s8836_s20), 0  ;;  %p8484_p7 = scmp.lt.s32.totalorder %s5639_s18, 10 }
  0x26   : > { %8611 = sst [smem:[#allocation36_spill]] %s8838_s20  ;;  %s5805_s25 = ssub.s32 %s5635_s17, %s8838_s20 }
  0x27   : > { %s5801_s24 = scalar_select %p70_p5, %s5619_s13, %s72_s21  }
  0x28   : > { %s97_s26 = sor.u32 %s5805_s25, %s69_s22  ;;  %p124_p8 = scmp.eq.s32.totalorder %s5805_s25, 0 }
  0x29   : > { %8612 = sst [smem:[#allocation37_spill]] %s5801_s24  ;;  %p5810_p9 = scmp.eq.s32.totalorder %s97_s26, 0 }
  0x2a   : > { %s5815_s8 = sand.u32 1, %s5639_s18   ;;  %s5818_s14 = sand.u32 1, %s5619_s13  }
  0x2b   : > { %8614 = sst [smem:[#allocation38_spill]] %s5818_s14  ;;  %s4474_s15 = sshll.u32 %s5818_s14, 8 }
  0x2c   : > { %s4498_s21 = sshll.u32 %s5631_s16, 12  ;;  %s8615_s1 = sld [smem:[#allocation63_spill]] }
  0x2d   : > { %s305_s6 = scalar_lea.vmem [#allocation8], %s4474_s15  ;;  %p5829_p10 = pnand %p8484_p7, %p5792_p3 }
  0x2e   : > { %s313_s4 = sshll.u32 %s305_s6, 4  ;;  %s8479_s26 = scalar_lea.sflag [#allocation9], %s5815_s8  ;;  %s314_s4 = int_to_ptr.vmem [resolvable:$true] %s313_s4 }
  0x2f   : > { %s8616_s22 = scalar_select %p5829_p10, 1, 0 }
  0x30   : > { %p8483_p11 = pneg %p5829_p10  ;;  %s5268_s13 = scalar_lea.vmem %s314_s4, 4096 }
  0x31   : > { %8617 = sst [smem:[#allocation39_spill]] %s8616_s22  ;;  %p5269_p12 = scmp.ne.s32.totalorder %s314_s4, %s5268_s13 }
  0x32   : > { %s312_s7 = scalar_lea.hbm %s8615_s1, %s4498_s21  ;;  %s5641_s15 = smov [#allocation8]  }
  0x33   : > { %p5271_p13 = pnand %p5269_p12, %p8483_p11  ;;  %s5273_s6 = sshll.u32 %s5641_s15, 4  ;;  %s5274_s6 = int_to_ptr.vmem [resolvable:$false] %s5273_s6 }
  0x34   : > { %s5275_s20 = scalar_lea.vmem %s5274_s6, 8192  ;;  %p5276_p1 = scmp.lt.s32.totalorder %s314_s4, %s5274_s6 }
  0x35   : > { %p5272_p0 = pneg %p5271_p13  ;;  %p5277_p3 = scmp.lt.s32.totalorder %s5275_s20, %s5268_s13 }
  0x37   : > { %p5278_p4 = por %p5277_p3, %p5276_p1 }
  0x39   : > { %p5279_p5 = pnand %p5278_p4, %p5272_p0 }
  0x3b   : > { %5282 = shalt.err (!%p5279_p5)
}
  0x3c   : > { %s8478_s23 = smov 256   ;;  %s5643_s24 = smov 16  }
  0x3d   : > { %5102 = dma.hbm_to_vmem [thread:$0]  (!%p5829_p10), %s312_s7, 4096, %s314_s4, %s8479_s26, %s8478_s23, %s8478_s23, %s5643_s24  }
  0x3e   : > { %s126_s13 = sadd.s32 1, %s5595_s29  ;;  %p133_p12 = scmp.ne.s32.totalorder %s5595_s29, %s5591_s28 }
  0x3f   : > { %s5851_s21 = scalar_select %p124_p8, %s5595_s29, %s126_s13  }
  0x40   : > { %p135_p13 = por %p133_p12, %p8493_p2  ;;  %p139_p0 = scmp.ne.s32.totalorder %s5591_s28, %s5587_s27 }
  0x41   : > { %8618 = sst [smem:[#allocation40_spill]] %s5851_s21  ;;  %s5858_s15 = sand.u32 1, %s5595_s29  }
  0x42   : > { %s8485_s6 = smul.u32 1920, %s5858_s15  ;;  %p5863_p1 = pnand %p8484_p7, %p135_p13 }
  0x43   : > { %s5060_s4 = smul.u32 30720, %s5635_s17  ;;  %s8620_s3 = sld [smem:[#allocation65_spill]] }
  0x44   : > { %s351_s13 = scalar_lea.vmem [#allocation11], %s8485_s6  ;;  %s8499_s26 = scalar_lea.sflag [#allocation12], %s5815_s8 }
  0x45   : > { %s358_s23 = sshll.u32 %s351_s13, 4  ;;  %p8492_p8 = pneg %p5863_p1  ;;  %s359_s23 = int_to_ptr.vmem [resolvable:$true] %s358_s23 }
  0x46   : > { %s5296_s1 = scalar_lea.vmem %s359_s23, 30720  ;;  %s5644_s21 = smov [#allocation11]  }
  0x47   : > { %p5297_p3 = scmp.ne.s32.totalorder %s359_s23, %s5296_s1  ;;  %s5301_s29 = sshll.u32 %s5644_s21, 4  ;;  %s5302_s29 = int_to_ptr.vmem [resolvable:$false] %s5301_s29 }
  0x48   : > { %s5303_s22 = scalar_lea.vmem %s5302_s29, 61440  ;;  %p5304_p12 = scmp.lt.s32.totalorder %s359_s23, %s5302_s29 }
  0x49   : > { %s357_s24 = scalar_lea.hbm %s8620_s3, %s5060_s4  ;;  %p5299_p4 = pnand %p5297_p3, %p8492_p8 }
  0x4a   : > { %p5305_p13 = scmp.lt.s32.totalorder %s5303_s22, %s5296_s1 }
  0x4b   : > { %p5300_p5 = pneg %p5299_p4 }
  0x4c   : > { %p5306_p11 = por %p5305_p13, %p5304_p12 }
  0x4e   : > { %p5307_p7 = pnand %p5306_p11, %p5300_p5 }
  0x50   : > { %5310 = shalt.err (!%p5307_p7)
}
  0x51   : > { %s5645_s7 = smov 640   ;;  %s5646_s25 = smov 40  }
  0x52   : > { %5108 = dma.hbm_to_vmem [thread:$0]  (!%p5863_p1), %s357_s24, 30720, %s359_s23, %s8499_s26, %s5645_s7, %s5645_s7, %s5646_s25  }
  0x53   : > { %s8621_s5 = sld [smem:[#allocation67_spill]]  ;;  %s8622_s3 = smul.u32 1920, %s5858_s15 }
  0x54   : > { %s8498_s22 = scalar_lea.sflag [#allocation15], %s5815_s8  ;;  %s5647_s2 = smov [#allocation14]  }
  0x55   : > { %s391_s29 = scalar_lea.vmem [#allocation14], %s8622_s3  ;;  %s5329_s17 = sshll.u32 %s5647_s2, 4  ;;  %s5330_s17 = int_to_ptr.vmem [resolvable:$false] %s5329_s17 }
  0x56   : > { %s398_s1 = sshll.u32 %s391_s29, 4  ;;  %s5331_s16 = scalar_lea.vmem %s5330_s17, 61440  ;;  %s399_s1 = int_to_ptr.vmem [resolvable:$true] %s398_s1 }
  0x57   : > { %s5324_s14 = scalar_lea.vmem %s399_s1, 30720  ;;  %p5332_p4 = scmp.lt.s32.totalorder %s399_s1, %s5330_s17 }
  0x58   : > { %p5325_p7 = scmp.ne.s32.totalorder %s399_s1, %s5324_s14  ;;  %p5333_p5 = scmp.lt.s32.totalorder %s5331_s16, %s5324_s14 }
  0x59   : > { %s397_s21 = scalar_lea.hbm %s8621_s5, %s5060_s4 }
  0x5a   : > { %p5327_p11 = pnand %p5325_p7, %p8492_p8  ;;  %p5334_p12 = por %p5333_p5, %p5332_p4 }
  0x5c   : > { %p5328_p3 = pneg %p5327_p11 }
  0x5e   : > { %p5335_p13 = pnand %p5334_p12, %p5328_p3 }
  0x60   : > { %5338 = shalt.err (!%p5335_p13)
}
  0x61   : > { %s8500_s23 = smov 384   ;;  %s8501_s3 = smov 24  }
  0x62   : > { %5114 = dma.hbm_to_vmem [thread:$0]  (!%p5863_p1), %s397_s21, 30720, %s399_s1, %s8498_s22, %s8500_s23, %s8500_s23, %s8501_s3  }
  0x63   : > { %s5900_s2 = sadd.s32 4294967295, %s5639_s18   ;;  %p4471_p11 = scmp.ge.s32.totalorder %s5639_s18, 1 }
  0x64   : > { %p86_p7 = scmp.eq.s32.totalorder %s5900_s2, 0  ;;  %p275_p3 = scmp.lt.s32.totalorder %s5639_s18, 11 }
  0x65   : > { %s5650_s6 = smov [#allocation5]   ;;  %s100_s11 = sadd.s32 1, %s5607_s10 }
  0x66   : > { %p5910_p4 = por %p86_p7, %p85_p6  ;;  %p5919_p5 = por %p139_p0, %p86_p7 }
  0x67   : > { %p5923_p12 = pnand %p4471_p11, %p275_p3  ;;  %s287_s4 = sshll.u32 %s5650_s6, 4  ;;  %s288_s4 = int_to_ptr.vmem [resolvable:$true] %s287_s4 }
  0x68   : > { %s8623_s14 = scalar_select %p5910_p4, 1, 0 }
  0x69   : > { %s8624_s16 = scalar_select %p5919_p5, 1, 0 }
  0x6a   : > { %p5095_p13 = pneg %p5923_p12  ;;  %s5350_s24 = scalar_lea.vmem %s288_s4, 12288 }
  0x6b   : > { %p5351_p2 = scmp.ne.s32.totalorder %s288_s4, %s5350_s24  ;;  %p5358_p10 = scmp.lt.s32.totalorder %s288_s4, %s288_s4 }
  0x6c   : > { %p5096_p6 = pnand %p5095_p13, %p86_p7  ;;  %p5359_p5 = scmp.lt.s32.totalorder %s5350_s24, %s5350_s24 }
  0x6e   : > { %p5341_p8 = pneg %p5096_p6  ;;  %p5360_p11 = por %p5359_p5, %p5358_p10 }
  0x70   : > { %p5353_p0 = pnand %p5351_p2, %p5341_p8 }
  0x72   : > { %p5354_p4 = pneg %p5353_p0 }
  0x74   : > { %p5361_p3 = pnand %p5360_p11, %p5354_p4 }
  0x76   : > { %5364 = shalt.err (!%p5361_p3)
}
  0x77   : > { %s8626_s0 = sld [smem:[#allocation62_spill]]  ;;  %p107_p2 = scmp.ne.s32.totalorder %s5607_s10, %s5603_s9 }
  0x78   : > { %s8627_s25 = sld [smem:[#allocation32_spill]]  ;;  %p113_p10 = scmp.ne.s32.totalorder %s5603_s9, %s5599_s30 }
  0x79   : > { %s8628_s13 = sld [smem:[#allocation33_spill]]  ;;  %s325_s29 = sand.u32 1, %s5607_s10  }
  0x7a   : > { %s5941_s21 = scalar_select %p5810_p9, %s5607_s10, %s100_s11  }
  0x7b   : > { %p8630_p8 = scmp.eq.s32.totalorder %s5639_s18, 0  ;;  %p5953_p5 = por %p113_p10, %p86_p7 }
  0x7c   : > { %8629 = sst [smem:[#allocation41_spill]] %s5941_s21  ;;  %s5056_s24 = smul.u32 384, %s325_s29 }
  0x7d   : > { %5098 = dma.hbm_to_vmem [thread:$0]  (!%p5096_p6), %s8626_s0, 12288, %s288_s4, [#allocation6], %s8500_s23, %s8500_s23, %s8501_s3  }
  0x7e   : > { %s5057_s1 = smul.u32 48, %s8627_s25  ;;  %p109_p4 = por %p107_p2, %p8630_p8 }
  0x7f   : > { %s5058_s27 = smul.u32 96, %s8628_s13  ;;  %p8632_p13 = scmp.lt.s32.totalorder %s5639_s18, 10 }
  0x80   : > { %s5061_s19 = smul.u32 5, %s5858_s15  ;;  %s327_s30 = scalar_lea.vmem [#allocation10], %s5056_s24 }
  0x81   : > { %p5960_p0 = pnand %p8632_p13, %p109_p4  ;;  %s334_s4 = sadd.s32 %s5058_s27, %s5057_s1 }
  0x82   : > { %s337_s11 = sshll.u32 %s327_s30, 4  ;;  %s4480_s22 = sshll.u32 %s334_s4, 7  ;;  %s338_s11 = int_to_ptr.vmem [resolvable:$true] %s337_s11 }
  0x83   : > { %s8634_s3 = sld [smem:[#allocation64_spill]]  ;;  %p5367_p9 = pneg %p5960_p0 }
  0x84   : > { %s5378_s29 = scalar_lea.vmem %s338_s11, 6144  ;;  %s5651_s5 = smov [#allocation10]  }
  0x85   : > { %p5379_p6 = scmp.ne.s32.totalorder %s338_s11, %s5378_s29  ;;  %s5383_s21 = sshll.u32 %s5651_s5, 4  ;;  %s5384_s21 = int_to_ptr.vmem [resolvable:$false] %s5383_s21 }
  0x86   : > { %s5385_s10 = scalar_lea.vmem %s5384_s21, 12288  ;;  %p5386_p2 = scmp.lt.s32.totalorder %s338_s11, %s5384_s21 }
  0x87   : > { %p5381_p11 = pnand %p5379_p6, %p5367_p9  ;;  %p5387_p10 = scmp.lt.s32.totalorder %s5385_s10, %s5378_s29 }
  0x89   : > { %s336_s0 = scalar_lea.hbm %s8634_s3, %s4480_s22  ;;  %p5382_p3 = pneg %p5381_p11 }
  0x8a   : > { %p5388_p8 = por %p5387_p10, %p5386_p2 }
  0x8c   : > { %p5389_p4 = pnand %p5388_p8, %p5382_p3 }
  0x8e   : > { %5392 = shalt.err (!%p5389_p4)
}
  0x8f   : > { %s8635_s1 = smov 24   ;;  %s8636_s26 = smov 384  }
  0x90   : > { %s8637_s22 = scalar_lea.sflag [#allocation9], %s5815_s8  ;;  %s5062_s23 = smul.u32 80, %s8628_s13 }
  0x91   : > { %5105 = dma.hbm_to_vmem [thread:$0]  (!%p5960_p0), %s336_s0, 6144, %s338_s11, %s8637_s22, %s8636_s26, %s8636_s26, %s8635_s1  }
  0x92   : > { %s372_s5 = scalar_lea.vmem [#allocation13], %s5061_s19  ;;  %s5065_s24 = smul.u32 3, %s5858_s15 }
  0x93   : > { %s380_s3 = sshll.u32 %s372_s5, 4  ;;  %s8638_s27 = sld [smem:[#allocation66_spill]]  ;;  %s381_s3 = int_to_ptr.vmem [resolvable:$true] %s380_s3 }
  0x94   : > { %s5406_s30 = scalar_lea.vmem %s381_s3, 80  ;;  %p8639_p9 = pneg %p5863_p1 }
  0x95   : > { %p5407_p13 = scmp.ne.s32.totalorder %s381_s3, %s5406_s30  ;;  %s5652_s7 = smov [#allocation13]  }
  0x96   : > { %s5411_s29 = sshll.u32 %s5652_s7, 4  ;;  %s5412_s29 = int_to_ptr.vmem [resolvable:$false] %s5411_s29 }
  0x97   : > { %p5409_p6 = pnand %p5407_p13, %p8639_p9  ;;  %s5413_s18 = scalar_lea.vmem %s5412_s29, 160 }
  0x98   : > { %p5414_p0 = scmp.lt.s32.totalorder %s381_s3, %s5412_s29  ;;  %p5415_p3 = scmp.lt.s32.totalorder %s5413_s18, %s5406_s30 }
  0x99   : > { %s378_s4 = scalar_lea.hbm %s8638_s27, %s5062_s23  ;;  %p5410_p11 = pneg %p5409_p6 }
  0x9a   : > { %p5416_p2 = por %p5415_p3, %p5414_p0 }
  0x9c   : > { %p5417_p10 = pnand %p5416_p2, %p5410_p11 }
  0x9e   : > { %5420 = shalt.err (!%p5417_p10)
}
  0x9f   : > { %s8640_s0 = scalar_lea.sflag [#allocation12], %s5815_s8  ;;  %s8641_s15 = sld [smem:[#allocation38_spill]] }
  0xa0   : > { %5111 = dma.hbm_to_vmem [thread:$0]  (!%p5863_p1), %s378_s4, 80, %s381_s3, %s8640_s0  }
  0xa1   : > { %s5066_s19 = smul.u32 48, %s8628_s13  ;;  %s412_s11 = scalar_lea.vmem [#allocation16], %s5065_s24 }
  0xa2   : > { %s420_s1 = sshll.u32 %s412_s11, 4  ;;  %s8642_s5 = sld [smem:[#allocation68_spill]]  ;;  %s421_s1 = int_to_ptr.vmem [resolvable:$true] %s420_s1 }
  0xa3   : > { %s5434_s18 = scalar_lea.vmem %s421_s1, 48  ;;  %p8643_p4 = pmov %p8639_p9 }
  0xa4   : > { %p5435_p8 = scmp.ne.s32.totalorder %s421_s1, %s5434_s18  ;;  %s5653_s10 = smov [#allocation16]  }
  0xa5   : > { %s5067_s26 = smul.u32 24, %s8641_s15  ;;  %s5439_s27 = sshll.u32 %s5653_s10, 4  ;;  %s5440_s27 = int_to_ptr.vmem [resolvable:$false] %s5439_s27 }
  0xa6   : > { %p5437_p13 = pnand %p5435_p8, %p8643_p4  ;;  %s5441_s30 = scalar_lea.vmem %s5440_s27, 96 }
  0xa7   : > { %p5442_p6 = scmp.lt.s32.totalorder %s421_s1, %s5440_s27  ;;  %p5443_p11 = scmp.lt.s32.totalorder %s5441_s30, %s5434_s18 }
  0xa8   : > { %s418_s21 = scalar_lea.hbm %s8642_s5, %s5066_s19  ;;  %p5438_p9 = pneg %p5437_p13 }
  0xa9   : > { %p5444_p0 = por %p5443_p11, %p5442_p6 }
  0xab   : > { %p5445_p3 = pnand %p5444_p0, %p5438_p9 }
  0xad   : > { %5448 = shalt.err (!%p5445_p3)
}
  0xae   : > { %s8644_s13 = scalar_lea.sflag [#allocation15], %s5815_s8  ;;  %s8645_s3 = sld [smem:[#allocation39_spill]] }
  0xaf   : > { %5117 = dma.hbm_to_vmem [thread:$0]  (!%p5863_p1), %s418_s21, 48, %s421_s1, %s8644_s13  }
  0xb0   : > { %s4485_s24 = sshll.u32 %s8627_s25, 7  ;;  %s8646_s29 = sld [smem:[#allocation69_spill]] }
  0xb1   : > { %s431_s19 = scalar_lea.vmem [#allocation17], %s5067_s26  ;;  %s428_s22 = scalar_lea.sflag [#allocation18], %s8641_s15 }
  0xb2   : > { %s437_s11 = sshll.u32 %s431_s19, 4  ;;  %s5654_s8 = smov [#allocation17]   ;;  %s438_s11 = int_to_ptr.vmem [resolvable:$true] %s437_s11 }
  0xb3   : > { %s5462_s23 = scalar_lea.vmem %s438_s11, 384  ;;  %s5467_s20 = sshll.u32 %s5654_s8, 4  ;;  %s5468_s20 = int_to_ptr.vmem [resolvable:$false] %s5467_s20 }
  0xb4   : > { %p5463_p2 = scmp.ne.s32.totalorder %s438_s11, %s5462_s23  ;;  %p8647_p10 = scmp.ne.s32.totalorder %s8645_s3, 0 }
  0xb5   : > { %s5469_s5 = scalar_lea.vmem %s5468_s20, 768  ;;  %p5470_p1 = scmp.lt.s32.totalorder %s438_s11, %s5468_s20 }
  0xb6   : > { %s436_s0 = scalar_lea.hbm %s8646_s29, %s4485_s24  ;;  %p8648_p8 = pneg %p8647_p10 }
  0xb7   : > { %p5471_p9 = scmp.lt.s32.totalorder %s5469_s5, %s5462_s23 }
  0xb8   : > { %p5465_p4 = pnand %p5463_p2, %p8648_p8 }
  0xb9   : > { %p5472_p6 = por %p5471_p9, %p5470_p1 }
  0xba   : > { %p5466_p13 = pneg %p5465_p4 }
  0xbc   : > { %p5473_p11 = pnand %p5472_p6, %p5466_p13 }
  0xbe   : > { %5476 = shalt.err (!%p5473_p11)
}
  0xbf   : > { %s5655_s25 = smov 128   ;;  %s5656_s1 = smov 8  }
  0xc0   : > { %s8649_s15 = smov 256   ;;  %449 = sbr.rel (%p5923_p12) target bundleno = 1596 (0x63c), region = 52 }
  0xc1   : > { %5120 = dma.hbm_to_vmem [thread:$0]  (!%p8647_p10), %s436_s0, 384, %s438_s11, %s428_s22, %s8649_s15, %s5655_s25, %s5656_s1  }
  0xc5   : > { %5558 = dma.done.wait (%p86_p7), [#allocation6], 12288  }
  0xc6   : > { %5560 = vsyncadd (%p86_p7), [#allocation6], 4294955008  ;;  %s455_s26 = sand.u32 1, %s5900_s2   ;;  %s6020_s21 = sand.u32 1, %s5615_s12  }
  0xc7   : > { %s4488_s18 = sshll.u32 %s6020_s21, 8  ;;  %s456_s10 = scalar_lea.sflag [#allocation9], %s455_s26 }
  0xc8   : > { %s6023_s27 = scalar_lea.vmem [#allocation8], %s4488_s18  ;;  %p8650_p0 = scmp.ne.s32.totalorder %s8623_s14, 0 }
  0xca   : > { %5562 = dma.done.wait (%p8650_p0), %s456_s10, 4096  }
  0xcb   : > { %5564 = vsyncadd (%p8650_p0), %s456_s10, 4294963200  ;;  %s466_s17 = sand.u32 1, %s5603_s9  }
  0xcc   : > { %s5068_s30 = smul.u32 384, %s466_s17 }
  0xce   : > { %s6030_s13 = scalar_lea.vmem [#allocation10], %s5068_s30 }
  0xcf   : > { %5566 = dma.done.wait (%p5953_p5), %s456_s10, 6144  }
  0xd0   : > { %5568 = vsyncadd (%p5953_p5), %s456_s10, 4294961152  ;;  %s475_s3 = sand.u32 1, %s5591_s28   ;;  %s474_s4 = scalar_lea.sflag [#allocation12], %s455_s26 }
  0xd1   : > { %s5069_s24 = smul.u32 1920, %s475_s3  ;;  %p8651_p7 = scmp.ne.s32.totalorder %s8624_s16, 0 }
  0xd3   : > { %s6037_s7 = scalar_lea.vmem [#allocation11], %s5069_s24 }
  0xd4   : > { %5570 = dma.done.wait (%p8651_p7), %s474_s4, 30800  }
  0xd5   : > { %5572 = vsyncadd (%p8651_p7), %s474_s4, 4294936496  ;;  %s5070_s29 = smul.u32 5, %s475_s3  ;;  %s492_s19 = scalar_lea.sflag [#allocation15], %s455_s26 }
  0xd6   : > { %s6045_s11 = scalar_lea.vmem [#allocation14], %s5069_s24 }
  0xd7   : > { %s6043_s0 = scalar_lea.vmem [#allocation13], %s5070_s29 }
  0xd8   : > { %5574 = dma.done.wait (%p8651_p7), %s492_s19, 30768  }
  0xd9   : > { %5576 = vsyncadd (%p8651_p7), %s492_s19, 4294936528  ;;  %s5071_s6 = smul.u32 3, %s475_s3  ;;  %s510_s8 = scalar_lea.sflag [#allocation18], %s6020_s21 }
  0xda   : > { %s5072_s22 = smul.u32 24, %s6020_s21 }
  0xdb   : > { %s6052_s23 = scalar_lea.vmem [#allocation16], %s5071_s6 }
  0xdc   : > { %s6055_s20 = scalar_lea.vmem [#allocation17], %s5072_s22 }
  0xdd   : > { %5578 = dma.done.wait (%p8650_p0), %s510_s8, 384  }
  0xde   : > { %5580 = vsyncadd (%p8650_p0), %s510_s8, 4294966912  ;;  %s8652_s5 = sld [smem:[#allocation31_spill]] }
  0xdf   : > { %s8653_s25 = sld [smem:[#allocation30_spill]] }
  0xe4   : > { %p573_p12 = scmp.eq.s32.totalorder %s8652_s5, 4  ;;  %p576_p2 = scmp.eq.s32.totalorder %s8652_s5, 0 }
  0xe5   : > { %p574_p5 = scmp.eq.s32.totalorder %s8653_s25, 0  ;;  %p575_p3 = scmp.eq.s32.totalorder %s8653_s25, 1 }
  0xe7   : > { %p577_p10 = pnand %p576_p2, %p574_p5 }
  0xe9   : > { %580 = sbr.rel (%p577_p10) target bundleno = 287 (0x11f), region = 88 }
  0xee   : > { %v581_v0 = vld [vmem:[#allocation5] sm:$0xff]  ;;  %v582_v1 = vld [vmem:[#allocation5 + $0x8] sm:$0xff]  ;;  %v583_v2 = vld [vmem:[#allocation5 + $0x10] sm:$0xff] }
  0xef   : > { %677 = vst [vmem:[#allocation2 + $0x2b0] sm:$0xff] %v581_v0  ;;  %678 = vst [vmem:[#allocation2 + $0xd0] sm:$0xff] %v582_v1  ;;  %v584_v3 = vld [vmem:[#allocation5 + $0x18] sm:$0xff]  ;;  %v585_v4 = vld [vmem:[#allocation5 + $0x20] sm:$0xff] }
  0xf0   : > { %679 = vst [vmem:[#allocation2 + $0x10] sm:$0xff] %v583_v2  ;;  %v586_v5 = vld [vmem:[#allocation5 + $0x28] sm:$0xff]  ;;  %680 = vst [vmem:[#allocation2 + $0x48] sm:$0xff] %v584_v3  ;;  %v587_v6 = vld [vmem:[#allocation5 + $0x30] sm:$0xff] }
  0xf1   : > { %681 = vst [vmem:[#allocation2 + $0x30] sm:$0xff] %v585_v4  ;;  %682 = vst [vmem:[#allocation2 + $0xf0] sm:$0xff] %v586_v5  ;;  %v588_v7 = vld [vmem:[#allocation5 + $0x38] sm:$0xff]  ;;  %v589_v8 = vld [vmem:[#allocation5 + $0x40] sm:$0xff] }
  0xf2   : > { %683 = vst [vmem:[#allocation2 + $0xf8] sm:$0xff] %v587_v6  ;;  %684 = vst [vmem:[#allocation2 + $0x78] sm:$0xff] %v588_v7  ;;  %v590_v9 = vld [vmem:[#allocation5 + $0x48] sm:$0xff]  ;;  %v591_v10 = vld [vmem:[#allocation5 + $0x50] sm:$0xff] }
  0xf3   : > { %685 = vst [vmem:[#allocation2 + $0x128] sm:$0xff] %v589_v8  ;;  %v592_v11 = vld [vmem:[#allocation5 + $0x58] sm:$0xff]  ;;  %686 = vst [vmem:[#allocation2 + $0xe0] sm:$0xff] %v590_v9  ;;  %v593_v12 = vld [vmem:[#allocation5 + $0x60] sm:$0xff] }
  0xf4   : > { %687 = vst [vmem:[#allocation2 + $0x2f8] sm:$0xff] %v591_v10  ;;  %688 = vst [vmem:[#allocation2 + $0x2b8] sm:$0xff] %v592_v11  ;;  %v594_v13 = vld [vmem:[#allocation5 + $0x68] sm:$0xff]  ;;  %v595_v14 = vld [vmem:[#allocation5 + $0x70] sm:$0xff] }
  0xf5   : > { %689 = vst [vmem:[#allocation2 + $0x2a0] sm:$0xff] %v593_v12  ;;  %690 = vst [vmem:[#allocation2 + $0x168] sm:$0xff] %v594_v13  ;;  %v596_v15 = vld [vmem:[#allocation5 + $0x78] sm:$0xff]  ;;  %v597_v16 = vld [vmem:[#allocation5 + $0x80] sm:$0xff] }
  0xf6   : > { %691 = vst [vmem:[#allocation2 + $0x178] sm:$0xff] %v595_v14  ;;  %v598_v17 = vld [vmem:[#allocation5 + $0x88] sm:$0xff]  ;;  %692 = vst [vmem:[#allocation2 + $0x40] sm:$0xff] %v596_v15  ;;  %v599_v18 = vld [vmem:[#allocation5 + $0x90] sm:$0xff] }
  0xf7   : > { %693 = vst [vmem:[#allocation2] sm:$0xff] %v597_v16  ;;  %694 = vst [vmem:[#allocation2 + $0x248] sm:$0xff] %v598_v17  ;;  %v600_v19 = vld [vmem:[#allocation5 + $0x98] sm:$0xff]  ;;  %v601_v20 = vld [vmem:[#allocation5 + $0xa0] sm:$0xff] }
  0xf8   : > { %695 = vst [vmem:[#allocation2 + $0xe8] sm:$0xff] %v599_v18  ;;  %696 = vst [vmem:[#allocation2 + $0x68] sm:$0xff] %v600_v19  ;;  %v602_v21 = vld [vmem:[#allocation5 + $0xa8] sm:$0xff]  ;;  %v603_v22 = vld [vmem:[#allocation5 + $0xb0] sm:$0xff] }
  0xf9   : > { %697 = vst [vmem:[#allocation2 + $0x228] sm:$0xff] %v601_v20  ;;  %v604_v23 = vld [vmem:[#allocation5 + $0xb8] sm:$0xff]  ;;  %698 = vst [vmem:[#allocation2 + $0xa8] sm:$0xff] %v602_v21  ;;  %v605_v24 = vld [vmem:[#allocation5 + $0xc0] sm:$0xff] }
  0xfa   : > { %699 = vst [vmem:[#allocation2 + $0x20] sm:$0xff] %v603_v22  ;;  %700 = vst [vmem:[#allocation2 + $0x1b0] sm:$0xff] %v604_v23  ;;  %v606_v25 = vld [vmem:[#allocation5 + $0xc8] sm:$0xff]  ;;  %v607_v26 = vld [vmem:[#allocation5 + $0xd0] sm:$0xff] }
  0xfb   : > { %701 = vst [vmem:[#allocation2 + $0x220] sm:$0xff] %v605_v24  ;;  %702 = vst [vmem:[#allocation2 + $0x258] sm:$0xff] %v606_v25  ;;  %v608_v27 = vld [vmem:[#allocation5 + $0xd8] sm:$0xff]  ;;  %v609_v28 = vld [vmem:[#allocation5 + $0xe0] sm:$0xff] }
  0xfc   : > { %703 = vst [vmem:[#allocation2 + $0x238] sm:$0xff] %v607_v26  ;;  %v610_v29 = vld [vmem:[#allocation5 + $0xe8] sm:$0xff]  ;;  %704 = vst [vmem:[#allocation2 + $0x130] sm:$0xff] %v608_v27  ;;  %v611_v30 = vld [vmem:[#allocation5 + $0xf0] sm:$0xff] }
  0xfd   : > { %705 = vst [vmem:[#allocation2 + $0x158] sm:$0xff] %v609_v28  ;;  %706 = vst [vmem:[#allocation2 + $0x98] sm:$0xff] %v610_v29  ;;  %v612_v31 = vld [vmem:[#allocation5 + $0xf8] sm:$0xff]  ;;  %v613_v32 = vld [vmem:[#allocation5 + $0x100] sm:$0xff] }
  0xfe   : > { %707 = vst [vmem:[#allocation2 + $0x2e0] sm:$0xff] %v611_v30  ;;  %708 = vst [vmem:[#allocation2 + $0x1a8] sm:$0xff] %v612_v31  ;;  %v614_v33 = vld [vmem:[#allocation5 + $0x108] sm:$0xff]  ;;  %v615_v34 = vld [vmem:[#allocation5 + $0x110] sm:$0xff] }
  0xff   : > { %709 = vst [vmem:[#allocation2 + $0x1b8] sm:$0xff] %v613_v32  ;;  %v616_v35 = vld [vmem:[#allocation5 + $0x118] sm:$0xff]  ;;  %710 = vst [vmem:[#allocation2 + $0x80] sm:$0xff] %v614_v33  ;;  %v617_v36 = vld [vmem:[#allocation5 + $0x120] sm:$0xff] }
 0x100   : > { %711 = vst [vmem:[#allocation2 + $0x188] sm:$0xff] %v615_v34  ;;  %712 = vst [vmem:[#allocation2 + $0x208] sm:$0xff] %v616_v35  ;;  %v618_v37 = vld [vmem:[#allocation5 + $0x128] sm:$0xff]  ;;  %v619_v38 = vld [vmem:[#allocation5 + $0x130] sm:$0xff] }
 0x101   : > { %713 = vst [vmem:[#allocation2 + $0x38] sm:$0xff] %v617_v36  ;;  %714 = vst [vmem:[#allocation2 + $0x190] sm:$0xff] %v618_v37  ;;  %v620_v39 = vld [vmem:[#allocation5 + $0x138] sm:$0xff]  ;;  %v621_v40 = vld [vmem:[#allocation5 + $0x140] sm:$0xff] }
 0x102   : > { %715 = vst [vmem:[#allocation2 + $0x218] sm:$0xff] %v619_v38  ;;  %v622_v41 = vld [vmem:[#allocation5 + $0x148] sm:$0xff]  ;;  %716 = vst [vmem:[#allocation2 + $0x250] sm:$0xff] %v620_v39  ;;  %v623_v42 = vld [vmem:[#allocation5 + $0x150] sm:$0xff] }
 0x103   : > { %717 = vst [vmem:[#allocation2 + $0x1c8] sm:$0xff] %v621_v40  ;;  %718 = vst [vmem:[#allocation2 + $0x280] sm:$0xff] %v622_v41  ;;  %v624_v43 = vld [vmem:[#allocation5 + $0x158] sm:$0xff]  ;;  %v625_v44 = vld [vmem:[#allocation5 + $0x160] sm:$0xff] }
 0x104   : > { %719 = vst [vmem:[#allocation2 + $0x100] sm:$0xff] %v623_v42  ;;  %720 = vst [vmem:[#allocation2 + $0xb8] sm:$0xff] %v624_v43  ;;  %v626_v45 = vld [vmem:[#allocation5 + $0x168] sm:$0xff]  ;;  %v627_v46 = vld [vmem:[#allocation5 + $0x170] sm:$0xff] }
 0x105   : > { %721 = vst [vmem:[#allocation2 + $0x288] sm:$0xff] %v625_v44  ;;  %v628_v47 = vld [vmem:[#allocation5 + $0x178] sm:$0xff]  ;;  %722 = vst [vmem:[#allocation2 + $0x60] sm:$0xff] %v626_v45  ;;  %v629_v48 = vld [vmem:[#allocation5 + $0x180] sm:$0xff] }
 0x106   : > { %723 = vst [vmem:[#allocation2 + $0x210] sm:$0xff] %v627_v46  ;;  %724 = vst [vmem:[#allocation2 + $0x50] sm:$0xff] %v628_v47  ;;  %v630_v49 = vld [vmem:[#allocation5 + $0x188] sm:$0xff]  ;;  %v631_v50 = vld [vmem:[#allocation5 + $0x190] sm:$0xff] }
 0x107   : > { %725 = vst [vmem:[#allocation2 + $0x1e8] sm:$0xff] %v629_v48  ;;  %726 = vst [vmem:[#allocation2 + $0x2d0] sm:$0xff] %v630_v49  ;;  %v632_v51 = vld [vmem:[#allocation5 + $0x198] sm:$0xff]  ;;  %v633_v52 = vld [vmem:[#allocation5 + $0x1a0] sm:$0xff] }
 0x108   : > { %727 = vst [vmem:[#allocation2 + $0x1f0] sm:$0xff] %v631_v50  ;;  %v634_v53 = vld [vmem:[#allocation5 + $0x1a8] sm:$0xff]  ;;  %728 = vst [vmem:[#allocation2 + $0x28] sm:$0xff] %v632_v51  ;;  %v635_v54 = vld [vmem:[#allocation5 + $0x1b0] sm:$0xff] }
 0x109   : > { %729 = vst [vmem:[#allocation2 + $0x138] sm:$0xff] %v633_v52  ;;  %730 = vst [vmem:[#allocation2 + $0xc8] sm:$0xff] %v634_v53  ;;  %v636_v55 = vld [vmem:[#allocation5 + $0x1b8] sm:$0xff]  ;;  %v637_v56 = vld [vmem:[#allocation5 + $0x1c0] sm:$0xff] }
 0x10a   : > { %731 = vst [vmem:[#allocation2 + $0x58] sm:$0xff] %v635_v54  ;;  %732 = vst [vmem:[#allocation2 + $0x1c0] sm:$0xff] %v636_v55  ;;  %v638_v57 = vld [vmem:[#allocation5 + $0x1c8] sm:$0xff]  ;;  %v639_v58 = vld [vmem:[#allocation5 + $0x1d0] sm:$0xff] }
 0x10b   : > { %733 = vst [vmem:[#allocation2 + $0x298] sm:$0xff] %v637_v56  ;;  %v640_v59 = vld [vmem:[#allocation5 + $0x1d8] sm:$0xff]  ;;  %734 = vst [vmem:[#allocation2 + $0x70] sm:$0xff] %v638_v57  ;;  %v641_v60 = vld [vmem:[#allocation5 + $0x1e0] sm:$0xff] }
 0x10c   : > { %735 = vst [vmem:[#allocation2 + $0x18] sm:$0xff] %v639_v58  ;;  %736 = vst [vmem:[#allocation2 + $0x120] sm:$0xff] %v640_v59  ;;  %v642_v61 = vld [vmem:[#allocation5 + $0x1e8] sm:$0xff]  ;;  %v643_v62 = vld [vmem:[#allocation5 + $0x1f0] sm:$0xff] }
 0x10d   : > { %737 = vst [vmem:[#allocation2 + $0x240] sm:$0xff] %v641_v60  ;;  %738 = vst [vmem:[#allocation2 + $0x180] sm:$0xff] %v642_v61  ;;  %v644_v63 = vld [vmem:[#allocation5 + $0x1f8] sm:$0xff]  ;;  %v645_v0 = vld [vmem:[#allocation5 + $0x200] sm:$0xff] }
 0x10e   : > { %739 = vst [vmem:[#allocation2 + $0x1f8] sm:$0xff] %v643_v62  ;;  %v646_v1 = vld [vmem:[#allocation5 + $0x208] sm:$0xff]  ;;  %740 = vst [vmem:[#allocation2 + $0x1a0] sm:$0xff] %v644_v63  ;;  %v647_v2 = vld [vmem:[#allocation5 + $0x210] sm:$0xff] }
 0x10f   : > { %741 = vst [vmem:[#allocation2 + $0xa0] sm:$0xff] %v645_v0  ;;  %742 = vst [vmem:[#allocation2 + $0x278] sm:$0xff] %v646_v1  ;;  %v648_v3 = vld [vmem:[#allocation5 + $0x218] sm:$0xff]  ;;  %v649_v4 = vld [vmem:[#allocation5 + $0x220] sm:$0xff] }
 0x110   : > { %743 = vst [vmem:[#allocation2 + $0x8] sm:$0xff] %v647_v2  ;;  %744 = vst [vmem:[#allocation2 + $0x2c0] sm:$0xff] %v648_v3  ;;  %v650_v5 = vld [vmem:[#allocation5 + $0x228] sm:$0xff]  ;;  %v651_v6 = vld [vmem:[#allocation5 + $0x230] sm:$0xff] }
 0x111   : > { %745 = vst [vmem:[#allocation2 + $0x270] sm:$0xff] %v649_v4  ;;  %v652_v7 = vld [vmem:[#allocation5 + $0x238] sm:$0xff]  ;;  %746 = vst [vmem:[#allocation2 + $0x290] sm:$0xff] %v650_v5  ;;  %v653_v8 = vld [vmem:[#allocation5 + $0x240] sm:$0xff] }
 0x112   : > { %747 = vst [vmem:[#allocation2 + $0x2a8] sm:$0xff] %v651_v6  ;;  %748 = vst [vmem:[#allocation2 + $0x2f0] sm:$0xff] %v652_v7  ;;  %v654_v9 = vld [vmem:[#allocation5 + $0x248] sm:$0xff]  ;;  %v655_v10 = vld [vmem:[#allocation5 + $0x250] sm:$0xff] }
 0x113   : > { %749 = vst [vmem:[#allocation2 + $0x1e0] sm:$0xff] %v653_v8  ;;  %750 = vst [vmem:[#allocation2 + $0x150] sm:$0xff] %v654_v9  ;;  %v656_v11 = vld [vmem:[#allocation5 + $0x258] sm:$0xff]  ;;  %v657_v12 = vld [vmem:[#allocation5 + $0x260] sm:$0xff] }
 0x114   : > { %751 = vst [vmem:[#allocation2 + $0x2c8] sm:$0xff] %v655_v10  ;;  %v658_v13 = vld [vmem:[#allocation5 + $0x268] sm:$0xff]  ;;  %752 = vst [vmem:[#allocation2 + $0x1d0] sm:$0xff] %v656_v11  ;;  %v659_v14 = vld [vmem:[#allocation5 + $0x270] sm:$0xff] }
 0x115   : > { %753 = vst [vmem:[#allocation2 + $0x140] sm:$0xff] %v657_v12  ;;  %754 = vst [vmem:[#allocation2 + $0x230] sm:$0xff] %v658_v13  ;;  %v660_v15 = vld [vmem:[#allocation5 + $0x278] sm:$0xff]  ;;  %v661_v16 = vld [vmem:[#allocation5 + $0x280] sm:$0xff] }
 0x116   : > { %755 = vst [vmem:[#allocation2 + $0x160] sm:$0xff] %v659_v14  ;;  %756 = vst [vmem:[#allocation2 + $0x2d8] sm:$0xff] %v660_v15  ;;  %v662_v17 = vld [vmem:[#allocation5 + $0x288] sm:$0xff]  ;;  %v663_v18 = vld [vmem:[#allocation5 + $0x290] sm:$0xff] }
 0x117   : > { %757 = vst [vmem:[#allocation2 + $0xc0] sm:$0xff] %v661_v16  ;;  %v664_v19 = vld [vmem:[#allocation5 + $0x298] sm:$0xff]  ;;  %758 = vst [vmem:[#allocation2 + $0x170] sm:$0xff] %v662_v17  ;;  %v665_v20 = vld [vmem:[#allocation5 + $0x2a0] sm:$0xff] }
 0x118   : > { %759 = vst [vmem:[#allocation2 + $0x90] sm:$0xff] %v663_v18  ;;  %760 = vst [vmem:[#allocation2 + $0xb0] sm:$0xff] %v664_v19  ;;  %v666_v21 = vld [vmem:[#allocation5 + $0x2a8] sm:$0xff]  ;;  %v667_v22 = vld [vmem:[#allocation5 + $0x2b0] sm:$0xff] }
 0x119   : > { %761 = vst [vmem:[#allocation2 + $0x200] sm:$0xff] %v665_v20  ;;  %762 = vst [vmem:[#allocation2 + $0xd8] sm:$0xff] %v666_v21  ;;  %v668_v23 = vld [vmem:[#allocation5 + $0x2b8] sm:$0xff]  ;;  %v669_v24 = vld [vmem:[#allocation5 + $0x2c0] sm:$0xff] }
 0x11a   : > { %763 = vst [vmem:[#allocation2 + $0x1d8] sm:$0xff] %v667_v22  ;;  %v670_v25 = vld [vmem:[#allocation5 + $0x2c8] sm:$0xff]  ;;  %764 = vst [vmem:[#allocation2 + $0x2e8] sm:$0xff] %v668_v23  ;;  %v671_v26 = vld [vmem:[#allocation5 + $0x2d0] sm:$0xff] }
 0x11b   : > { %765 = vst [vmem:[#allocation2 + $0x260] sm:$0xff] %v669_v24  ;;  %766 = vst [vmem:[#allocation2 + $0x268] sm:$0xff] %v670_v25  ;;  %v672_v27 = vld [vmem:[#allocation5 + $0x2d8] sm:$0xff]  ;;  %v673_v28 = vld [vmem:[#allocation5 + $0x2e0] sm:$0xff] }
 0x11c   : > { %767 = vst [vmem:[#allocation2 + $0x88] sm:$0xff] %v671_v26  ;;  %768 = vst [vmem:[#allocation2 + $0x110] sm:$0xff] %v672_v27  ;;  %v674_v29 = vld [vmem:[#allocation5 + $0x2e8] sm:$0xff]  ;;  %v675_v30 = vld [vmem:[#allocation5 + $0x2f0] sm:$0xff] }
 0x11d   : > { %769 = vst [vmem:[#allocation2 + $0x108] sm:$0xff] %v673_v28  ;;  %v676_v31 = vld [vmem:[#allocation5 + $0x2f8] sm:$0xff]  ;;  %770 = vst [vmem:[#allocation2 + $0x198] sm:$0xff] %v674_v29 }
 0x11e   : > { %771 = vst [vmem:[#allocation2 + $0x148] sm:$0xff] %v675_v30  ;;  %772 = vst [vmem:[#allocation2 + $0x118] sm:$0xff] %v676_v31 }
 0x11f PF: > { %v851_v32 = vld [vmem:[#allocation2 + $0x210] sm:$0xff]  ;;  %v850_v34 = vld [vmem:[#allocation2 + $0x60] sm:$0xff]  ;;  %v848_v36 = vld [vmem:[#allocation2 + $0xb8] sm:$0xff]  ;;  %s8762_s14 = sld [smem:[#allocation31_spill]] }
 0x120   : > { %949 = vmatprep.subr.mxu0 %v851_v32  ;;  %v852_v35 = vld [vmem:[#allocation2 + $0x50] sm:$0xff]  ;;  %v847_v38 = vld [vmem:[#allocation2 + $0x100] sm:$0xff]  ;;  %v849_v39 = vld [vmem:[#allocation2 + $0x288] sm:$0xff]  ;;  %s8778_s16 = sld [smem:[#allocation30_spill]] (!%p573_p12) }
 0x121   : > { %950 = vmatpush1.msra.mxu0 %v850_v34  ;;  %v845_v40 = vld [vmem:[#allocation2 + $0x1c8] sm:$0xff]  ;;  %v844_v42 = vld [vmem:[#allocation2 + $0x250] sm:$0xff]  ;;  %v846_v43 = vld [vmem:[#allocation2 + $0x280] sm:$0xff] }
 0x122   : > { %951 = vmatprep.subr.mxu0 %v848_v36  ;;  %v894_v41 = vld [vmem:[#allocation2 + $0x268] sm:$0xff]  ;;  %v842_v44 = vld [vmem:[#allocation2 + $0x190] sm:$0xff]  ;;  %v891_v45 = vld [vmem:[#allocation2 + $0x1d8] sm:$0xff] }
 0x123   : > { %952 = vmatpush1.msra.mxu0 %v847_v38  ;;  %v841_v46 = vld [vmem:[#allocation2 + $0x38] sm:$0xff]  ;;  %v839_v48 = vld [vmem:[#allocation2 + $0x188] sm:$0xff]  ;;  %v888_v49 = vld [vmem:[#allocation2 + $0xb0] sm:$0xff] }
 0x124   : > { %v897_v37 = vld [vmem:[#allocation2 + $0x108] sm:$0xff]  ;;  %953 = vmatprep.subr.mxu0 %v845_v40  ;;  %v843_v47 = vld [vmem:[#allocation2 + $0x218] sm:$0xff]  ;;  %v838_v50 = vld [vmem:[#allocation2 + $0x80] sm:$0xff] }
 0x125   : > { %v900_v33 = vld [vmem:[#allocation2 + $0x118] sm:$0xff]  ;;  %954 = vmatpush1.msra.mxu0 %v844_v42  ;;  %v840_v51 = vld [vmem:[#allocation2 + $0x208] sm:$0xff]  ;;  %v885_v53 = vld [vmem:[#allocation2 + $0xc0] sm:$0xff]  ;;  %p3711_p8 = scmp.ne.s32.totalorder %s8762_s14, 4 }
 0x126   : > { %4500 = vmatprep.subr.mxu1 %v900_v33  ;;  %955 = vmatprep.subr.mxu0 %v842_v44  ;;  %v836_v52 = vld [vmem:[#allocation2 + $0x1a8] sm:$0xff]  ;;  %v835_v54 = vld [vmem:[#allocation2 + $0x2e0] sm:$0xff]  ;;  %v837_v55 = vld [vmem:[#allocation2 + $0x1b8] sm:$0xff]  ;;  %s4490_s1 = sshll.u32 (!%p573_p12), %s8778_s16, 7 }
 0x127   : > { %4501 = vmatpush3.msra.mxu1 %v852_v35  ;;  %956 = vmatpush1.msra.mxu0 %v841_v46  ;;  %v833_v56 = vld [vmem:[#allocation2 + $0x158] sm:$0xff]  ;;  %v882_v57 = vld [vmem:[#allocation2 + $0x230] sm:$0xff]  ;;  %v879_v61 = vld [vmem:[#allocation2 + $0x2c8] sm:$0xff]  ;;  %s3764_s15 = sshra.s32 (!%p573_p12), %s4490_s1, 3 }
 0x128   : > { %4502 = vmatprep.subr.mxu1 %v897_v37  ;;  %957 = vmatprep.subr.mxu0 %v839_v48  ;;  %v832_v58 = vld [vmem:[#allocation2 + $0x130] sm:$0xff]  ;;  %v834_v59 = vld [vmem:[#allocation2 + $0x98] sm:$0xff]  ;;  %v829_v62 = vld [vmem:[#allocation2 + $0x220] sm:$0xff]  ;;  %s4499_s26 = smul.u32 (!%p573_p12), 24, %s3764_s15 }
 0x129   : > { %4503 = vmatpush3.msra.mxu1 %v849_v39  ;;  %958 = vmatpush1.msra.mxu0 %v838_v50  ;;  %v830_v60 = vld [vmem:[#allocation2 + $0x258] sm:$0xff]  ;;  %v827_v0 = vld [vmem:[#allocation2 + $0x20] sm:$0xff]  ;;  %v876_v1 = vld [vmem:[#allocation2 + $0x2f0] sm:$0xff] }
 0x12a   : > { %4504 = vmatprep.subr.mxu1 %v894_v41  ;;  %959 = vmatprep.subr.mxu0 %v836_v52  ;;  %v831_v63 = vld [vmem:[#allocation2 + $0x238] sm:$0xff]  ;;  %v826_v2 = vld [vmem:[#allocation2 + $0xa8] sm:$0xff]  ;;  %v828_v3 = vld [vmem:[#allocation2 + $0x1b0] sm:$0xff]  ;;  %s8238_s21 = scalar_lea.vmem (!%p573_p12), [#allocation3], %s4499_s26 }
 0x12b   : > { %4505 = vmatpush3.msra.mxu1 %v846_v43  ;;  %960 = vmatpush1.msra.mxu0 %v835_v54  ;;  %v824_v4 = vld [vmem:[#allocation2 + $0x68] sm:$0xff]  ;;  %v873_v5 = vld [vmem:[#allocation2 + $0x270] sm:$0xff]  ;;  %v821_v8 = vld [vmem:[#allocation2] sm:$0xff] }
 0x12c   : > { %4506 = vmatprep.subr.mxu1 %v891_v45  ;;  %961 = vmatprep.subr.mxu0 %v833_v56  ;;  %v823_v6 = vld [vmem:[#allocation2 + $0xe8] sm:$0xff]  ;;  %v870_v9 = vld [vmem:[#allocation2 + $0x278] sm:$0xff]  ;;  %v820_v10 = vld [vmem:[#allocation2 + $0x40] sm:$0xff] }
 0x12d   : > { %4507 = vmatpush3.msra.mxu1 %v843_v47  ;;  %962 = vmatpush1.msra.mxu0 %v832_v58  ;;  %v825_v7 = vld [vmem:[#allocation2 + $0x228] sm:$0xff]  ;;  %v867_v13 = vld [vmem:[#allocation2 + $0x1f8] sm:$0xff]  ;;  %v817_v14 = vld [vmem:[#allocation2 + $0x2a0] sm:$0xff] }
 0x12e   : > { %4508 = vmatprep.subr.mxu1 %v888_v49  ;;  %963 = vmatprep.subr.mxu0 %v830_v60  ;;  %v822_v11 = vld [vmem:[#allocation2 + $0x248] sm:$0xff]  ;;  %v819_v15 = vld [vmem:[#allocation2 + $0x178] sm:$0xff]  ;;  %v864_v17 = vld [vmem:[#allocation2 + $0x120] sm:$0xff] }
 0x12f   : > { %4509 = vmatpush3.msra.mxu1 %v840_v51  ;;  %964 = vmatpush1.msra.mxu0 %v829_v62  ;;  %v818_v12 = vld [vmem:[#allocation2 + $0x168] sm:$0xff]  ;;  %v815_v16 = vld [vmem:[#allocation2 + $0x2f8] sm:$0xff]  ;;  %v814_v18 = vld [vmem:[#allocation2 + $0xe0] sm:$0xff] }
 0x130   : > { %4510 = vmatprep.subr.mxu1 %v885_v53  ;;  %965 = vmatprep.subr.mxu0 %v827_v0  ;;  %v816_v19 = vld [vmem:[#allocation2 + $0x2b8] sm:$0xff]  ;;  %v813_v23 = vld [vmem:[#allocation2 + $0x128] sm:$0xff]  ;;  %v809_v24 = vld [vmem:[#allocation2 + $0x30] sm:$0xff] }
 0x131   : > { %4511 = vmatpush3.msra.mxu1 %v837_v55  ;;  %966 = vmatpush1.msra.mxu0 %v826_v2  ;;  %v812_v20 = vld [vmem:[#allocation2 + $0x78] sm:$0xff]  ;;  %v858_v25 = vld [vmem:[#allocation2 + $0xc8] sm:$0xff]  ;;  %v810_v27 = vld [vmem:[#allocation2 + $0xf0] sm:$0xff] }
 0x132   : > { %4512 = vmatprep.subr.mxu1 %v882_v57  ;;  %967 = vmatprep.subr.mxu0 %v824_v4  ;;  %v861_v21 = vld [vmem:[#allocation2 + $0x298] sm:$0xff]  ;;  %v808_v26 = vld [vmem:[#allocation2 + $0x48] sm:$0xff]  ;;  %v806_v28 = vld [vmem:[#allocation2 + $0xd0] sm:$0xff] }
 0x133   : > { %4513 = vmatpush3.msra.mxu1 %v834_v59  ;;  %968 = vmatpush1.msra.mxu0 %v823_v6  ;;  %v811_v22 = vld [vmem:[#allocation2 + $0xf8] sm:$0xff]  ;;  %v855_v29 = vld [vmem:[#allocation2 + $0x1f0] sm:$0xff]  ;;  %v899_v33 = vld [vmem:[#allocation2 + $0x148] sm:$0xff] }
 0x134   : > { %4514 = vmatprep.subr.mxu1 %v879_v61  ;;  %969 = vmatprep.subr.mxu0 %v821_v8  ;;  %v805_v30 = vld [vmem:[#allocation2 + $0x2b0] sm:$0xff]  ;;  %v6069_v34 = vld [vmem:[%s6023_s27] sm:$0xff]  ;;  %v898_v35 = vld [vmem:[#allocation2 + $0x198] sm:$0xff] }
 0x135   : > { %4515 = vmatpush3.msra.mxu1 %v831_v63  ;;  %970 = vmatpush1.msra.mxu0 %v820_v10  ;;  %v807_v31 = vld [vmem:[#allocation2 + $0x10] sm:$0xff]  ;;  %v6072_v37 = vld [vmem:[%s6023_s27 + $0x18] sm:$0xff]  ;;  %v895_v38 = vld [vmem:[#allocation2 + $0x88] sm:$0xff] }
 0x136   : > { %4516 = vmatprep.subr.mxu1 %v876_v1  ;;  %971 = vmatprep.subr.mxu0 %v818_v12  ;;  %v774_v32 = vld [vmem:[%s6023_s27 + $0x8] sm:$0xff]  ;;  %v893_v39 = vld [vmem:[#allocation2 + $0x260] sm:$0xff]  ;;  %v6077_v40 = vld [vmem:[%s6023_s27 + $0x10] sm:$0xff] }
 0x137   : > { %4517 = vmatpush3.msra.mxu1 %v828_v3  ;;  %972 = vmatpush1.msra.mxu0 %v817_v14  ;;  %v896_v36 = vld [vmem:[#allocation2 + $0x110] sm:$0xff]  ;;  %v892_v41 = vld [vmem:[#allocation2 + $0x2e8] sm:$0xff]  ;;  %v890_v42 = vld [vmem:[#allocation2 + $0xd8] sm:$0xff] }
 0x138   : > { %4518 = vmatprep.subr.mxu1 %v873_v5  ;;  %973 = vmatprep.subr.mxu0 %v815_v16  ;;  %v6080_v43 = vld [vmem:[%s6023_s27 + $0x28] sm:$0xff]  ;;  %v889_v44 = vld [vmem:[#allocation2 + $0x200] sm:$0xff]  ;;  %v6085_v46 = vld [vmem:[%s6023_s27 + $0x20] sm:$0xff] }
 0x139   : > { %4519 = vmatpush3.msra.mxu1 %v825_v7  ;;  %974 = vmatpush1.msra.mxu0 %v814_v18  ;;  %v887_v45 = vld [vmem:[#allocation2 + $0x90] sm:$0xff]  ;;  %v884_v48 = vld [vmem:[#allocation2 + $0x2d8] sm:$0xff]  ;;  %v6088_v49 = vld [vmem:[%s6023_s27 + $0x38] sm:$0xff] }
 0x13a   : > { %4520 = vmatprep.subr.mxu1 %v870_v9  ;;  %975 = vmatprep.subr.mxu0 %v812_v20  ;;  %v886_v47 = vld [vmem:[#allocation2 + $0x170] sm:$0xff]  ;;  %v883_v50 = vld [vmem:[#allocation2 + $0x160] sm:$0xff]  ;;  %v1331_v52 = vld [vmem:[%s6037_s7 + $0x260] sm:$0xff] }
 0x13b   : > { %4521 = vmatpush3.msra.mxu1 %v822_v11  ;;  %976 = vmatpush1.msra.mxu0 %v811_v22  ;;  %v881_v51 = vld [vmem:[#allocation2 + $0x140] sm:$0xff]  ;;  %v6094_v53 = vld [vmem:[%s6023_s27 + $0x30] sm:$0xff]  ;;  %v880_v54 = vld [vmem:[#allocation2 + $0x1d0] sm:$0xff] }
 0x13c   : > { %4522 = vmatprep.subr.mxu1 %v867_v13  ;;  %977 = vmatprep.subr.mxu0 %v809_v24  ;;  %v1330_v55 = vld [vmem:[%s6037_s7 + $0x258] sm:$0xff]  ;;  %v878_v56 = vld [vmem:[#allocation2 + $0x150] sm:$0xff]  ;;  %v875_v60 = vld [vmem:[#allocation2 + $0x2a8] sm:$0xff] }
 0x13d   : > { %4523 = vmatpush3.msra.mxu1 %v819_v15  ;;  %978 = vmatpush1.msra.mxu0 %v808_v26  ;;  %v6098_v57 = vld [vmem:[%s6023_s27 + $0x48] sm:$0xff]  ;;  %v877_v58 = vld [vmem:[#allocation2 + $0x1e0] sm:$0xff]  ;;  %v1325_v61 = vld [vmem:[%s6037_s7 + $0x230] sm:$0xff] }
 0x13e   : > { %4524 = vmatprep.subr.mxu1 %v864_v17  ;;  %979 = vmatprep.subr.mxu0 %v806_v28  ;;  %v1326_v59 = vld [vmem:[%s6037_s7 + $0x238] sm:$0xff]  ;;  %v6105_v62 = vld [vmem:[%s6023_s27 + $0x40] sm:$0xff]  ;;  %v874_v63 = vld [vmem:[#allocation2 + $0x290] sm:$0xff] }
 0x13f   : > { %4525 = vmatpush3.msra.mxu1 %v816_v19  ;;  %980 = vmatpush1.msra.mxu0 %v805_v30  ;;  %v872_v0 = vld [vmem:[#allocation2 + $0x2c0] sm:$0xff]  ;;  %v871_v2 = vld [vmem:[#allocation2 + $0x8] sm:$0xff]  ;;  %v1321_v3 = vld [vmem:[%s6037_s7 + $0x210] sm:$0xff] }
 0x140   : > { %4526 = vmatprep.subr.mxu1 %v861_v21  ;;  %1174 = vmatprep.mubr.f32.mxu1 %v774_v32  ;;  %v6108_v1 = vld [vmem:[%s6023_s27 + $0x58] sm:$0xff]  ;;  %v1320_v5 = vld [vmem:[%s6037_s7 + $0x208] sm:$0xff]  ;;  %v6115_v6 = vld [vmem:[%s6023_s27 + $0x50] sm:$0xff] }
 0x141   : > { %4527 = vmatpush3.msra.mxu1 %v813_v23  ;;  %981 = vmatprep.subr.mxu0 %v899_v33  ;;  %v869_v4 = vld [vmem:[#allocation2 + $0xa0] sm:$0xff]  ;;  %v6118_v9 = vld [vmem:[%s6023_s27 + $0x68] sm:$0xff]  ;;  %v863_v12 = vld [vmem:[#allocation2 + $0x18] sm:$0xff] }
 0x142   : > { %4528 = vmatprep.subr.mxu1 %v858_v25  ;;  %982 = vmatpush2.msra.mxu0 %v898_v35  ;;  %v868_v7 = vld [vmem:[#allocation2 + $0x1a0] sm:$0xff]  ;;  %v1316_v11 = vld [vmem:[%s6037_s7 + $0x1e8] sm:$0xff]  ;;  %v1315_v13 = vld [vmem:[%s6037_s7 + $0x1e0] sm:$0xff] }
 0x143   : > { %4529 = vmatpush3.msra.mxu1 %v810_v27  ;;  %983 = vmatprep.subr.mxu0 %v896_v36  ;;  %v866_v8 = vld [vmem:[#allocation2 + $0x180] sm:$0xff]  ;;  %v6125_v14 = vld [vmem:[%s6023_s27 + $0x60] sm:$0xff]  ;;  %v862_v15 = vld [vmem:[#allocation2 + $0x70] sm:$0xff] }
 0x144   : > { %4530 = vmatprep.subr.mxu1 %v855_v29  ;;  %984 = vmatpush2.msra.mxu0 %v895_v38  ;;  %v865_v10 = vld [vmem:[#allocation2 + $0x240] sm:$0xff]  ;;  %v859_v18 = vld [vmem:[#allocation2 + $0x58] sm:$0xff]  ;;  %v1311_v19 = vld [vmem:[%s6037_s7 + $0x1c0] sm:$0xff] }
 0x145   : > { %4531 = vmatpush3.msra.mxu1 %v807_v31  ;;  %1013 = vmatprep.mubr.f32.mxu0 %v774_v32  ;;  %v860_v16 = vld [vmem:[#allocation2 + $0x1c0] sm:$0xff]  ;;  %v857_v20 = vld [vmem:[#allocation2 + $0x138] sm:$0xff]  ;;  %v856_v23 = vld [vmem:[#allocation2 + $0x28] sm:$0xff] }
 0x146   : > { %1175 = vmatmul.mubr.f32.vlgmr.msra.gmra.mxu1 %v6069_v34  ;;  %985 = vmatprep.subr.mxu0 %v893_v39  ;;  %v6128_v17 = vld [vmem:[%s6023_s27 + $0x78] sm:$0xff]  ;;  %v6135_v22 = vld [vmem:[%s6023_s27 + $0x70] sm:$0xff]  ;;  %v854_v24 = vld [vmem:[#allocation2 + $0x2d0] sm:$0xff] }
 0x147   : > { %1179 = vmatprep.mubr.f32.mxu1 %v6072_v37  ;;  %986 = vmatpush2.msra.mxu0 %v892_v41  ;;  %v1310_v21 = vld [vmem:[%s6037_s7 + $0x1b8] sm:$0xff]  ;;  %v6138_v25 = vld [vmem:[%s6023_s27 + $0x88] sm:$0xff]  ;;  %v853_v26 = vld [vmem:[#allocation2 + $0x1e8] sm:$0xff] }
 0x148   : > { %987 = vmatprep.subr.mxu0 %v890_v42  ;;  %1522 = vmatprep.subr.mxu1 %v1331_v52  ;;  %v1306_v27 = vld [vmem:[%s6037_s7 + $0x198] sm:$0xff]  ;;  %v1491_v28 = vld [vmem:[%s6037_s7 + $0x760] sm:$0xff]  ;;  %v1305_v33 = vld [vmem:[%s6037_s7 + $0x190] sm:$0xff] }
 0x149   : > { %988 = vmatpush2.msra.mxu0 %v889_v44  ;;  %1523 = vmatpush1.msra.mxu1 %v1330_v55  ;;  %v6145_v29 = vld [vmem:[%s6023_s27 + $0x80] sm:$0xff]  ;;  %v6148_v30 = vld [vmem:[%s6023_s27 + $0x98] sm:$0xff]  ;;  %v1301_v35 = vld [vmem:[%s6037_s7 + $0x170] sm:$0xff] }
 0x14a   : > { %1180 = vmatmul.mubr.f32.gmra.mxu1 %v6077_v40  ;;  %989 = vmatprep.subr.mxu0 %v887_v45  ;;  %v1490_v31 = vld [vmem:[%s6037_s7 + $0x758] sm:$0xff]  ;;  %v6159_v36 = vld [vmem:[%s6023_s27 + $0x90] sm:$0xff]  ;;  %v6162_v38 = vld [vmem:[%s6023_s27 + $0xa8] sm:$0xff] }
 0x14b   : > { %1184 = vmatprep.mubr.f32.mxu1 %v6080_v43  ;;  %990 = vmatpush2.msra.mxu0 %v886_v47  ;;  %v1486_v32 = vld [vmem:[%s6037_s7 + $0x738] sm:$0xff]  ;;  %v1481_v39 = vld [vmem:[%s6037_s7 + $0x710] sm:$0xff]  ;;  %v1296_v41 = vld [vmem:[%s6037_s7 + $0x148] sm:$0xff] }
 0x14c   : > { %991 = vmatprep.subr.mxu0 %v884_v48  ;;  %1524 = vmatprep.subr.mxu1 %v1326_v59  ;;  %v6173_v42 = vld [vmem:[%s6023_s27 + $0xa0] sm:$0xff]  ;;  %v6176_v44 = vld [vmem:[%s6023_s27 + $0xb8] sm:$0xff]  ;;  %v1476_v45 = vld [vmem:[%s6037_s7 + $0x6e8] sm:$0xff] }
 0x14d   : > { %992 = vmatpush2.msra.mxu0 %v883_v50  ;;  %1525 = vmatpush1.msra.mxu1 %v1325_v61  ;;  %v1291_v47 = vld [vmem:[%s6037_s7 + $0x120] sm:$0xff]  ;;  %v6187_v48 = vld [vmem:[%s6023_s27 + $0xb0] sm:$0xff]  ;;  %v6190_v50 = vld [vmem:[%s6023_s27 + $0xc8] sm:$0xff] }
 0x14e   : > { %1185 = vmatmul.mubr.f32.gmra.mxu1 %v6085_v46  ;;  %993 = vmatprep.subr.mxu0 %v881_v51  ;;  %v1471_v51 = vld [vmem:[%s6037_s7 + $0x6c0] sm:$0xff]  ;;  %v1286_v52 = vld [vmem:[%s6037_s7 + $0xf8] sm:$0xff]  ;;  %v6215_v59 = vld [vmem:[%s6023_s27 + $0xd0] sm:$0xff] }
 0x14f   : > { %1189 = vmatprep.mubr.f32.mxu1 %v6088_v49  ;;  %994 = vmatpush2.msra.mxu0 %v880_v54  ;;  %v6201_v54 = vld [vmem:[%s6023_s27 + $0xc0] sm:$0xff]  ;;  %v6204_v55 = vld [vmem:[%s6023_s27 + $0xd8] sm:$0xff]  ;;  %v1465_v61 = vld [vmem:[%s6037_s7 + $0x690] sm:$0xff] }
 0x150   : > { %995 = vmatprep.subr.mxu0 %v878_v56  ;;  %1526 = vmatprep.subr.mxu1 %v1321_v3  ;;  %v1466_v56 = vld [vmem:[%s6037_s7 + $0x698] sm:$0xff]  ;;  %v1460_v3 = vld [vmem:[%s6037_s7 + $0x668] sm:$0xff] }
 0x151   : > { %996 = vmatpush2.msra.mxu0 %v877_v58  ;;  %1527 = vmatpush1.msra.mxu1 %v1320_v5  ;;  %v1281_v58 = vld [vmem:[%s6037_s7 + $0xd0] sm:$0xff]  ;;  %v1275_v5 = vld [vmem:[%s6037_s7 + $0xa0] sm:$0xff] }
 0x152   : > { %1190 = vmatmul.mubr.f32.gmra.mxu1 %v6094_v53  ;;  %997 = vmatprep.subr.mxu0 %v875_v60  ;;  %v6218_v60 = vld [vmem:[%s6023_s27 + $0xe8] sm:$0xff] }
 0x153   : > { %1194 = vmatprep.mubr.f32.mxu1 %v6098_v57  ;;  %998 = vmatpush2.msra.mxu0 %v874_v63  ;;  %v1280_v63 = vld [vmem:[%s6037_s7 + $0xc8] sm:$0xff] }
 0x154   : > { %999 = vmatprep.subr.mxu0 %v872_v0  ;;  %1528 = vmatprep.subr.mxu1 %v1316_v11  ;;  %v1276_v0 = vld [vmem:[%s6037_s7 + $0xa8] sm:$0xff]  ;;  %v1266_v11 = vld [vmem:[%s6037_s7 + $0x58] sm:$0xff] }
 0x155   : > { %1000 = vmatpush2.msra.mxu0 %v871_v2  ;;  %1529 = vmatpush1.msra.mxu1 %v1315_v13  ;;  %v6232_v2 = vld [vmem:[%s6023_s27 + $0xf8] sm:$0xff] }
 0x156   : > { %1195 = vmatmul.mubr.f32.gmra.mxu1 %v6105_v62  ;;  %1001 = vmatprep.subr.mxu0 %v869_v4  ;;  %v1456_v4 = vld [vmem:[%s6037_s7 + $0x648] sm:$0xff]  ;;  %v1446_v13 = vld [vmem:[%s6037_s7 + $0x5f8] sm:$0xff] }
 0x157   : > { %1199 = vmatprep.mubr.f32.mxu1 %v6108_v1  ;;  %1002 = vmatpush2.msra.mxu0 %v868_v7  ;;  %v6243_v7 = vld [vmem:[%s6023_s27 + $0xf0] sm:$0xff] }
 0x158   : > { %1003 = vmatprep.subr.mxu0 %v866_v8  ;;  %1530 = vmatprep.subr.mxu1 %v1311_v19  ;;  %v1455_v8 = vld [vmem:[%s6037_s7 + $0x640] sm:$0xff]  ;;  %v1436_v19 = vld [vmem:[%s6037_s7 + $0x5a8] sm:$0xff] }
 0x159   : > { %1004 = vmatpush2.msra.mxu0 %v865_v10  ;;  %1531 = vmatpush1.msra.mxu1 %v1310_v21  ;;  %v1451_v10 = vld [vmem:[%s6037_s7 + $0x620] sm:$0xff] }
 0x15a   : > { %1200 = vmatmul.mubr.f32.gmra.mxu1 %v6115_v6  ;;  %1005 = vmatprep.subr.mxu0 %v863_v12  ;;  %v1450_v12 = vld [vmem:[%s6037_s7 + $0x618] sm:$0xff]  ;;  %v1435_v21 = vld [vmem:[%s6037_s7 + $0x5a0] sm:$0xff] }
 0x15b   : > { %1204 = vmatprep.mubr.f32.mxu1 %v6118_v9  ;;  %1006 = vmatpush2.msra.mxu0 %v862_v15  ;;  %v1441_v15 = vld [vmem:[%s6037_s7 + $0x5d0] sm:$0xff] }
 0x15c   : > { %1007 = vmatprep.subr.mxu0 %v860_v16  ;;  %1532 = vmatprep.subr.mxu1 %v1306_v27  ;;  %v1265_v16 = vld [vmem:[%s6037_s7 + $0x50] sm:$0xff] }
 0x15d   : > { %1008 = vmatpush2.msra.mxu0 %v859_v18  ;;  %1533 = vmatpush1.msra.mxu1 %v1305_v33  ;;  %v1440_v18 = vld [vmem:[%s6037_s7 + $0x5c8] sm:$0xff]  ;;  %v1425_v27 = vld [vmem:[%s6037_s7 + $0x550] sm:$0xff]  ;;  %v1415_v33 = vld [vmem:[%s6037_s7 + $0x500] sm:$0xff] }
 0x15e   : > { %1205 = vmatmul.mubr.f32.gmra.mxu1 %v6125_v14  ;;  %1009 = vmatprep.subr.mxu0 %v857_v20  ;;  %v1260_v20 = vld [vmem:[%s6037_s7 + $0x28] sm:$0xff] }
 0x15f   : > { %1209 = vmatprep.mubr.f32.mxu1 %v6128_v17  ;;  %1010 = vmatpush2.msra.mxu0 %v856_v23  ;;  %v1431_v23 = vld [vmem:[%s6037_s7 + $0x580] sm:$0xff] }
 0x160   : > { %1011 = vmatprep.subr.mxu0 %v854_v24  ;;  %1534 = vmatprep.subr.mxu1 %v1301_v35  ;;  %v1430_v24 = vld [vmem:[%s6037_s7 + $0x578] sm:$0xff] }
 0x161   : > { %1012 = vmatpush2.msra.mxu0 %v853_v26  ;;  %v1255_v26 = vld [vmem:[%s6037_s7] sm:$0xff]  ;;  %v1406_v35 = vld [vmem:[%s6037_s7 + $0x4b8] sm:$0xff] }
 0x162   : > { %1210 = vmatmul.mubr.f32.gmra.mxu1 %v6135_v22  ;;  %1014 = vmatmul.mubr.f32.vlgmr.msra.gmra.mxu0 %v6069_v34  ;;  %v1485_v34 = vld [vmem:[%s6037_s7 + $0x730] sm:$0xff] }
 0x163   : > { %1214 = vmatprep.mubr.f32.mxu1 %v6138_v25  ;;  %1683 = vmatprep.subr.mxu0 %v1491_v28  ;;  %v1411_v28 = vld [vmem:[%s6037_s7 + $0x4e0] sm:$0xff] }
 0x164   : > { %1019 = vmatprep.mubr.f32.mxu0 %v6072_v37  ;;  %1684 = vmatpush1.msra.mxu0 %v1490_v31  ;;  %v1300_v37 = vld [vmem:[%s6037_s7 + $0x168] sm:$0xff] }
 0x165   : > { %1685 = vmatprep.subr.mxu0 %v1486_v32  ;;  %1535 = vmatpush1.msra.mxu1 %v1300_v37  ;;  %v1416_v31 = vld [vmem:[%s6037_s7 + $0x508] sm:$0xff]  ;;  %v1410_v32 = vld [vmem:[%s6037_s7 + $0x4d8] sm:$0xff]  ;;  %v1395_v37 = vld [vmem:[%s6037_s7 + $0x460] sm:$0xff] }
 0x166   : > { %1215 = vmatmul.mubr.f32.gmra.mxu1 %v6145_v29  ;;  %1020 = vmatmul.mubr.f32.gmra.mxu0 %v6077_v40  ;;  %v1480_v40 = vld [vmem:[%s6037_s7 + $0x708] sm:$0xff] }
 0x167   : > { %1219 = vmatprep.mubr.f32.mxu1 %v6148_v30  ;;  %1025 = vmatprep.mubr.f32.mxu0 %v6080_v43  ;;  %v1295_v43 = vld [vmem:[%s6037_s7 + $0x140] sm:$0xff] }
 0x168   : > { %1686 = vmatpush1.msra.mxu0 %v1485_v34  ;;  %1536 = vmatprep.subr.mxu1 %v1296_v41  ;;  %v1400_v34 = vld [vmem:[%s6037_s7 + $0x488] sm:$0xff]  ;;  %v1391_v41 = vld [vmem:[%s6037_s7 + $0x440] sm:$0xff] }
 0x169   : > { %1687 = vmatprep.subr.mxu0 %v1481_v39  ;;  %1537 = vmatpush1.msra.mxu1 %v1295_v43  ;;  %v1396_v39 = vld [vmem:[%s6037_s7 + $0x468] sm:$0xff] }
 0x16a   : > { %1220 = vmatmul.mubr.f32.gmra.mxu1 %v6159_v36  ;;  %1026 = vmatmul.mubr.f32.gmra.mxu0 %v6085_v46  ;;  %v1475_v46 = vld [vmem:[%s6037_s7 + $0x6e0] sm:$0xff]  ;;  %v1380_v43 = vld [vmem:[%s6037_s7 + $0x3e8] sm:$0xff] }
 0x16b   : > { %1224 = vmatprep.mubr.f32.mxu1 %v6162_v38  ;;  %1031 = vmatprep.mubr.f32.mxu0 %v6088_v49  ;;  %v1290_v49 = vld [vmem:[%s6037_s7 + $0x118] sm:$0xff] }
 0x16c   : > { %1688 = vmatpush1.msra.mxu0 %v1480_v40  ;;  %1538 = vmatprep.subr.mxu1 %v1291_v47  ;;  %v1385_v40 = vld [vmem:[%s6037_s7 + $0x410] sm:$0xff]  ;;  %v1376_v47 = vld [vmem:[%s6037_s7 + $0x3c8] sm:$0xff] }
 0x16d   : > { %1689 = vmatprep.subr.mxu0 %v1476_v45  ;;  %1539 = vmatpush1.msra.mxu1 %v1290_v49  ;;  %v1381_v45 = vld [vmem:[%s6037_s7 + $0x3f0] sm:$0xff]  ;;  %v8538_v49 = vmov 0.0  }
 0x16e   : > { %1225 = vmatmul.mubr.f32.gmra.mxu1 %v6173_v42  ;;  %1032 = vmatmul.mubr.f32.gmra.mxu0 %v6094_v53  ;;  %v1470_v53 = vld [vmem:[%s6037_s7 + $0x6b8] sm:$0xff] }
 0x16f   : > { %1229 = vmatprep.mubr.f32.mxu1 %v6176_v44  ;;  %1037 = vmatprep.mubr.f32.mxu0 %v6098_v57  ;;  %v1285_v57 = vld [vmem:[%s6037_s7 + $0xf0] sm:$0xff] }
 0x170   : > { %1690 = vmatpush1.msra.mxu0 %v1475_v46  ;;  %1540 = vmatprep.subr.mxu1 %v1286_v52  ;;  %v1370_v46 = vld [vmem:[%s6037_s7 + $0x398] sm:$0xff]  ;;  %v1365_v52 = vld [vmem:[%s6037_s7 + $0x370] sm:$0xff] }
 0x171   : > { %1691 = vmatprep.subr.mxu0 %v1471_v51  ;;  %1541 = vmatpush1.msra.mxu1 %v1285_v57  ;;  %v1366_v51 = vld [vmem:[%s6037_s7 + $0x378] sm:$0xff]  ;;  %v1351_v57 = vld [vmem:[%s6037_s7 + $0x300] sm:$0xff] }
 0x172   : > { %1230 = vmatmul.mubr.f32.gmra.mxu1 %v6187_v48  ;;  %1038 = vmatmul.mubr.f32.gmra.mxu0 %v6105_v62  ;;  %v1461_v62 = vld [vmem:[%s6037_s7 + $0x670] sm:$0xff] }
 0x173   : > { %1234 = vmatprep.mubr.f32.mxu1 %v6190_v50  ;;  %1043 = vmatprep.mubr.f32.mxu0 %v6108_v1  ;;  %v6229_v1 = vld [vmem:[%s6023_s27 + $0xe0] sm:$0xff] }
 0x174   : > { %1692 = vmatpush1.msra.mxu0 %v1470_v53  ;;  %1542 = vmatprep.subr.mxu1 %v1281_v58  ;;  %v1356_v53 = vld [vmem:[%s6037_s7 + $0x328] sm:$0xff]  ;;  %v1350_v58 = vld [vmem:[%s6037_s7 + $0x2f8] sm:$0xff] }
 0x175   : > { %1693 = vmatprep.subr.mxu0 %v1466_v56  ;;  %1543 = vmatpush1.msra.mxu1 %v1280_v63  ;;  %v1355_v56 = vld [vmem:[%s6037_s7 + $0x320] sm:$0xff]  ;;  %v1493_v63 = vld [vmem:[%s6037_s7 + $0x770] sm:$0xff] }
 0x176   : > { %1235 = vmatmul.mubr.f32.gmra.mxu1 %v6201_v54  ;;  %1044 = vmatmul.mubr.f32.gmra.mxu0 %v6115_v6  ;;  %v1271_v6 = vld [vmem:[%s6037_s7 + $0x80] sm:$0xff] }
 0x177   : > { %1239 = vmatprep.mubr.f32.mxu1 %v6204_v55  ;;  %1049 = vmatprep.mubr.f32.mxu0 %v6118_v9  ;;  %v1270_v9 = vld [vmem:[%s6037_s7 + $0x78] sm:$0xff] }
 0x178   : > { %1694 = vmatpush1.msra.mxu0 %v1465_v61  ;;  %1544 = vmatprep.subr.mxu1 %v1276_v0  ;;  %v1341_v61 = vld [vmem:[%s6037_s7 + $0x2b0] sm:$0xff]  ;;  %v1336_v0 = vld [vmem:[%s6037_s7 + $0x288] sm:$0xff] }
 0x179   : > { %1695 = vmatprep.subr.mxu0 %v1461_v62  ;;  %1545 = vmatpush1.msra.mxu1 %v1275_v5  ;;  %v1340_v62 = vld [vmem:[%s6037_s7 + $0x2a8] sm:$0xff] }
 0x17a   : > { %1240 = vmatmul.mubr.f32.gmra.mxu1 %v6215_v59  ;;  %1050 = vmatmul.mubr.f32.gmra.mxu0 %v6125_v14  ;;  %v1445_v14 = vld [vmem:[%s6037_s7 + $0x5f0] sm:$0xff] }
 0x17b   : > { %1244 = vmatprep.mubr.f32.mxu1 %v6218_v60  ;;  %1055 = vmatprep.mubr.f32.mxu0 %v6128_v17  ;;  %v1261_v17 = vld [vmem:[%s6037_s7 + $0x30] sm:$0xff] }
 0x17c   : > { %1696 = vmatpush1.msra.mxu0 %v1460_v3  ;;  %1546 = vmatprep.subr.mxu1 %v1271_v6 }
 0x17d   : > { %1697 = vmatprep.subr.mxu0 %v1456_v4  ;;  %1547 = vmatpush1.msra.mxu1 %v1270_v9  ;;  %v903_v4 = vld [vmem:[%s6030_s13 + $0x10] sm:$0xff]  ;;  %v1492_v9 = vld [vmem:[%s6037_s7 + $0x768] sm:$0xff] }
 0x17e   : > { %1245 = vmatmul.mubr.f32.gmra.mxu1 %v6229_v1  ;;  %1056 = vmatmul.mubr.f32.gmra.mxu0 %v6135_v22  ;;  %v1256_v22 = vld [vmem:[%s6037_s7 + $0x8] sm:$0xff] }
 0x17f   : > { %1249 = vmatprep.mubr.f32.mxu1 %v6232_v2  ;;  %1061 = vmatprep.mubr.f32.mxu0 %v6138_v25  ;;  %v1426_v25 = vld [vmem:[%s6037_s7 + $0x558] sm:$0xff] }
 0x180   : > { %1698 = vmatpush1.msra.mxu0 %v1455_v8  ;;  %1548 = vmatprep.subr.mxu1 %v1266_v11 }
 0x181   : > { %1699 = vmatprep.subr.mxu0 %v1451_v10  ;;  %1549 = vmatpush1.msra.mxu1 %v1265_v16  ;;  %v906_v10 = vld [vmem:[%s6030_s13 + $0x28] sm:$0xff]  ;;  %v1483_v16 = vld [vmem:[%s6037_s7 + $0x720] sm:$0xff] }
 0x182   : > { %1250 = vmatmul.mubr.f32.gmra.mxu1 %v6243_v7  ;;  %1062 = vmatmul.mubr.f32.gmra.mxu0 %v6145_v29  ;;  %v1421_v29 = vld [vmem:[%s6037_s7 + $0x530] sm:$0xff] }
 0x183   : > { %1067 = vmatprep.mubr.f32.mxu0 %v6148_v30  ;;  %1700 = vmatpush1.msra.mxu0 %v1450_v12  ;;  %v1420_v30 = vld [vmem:[%s6037_s7 + $0x528] sm:$0xff] }
 0x184   : > { %1701 = vmatprep.subr.mxu0 %v1446_v13  ;;  %1550 = vmatprep.subr.mxu1 %v1261_v17  ;;  %v1488_v12 = vld [vmem:[%s6037_s7 + $0x748] sm:$0xff] }
 0x185   : > { %1702 = vmatpush1.msra.mxu0 %v1445_v14  ;;  %1551 = vmatpush1.msra.mxu1 %v1260_v20  ;;  %v1487_v14 = vld [vmem:[%s6037_s7 + $0x740] sm:$0xff] }
 0x186   : > { %1068 = vmatmul.mubr.f32.gmra.mxu0 %v6159_v36  ;;  %1703 = vmatprep.subr.mxu0 %v1441_v15  ;;  %v1405_v36 = vld [vmem:[%s6037_s7 + $0x4b0] sm:$0xff] }
 0x187   : > { %1073 = vmatprep.mubr.f32.mxu0 %v6162_v38  ;;  %1704 = vmatpush1.msra.mxu0 %v1440_v18  ;;  %v1401_v38 = vld [vmem:[%s6037_s7 + $0x490] sm:$0xff]  ;;  %v1482_v18 = vld [vmem:[%s6037_s7 + $0x718] sm:$0xff] }
 0x188   : > { %1705 = vmatprep.subr.mxu0 %v1436_v19  ;;  %1552 = vmatprep.subr.mxu1 %v1256_v22  ;;  %v909_v19 = vld [vmem:[%s6030_s13 + $0x40] sm:$0xff] }
 0x189   : > { %1706 = vmatpush1.msra.mxu0 %v1435_v21  ;;  %1553 = vmatpush1.msra.mxu1 %v1255_v26  ;;  %v1478_v21 = vld [vmem:[%s6037_s7 + $0x6f8] sm:$0xff] }
 0x18a   : > { %1074 = vmatmul.mubr.f32.gmra.mxu0 %v6173_v42  ;;  %1707 = vmatprep.subr.mxu0 %v1431_v23  ;;  %v1390_v42 = vld [vmem:[%s6037_s7 + $0x438] sm:$0xff]  ;;  %v1477_v23 = vld [vmem:[%s6037_s7 + $0x6f0] sm:$0xff] }
 0x18b   : > { %1079 = vmatprep.mubr.f32.mxu0 %v6176_v44  ;;  %1708 = vmatpush1.msra.mxu0 %v1430_v24  ;;  %v1386_v44 = vld [vmem:[%s6037_s7 + $0x418] sm:$0xff] }
 0x18c   : > { %1709 = vmatprep.subr.mxu0 %v1426_v25  ;;  %1554 = vmatprep.subr.mxu1 %v1411_v28  ;;  %v1473_v25 = vld [vmem:[%s6037_s7 + $0x6d0] sm:$0xff]  ;;  %v912_v28 = vld [vmem:[%s6030_s13 + $0x58] sm:$0xff] }
 0x18d   : > { %1710 = vmatpush1.msra.mxu0 %v1425_v27  ;;  %1555 = vmatpush2.msra.mxu1 %v1410_v32  ;;  %v1472_v27 = vld [vmem:[%s6037_s7 + $0x6c8] sm:$0xff]  ;;  %v1467_v32 = vld [vmem:[%s6037_s7 + $0x6a0] sm:$0xff] }
 0x18e   : > { %1080 = vmatmul.mubr.f32.gmra.mxu0 %v6187_v48  ;;  %1711 = vmatprep.subr.mxu0 %v1421_v29  ;;  %v1375_v48 = vld [vmem:[%s6037_s7 + $0x3c0] sm:$0xff] }
 0x18f   : > { %1085 = vmatprep.mubr.f32.mxu0 %v6190_v50  ;;  %1712 = vmatpush1.msra.mxu0 %v1420_v30  ;;  %v1371_v50 = vld [vmem:[%s6037_s7 + $0x3a0] sm:$0xff]  ;;  %v1468_v30 = vld [vmem:[%s6037_s7 + $0x6a8] sm:$0xff] }
 0x190   : > { %1713 = vmatprep.subr.mxu0 %v1416_v31  ;;  %1556 = vmatprep.subr.mxu1 %v1406_v35  ;;  %v1463_v35 = vld [vmem:[%s6037_s7 + $0x680] sm:$0xff] }
 0x191   : > { %1714 = vmatpush1.msra.mxu0 %v1415_v33  ;;  %1557 = vmatpush2.msra.mxu1 %v1405_v36 }
 0x192   : > { %1086 = vmatmul.mubr.f32.gmra.mxu0 %v6201_v54  ;;  %1558 = vmatprep.subr.mxu1 %v1401_v38  ;;  %v1361_v54 = vld [vmem:[%s6037_s7 + $0x350] sm:$0xff]  ;;  %v1462_v38 = vld [vmem:[%s6037_s7 + $0x678] sm:$0xff] }
 0x193   : > { %1091 = vmatprep.mubr.f32.mxu0 %v6204_v55  ;;  %1559 = vmatpush2.msra.mxu1 %v1400_v34  ;;  %v1360_v55 = vld [vmem:[%s6037_s7 + $0x348] sm:$0xff]  ;;  %v915_v34 = vld [vmem:[%s6030_s13 + $0x70] sm:$0xff] }
 0x194   : > { %1560 = vmatprep.subr.mxu1 %v1396_v39  ;;  %2005 = vmatprep.subr.mxu0 %v1493_v63 }
 0x195   : > { %1561 = vmatpush2.msra.mxu1 %v1395_v37  ;;  %v1458_v37 = vld [vmem:[%s6037_s7 + $0x658] sm:$0xff] }
 0x196   : > { %1092 = vmatmul.mubr.f32.gmra.mxu0 %v6215_v59  ;;  %1562 = vmatprep.subr.mxu1 %v1391_v41  ;;  %v1346_v59 = vld [vmem:[%s6037_s7 + $0x2d8] sm:$0xff] }
 0x197   : > { %1097 = vmatprep.mubr.f32.mxu0 %v6218_v60  ;;  %1563 = vmatpush2.msra.mxu1 %v1390_v42  ;;  %v1345_v60 = vld [vmem:[%s6037_s7 + $0x2d0] sm:$0xff] }
 0x198   : > { %1564 = vmatprep.subr.mxu1 %v1386_v44  ;;  %v1457_v42 = vld [vmem:[%s6037_s7 + $0x650] sm:$0xff] }
 0x199   : > { %1565 = vmatpush2.msra.mxu1 %v1385_v40  ;;  %v1453_v40 = vld [vmem:[%s6037_s7 + $0x630] sm:$0xff] }
 0x19a   : > { %1098 = vmatmul.mubr.f32.gmra.mxu0 %v6229_v1  ;;  %1566 = vmatprep.subr.mxu1 %v1381_v45  ;;  %v1335_v1 = vld [vmem:[%s6037_s7 + $0x280] sm:$0xff] }
 0x19b   : > { %1103 = vmatprep.mubr.f32.mxu0 %v6232_v2  ;;  %1567 = vmatpush2.msra.mxu1 %v1380_v43  ;;  %v1333_v2 = vld [vmem:[%s6037_s7 + $0x270] sm:$0xff]  ;;  %v1452_v43 = vld [vmem:[%s6037_s7 + $0x628] sm:$0xff] }
 0x19c   : > { %1568 = vmatprep.subr.mxu1 %v1376_v47  ;;  %v918_v47 = vld [vmem:[%s6030_s13 + $0x88] sm:$0xff] }
 0x19d   : > { %1569 = vmatpush2.msra.mxu1 %v1375_v48 }
 0x19e   : > { %1104 = vmatmul.mubr.f32.gmra.mxu0 %v6243_v7  ;;  %1570 = vmatprep.subr.mxu1 %v1371_v50  ;;  %v1448_v50 = vld [vmem:[%s6037_s7 + $0x608] sm:$0xff] }
 0x19f   : > { %1747 = vmatprep.mubr.f32.mxu0 %v8538_v49  ;;  %1571 = vmatpush2.msra.mxu1 %v1370_v46 }
 0x1a0   : > { %1572 = vmatprep.subr.mxu1 %v1366_v51  ;;  %v1447_v51 = vld [vmem:[%s6037_s7 + $0x600] sm:$0xff] }
 0x1a1   : > { %1573 = vmatpush2.msra.mxu1 %v1365_v52 }
 0x1a2   : > { %1574 = vmatprep.subr.mxu1 %v1361_v54  ;;  %v1443_v54 = vld [vmem:[%s6037_s7 + $0x5e0] sm:$0xff] }
 0x1a3   : > { %1575 = vmatpush2.msra.mxu1 %v1360_v55 }
 0x1a4   : > { %1576 = vmatprep.subr.mxu1 %v1356_v53  ;;  %v1442_v53 = vld [vmem:[%s6037_s7 + $0x5d8] sm:$0xff] }
 0x1a5   : > { %1577 = vmatpush2.msra.mxu1 %v1355_v56  ;;  %v921_v56 = vld [vmem:[%s6030_s13 + $0xa0] sm:$0xff] }
 0x1a6   : > { %1578 = vmatprep.subr.mxu1 %v1351_v57 }
 0x1a7   : > { %1579 = vmatpush2.msra.mxu1 %v1350_v58  ;;  %v1438_v58 = vld [vmem:[%s6037_s7 + $0x5b8] sm:$0xff] }
 0x1a8   : > { %1580 = vmatprep.subr.mxu1 %v1346_v59 }
 0x1a9   : > { %1581 = vmatpush2.msra.mxu1 %v1345_v60  ;;  %v1437_v60 = vld [vmem:[%s6037_s7 + $0x5b0] sm:$0xff] }
 0x1aa   : > { %1582 = vmatprep.subr.mxu1 %v1341_v61 }
 0x1ab   : > { %1583 = vmatpush2.msra.mxu1 %v1340_v62  ;;  %v1433_v62 = vld [vmem:[%s6037_s7 + $0x590] sm:$0xff] }
 0x1ac   : > { %1584 = vmatprep.subr.mxu1 %v1336_v0  ;;  %v1432_v0 = vld [vmem:[%s6037_s7 + $0x588] sm:$0xff] }
 0x1ad   : > { %1585 = vmatpush2.msra.mxu1 %v1335_v1  ;;  %v924_v1 = vld [vmem:[%s6030_s13 + $0xb8] sm:$0xff] }
 0x1ae   : > { %1844 = vmatprep.subr.mxu1 %v1333_v2 }
 0x206   : > { %v4532_v3 = vpop.f32.mrf.mxu1 }
 0x208   : > { %v4533_v5 = vpop.f32.mrf.mxu1 }
 0x209   : > { %v4534_v6 = vadd.f32 %v4533_v5, %v4532_v3  ;;  %v1428_v3 = vld [vmem:[%s6037_s7 + $0x568] sm:$0xff] }
 0x20a   : > { %v4535_v7 = vpop.f32.mrf.mxu1 }
 0x20b   : > { %v6323_v8 = vadd.f32 %v4534_v6, %v903_v4  ;;  %v902_v6 = vld [vmem:[%s6030_s13 + $0x8] sm:$0xff] }
 0x20c   : > { %v4536_v11 = vpop.f32.mrf.mxu1 }
 0x20d   : > { %v4537_v13 = vadd.f32 %v4536_v11, %v4535_v7  ;;  %1748 = vmatmul.mubr.f32.vlgmr.msra.gmra.mxu0 %v6323_v8  ;;  %v1427_v7 = vld [vmem:[%s6037_s7 + $0x560] sm:$0xff] }
 0x20e   : > { %v4538_v15 = vpop.f32.mrf.mxu1  ;;  %1753 = vmatprep.mubr.f32.mxu0 %v8538_v49  ;;  %2006 = vmatpush1.msra.mxu0 %v1492_v9  ;;  %v901_v9 = vld [vmem:[%s6030_s13] sm:$0xff] }
 0x20f   : > { %v6332_v17 = vadd.f32 %v4537_v13, %v906_v10  ;;  %2007 = vmatprep.subr.mxu0 %v1488_v12  ;;  %v1423_v11 = vld [vmem:[%s6037_s7 + $0x540] sm:$0xff] }
 0x210   : > { %v4539_v20 = vpop.f32.mrf.mxu1  ;;  %2008 = vmatpush1.msra.mxu0 %v1487_v14 }
 0x211   : > { %v4540_v22 = vadd.f32 %v4539_v20, %v4538_v15  ;;  %1754 = vmatmul.mubr.f32.gmra.mxu0 %v6332_v17  ;;  %2009 = vmatprep.subr.mxu0 %v1483_v16  ;;  %v927_v15 = vld [vmem:[%s6030_s13 + $0xd0] sm:$0xff] }
 0x212   : > { %v4541_v24 = vpop.f32.mrf.mxu1  ;;  %1759 = vmatprep.mubr.f32.mxu0 %v8538_v49  ;;  %2010 = vmatpush1.msra.mxu0 %v1482_v18  ;;  %v1422_v18 = vld [vmem:[%s6037_s7 + $0x538] sm:$0xff] }
 0x213   : > { %v6341_v26 = vadd.f32 %v4540_v22, %v909_v19  ;;  %2011 = vmatprep.subr.mxu0 %v1478_v21  ;;  %v905_v22 = vld [vmem:[%s6030_s13 + $0x20] sm:$0xff] }
 0x214   : > { %v4542_v29 = vpop.f32.mrf.mxu1  ;;  %2012 = vmatpush1.msra.mxu0 %v1477_v23  ;;  %v1332_v23 = vld [vmem:[%s6037_s7 + $0x268] sm:$0xff] }
 0x215   : > { %v4543_v31 = vadd.f32 %v4542_v29, %v4541_v24  ;;  %1760 = vmatmul.mubr.f32.gmra.mxu0 %v6341_v26  ;;  %2013 = vmatprep.subr.mxu0 %v1473_v25  ;;  %v1418_v24 = vld [vmem:[%s6037_s7 + $0x518] sm:$0xff] }
 0x216   : > { %v4544_v33 = vpop.f32.mrf.mxu1  ;;  %1765 = vmatprep.mubr.f32.mxu0 %v8538_v49  ;;  %2014 = vmatpush1.msra.mxu0 %v1472_v27  ;;  %v904_v25 = vld [vmem:[%s6030_s13 + $0x18] sm:$0xff] }
 0x217   : > { %v6350_v36 = vadd.f32 %v4543_v31, %v912_v28  ;;  %2015 = vmatprep.subr.mxu0 %v1468_v30  ;;  %v1328_v28 = vld [vmem:[%s6037_s7 + $0x248] sm:$0xff]  ;;  %v1327_v31 = vld [vmem:[%s6037_s7 + $0x240] sm:$0xff] }
 0x218   : > { %v4545_v39 = vpop.f32.mrf.mxu1  ;;  %2016 = vmatpush1.msra.mxu0 %v1467_v32 }
 0x219   : > { %v4546_v41 = vadd.f32 %v4545_v39, %v4544_v33  ;;  %1766 = vmatmul.mubr.f32.gmra.mxu0 %v6350_v36  ;;  %2017 = vmatprep.subr.mxu0 %v1463_v35  ;;  %v930_v33 = vld [vmem:[%s6030_s13 + $0xe8] sm:$0xff] }
 0x21a   : > { %v4547_v44 = vpop.f32.mrf.mxu1  ;;  %1771 = vmatprep.mubr.f32.mxu0 %v8538_v49  ;;  %2018 = vmatpush1.msra.mxu0 %v1462_v38  ;;  %v1323_v38 = vld [vmem:[%s6037_s7 + $0x220] sm:$0xff] }
 0x21b   : > { %v6359_v45 = vadd.f32 %v4546_v41, %v915_v34  ;;  %2019 = vmatprep.subr.mxu0 %v1458_v37  ;;  %v908_v41 = vld [vmem:[%s6030_s13 + $0x38] sm:$0xff] }
 0x21c   : > { %v4548_v48 = vpop.f32.mrf.mxu1  ;;  %2020 = vmatpush1.msra.mxu0 %v1457_v42  ;;  %v1322_v42 = vld [vmem:[%s6037_s7 + $0x218] sm:$0xff] }
 0x21d   : > { %v4549_v46 = vadd.f32 %v4548_v48, %v4547_v44  ;;  %1772 = vmatmul.mubr.f32.gmra.mxu0 %v6359_v45  ;;  %2021 = vmatprep.subr.mxu0 %v1453_v40  ;;  %v907_v44 = vld [vmem:[%s6030_s13 + $0x30] sm:$0xff] }
 0x21e   : > { %v4550_v52 = vpop.f32.mrf.mxu1  ;;  %1777 = vmatprep.mubr.f32.mxu0 %v8538_v49  ;;  %2022 = vmatpush1.msra.mxu0 %v1452_v43  ;;  %v1318_v43 = vld [vmem:[%s6037_s7 + $0x1f8] sm:$0xff] }
 0x21f   : > { %v6368_v55 = vadd.f32 %v4549_v46, %v918_v47  ;;  %2023 = vmatprep.subr.mxu0 %v1448_v50  ;;  %v1317_v50 = vld [vmem:[%s6037_s7 + $0x1f0] sm:$0xff] }
 0x220   : > { %v4551_v57 = vpop.f32.mrf.mxu1  ;;  %2024 = vmatpush1.msra.mxu0 %v1447_v51  ;;  %v933_v51 = vld [vmem:[%s6030_s13 + $0x100] sm:$0xff] }
 0x221   : > { %v4552_v59 = vadd.f32 %v4551_v57, %v4550_v52  ;;  %1778 = vmatmul.mubr.f32.gmra.mxu0 %v6368_v55  ;;  %2025 = vmatprep.subr.mxu0 %v1443_v54  ;;  %v1313_v54 = vld [vmem:[%s6037_s7 + $0x1d0] sm:$0xff] }
 0x222   : > { %v4553_v61 = vpop.f32.mrf.mxu1  ;;  %1783 = vmatprep.mubr.f32.mxu0 %v8538_v49  ;;  %2026 = vmatpush1.msra.mxu0 %v1442_v53  ;;  %v1015_v5 = vpop.f32.mrf.mxu0 }
 0x223   : > { %v6377_v63 = vadd.f32 %v4552_v59, %v921_v56  ;;  %2027 = vmatprep.subr.mxu0 %v1438_v58  ;;  %v6394_v19 = vadd.f32 %v1015_v5, %v901_v9  ;;  %v911_v58 = vld [vmem:[%s6030_s13 + $0x50] sm:$0xff]  ;;  %v1312_v59 = vld [vmem:[%s6037_s7 + $0x1c8] sm:$0xff] }
 0x224   : > { %v4554_v2 = vpop.f32.mrf.mxu1  ;;  %2028 = vmatpush1.msra.mxu0 %v1437_v60  ;;  %v1017_v13 = vpop.f32.mrf.mxu0  ;;  %v910_v60 = vld [vmem:[%s6030_s13 + $0x48] sm:$0xff] }
 0x225   : > { %v4555_v4 = vadd.f32 %v4554_v2, %v4553_v61  ;;  %1784 = vmatmul.mubr.f32.gmra.mxu0 %v6377_v63  ;;  %2029 = vmatprep.subr.mxu0 %v1433_v62  ;;  %v6390_v14 = vadd.f32 %v1017_v13, %v902_v6  ;;  %v1308_v62 = vld [vmem:[%s6037_s7 + $0x1a8] sm:$0xff]  ;;  %v1307_v2 = vld [vmem:[%s6037_s7 + $0x1a0] sm:$0xff]  ;;  %v1302_v13 = vld [vmem:[%s6037_s7 + $0x178] sm:$0xff] }
 0x226   : > { %v4556_v10 = vpop.f32.mrf.mxu1  ;;  %1789 = vmatprep.mubr.f32.mxu0 %v8538_v49  ;;  %2030 = vmatpush1.msra.mxu0 %v1432_v0  ;;  %v1021_v21 = vpop.f32.mrf.mxu0  ;;  %v1303_v6 = vld [vmem:[%s6037_s7 + $0x180] sm:$0xff] }
 0x227   : > { %v6388_v12 = vadd.f32 %v4555_v4, %v924_v1  ;;  %2031 = vmatprep.subr.mxu0 %v1428_v3  ;;  %1586 = vmatprep.mubr.f32.mxu1 %v6390_v14  ;;  %v6412_v34 = vadd.f32 %v1021_v21, %v904_v25  ;;  %v936_v4 = vld [vmem:[%s6030_s13 + $0x118] sm:$0xff] }
 0x228   : > { %v4557_v16 = vpop.f32.mrf.mxu1  ;;  %2032 = vmatpush1.msra.mxu0 %v1427_v7  ;;  %v1023_v30 = vpop.f32.mrf.mxu0  ;;  %1587 = vmatmul.mubr.f32.vlgmr.msra.gmra.mxu1 %v6394_v19 }
 0x229   : > { %v4558_v20 = vadd.f32 %v4557_v16, %v4556_v10  ;;  %1790 = vmatmul.mubr.f32.gmra.mxu0 %v6388_v12  ;;  %2033 = vmatprep.subr.mxu0 %v1423_v11  ;;  %v6408_v32 = vadd.f32 %v1023_v30, %v905_v22  ;;  %v914_v11 = vld [vmem:[%s6030_s13 + $0x68] sm:$0xff]  ;;  %v1297_v22 = vld [vmem:[%s6037_s7 + $0x150] sm:$0xff] }
 0x22a   : > { %v4559_v27 = vpop.f32.mrf.mxu1  ;;  %1795 = vmatprep.mubr.f32.mxu0 %v8538_v49  ;;  %2034 = vmatpush1.msra.mxu0 %v1422_v18  ;;  %v1027_v37 = vpop.f32.mrf.mxu0  ;;  %v1298_v18 = vld [vmem:[%s6037_s7 + $0x158] sm:$0xff] }
 0x22b   : > { %v6404_v29 = vadd.f32 %v4558_v20, %v927_v15  ;;  %1845 = vmatpush1.msra.mxu1 %v1332_v23  ;;  %2035 = vmatprep.subr.mxu0 %v1418_v24  ;;  %v6429_v53 = vadd.f32 %v1027_v37, %v907_v44  ;;  %v913_v15 = vld [vmem:[%s6030_s13 + $0x60] sm:$0xff]  ;;  %v939_v24 = vld [vmem:[%s6030_s13 + $0x130] sm:$0xff]  ;;  %v1288_v37 = vld [vmem:[%s6037_s7 + $0x108] sm:$0xff] }
 0x22c   : > { %v4560_v35 = vpop.f32.mrf.mxu1  ;;  %1846 = vmatprep.subr.mxu1 %v1328_v28  ;;  %1592 = vmatprep.mubr.f32.mxu1 %v6408_v32  ;;  %v1029_v48 = vpop.f32.mrf.mxu0  ;;  %v1287_v44 = vld [vmem:[%s6037_s7 + $0x100] sm:$0xff] }
 0x22d   : > { %v4561_v39 = vadd.f32 %v4560_v35, %v4559_v27  ;;  %1796 = vmatmul.mubr.f32.gmra.mxu0 %v6404_v29  ;;  %1847 = vmatpush1.msra.mxu1 %v1327_v31  ;;  %v6424_v46 = vadd.f32 %v1029_v48, %v908_v41  ;;  %v1293_v27 = vld [vmem:[%s6037_s7 + $0x130] sm:$0xff]  ;;  %v1292_v35 = vld [vmem:[%s6037_s7 + $0x128] sm:$0xff] }
 0x22e   : > { %v4562_v40 = vpop.f32.mrf.mxu1  ;;  %1848 = vmatprep.subr.mxu1 %v1323_v38  ;;  %1593 = vmatmul.mubr.f32.gmra.mxu1 %v6412_v34  ;;  %v1033_v57 = vpop.f32.mrf.mxu0  ;;  %v916_v38 = vld [vmem:[%s6030_s13 + $0x78] sm:$0xff] }
 0x22f   : > { %v6420_v47 = vadd.f32 %v4561_v39, %v930_v33  ;;  %1801 = vmatprep.mubr.f32.mxu0 %v8538_v49  ;;  %1849 = vmatpush1.msra.mxu1 %v1322_v42  ;;  %v6446_v7 = vadd.f32 %v1033_v57, %v910_v60  ;;  %v917_v33 = vld [vmem:[%s6030_s13 + $0x80] sm:$0xff]  ;;  %v1282_v57 = vld [vmem:[%s6037_s7 + $0xd8] sm:$0xff] }
 0x230   : > { %v4563_v52 = vpop.f32.mrf.mxu1  ;;  %1850 = vmatprep.subr.mxu1 %v1318_v43  ;;  %1598 = vmatprep.mubr.f32.mxu1 %v6424_v46  ;;  %v1035_v1 = vpop.f32.mrf.mxu0  ;;  %v942_v43 = vld [vmem:[%s6030_s13 + $0x148] sm:$0xff]  ;;  %v1278_v60 = vld [vmem:[%s6037_s7 + $0xb8] sm:$0xff] }
 0x231   : > { %v4564_v56 = vadd.f32 %v4563_v52, %v4562_v40  ;;  %1802 = vmatmul.mubr.f32.gmra.mxu0 %v6420_v47  ;;  %1851 = vmatpush1.msra.mxu1 %v1317_v50  ;;  %v6441_v3 = vadd.f32 %v1035_v1, %v911_v58  ;;  %v1283_v50 = vld [vmem:[%s6037_s7 + $0xe0] sm:$0xff]  ;;  %v919_v58 = vld [vmem:[%s6030_s13 + $0x90] sm:$0xff] }
 0x232   : > { %v4565_v61 = vpop.f32.mrf.mxu1  ;;  %1852 = vmatprep.subr.mxu1 %v1313_v54  ;;  %1599 = vmatmul.mubr.f32.gmra.mxu1 %v6429_v53  ;;  %v1039_v10 = vpop.f32.mrf.mxu0  ;;  %v1277_v1 = vld [vmem:[%s6037_s7 + $0xb0] sm:$0xff] }
 0x233   : > { %v6437_v0 = vadd.f32 %v4564_v56, %v933_v51  ;;  %1807 = vmatprep.mubr.f32.mxu0 %v8538_v49  ;;  %1853 = vmatpush1.msra.mxu1 %v1312_v59  ;;  %v6463_v28 = vadd.f32 %v1039_v10, %v913_v15  ;;  %v920_v56 = vld [vmem:[%s6030_s13 + $0x98] sm:$0xff]  ;;  %v1272_v15 = vld [vmem:[%s6037_s7 + $0x88] sm:$0xff] }
 0x234   : > { %v4566_v5 = vpop.f32.mrf.mxu1  ;;  %1854 = vmatprep.subr.mxu1 %v1308_v62  ;;  %1604 = vmatprep.mubr.f32.mxu1 %v6441_v3  ;;  %v1041_v21 = vpop.f32.mrf.mxu0 }
 0x235   : > { %v4567_v9 = vadd.f32 %v4566_v5, %v4565_v61  ;;  %1808 = vmatmul.mubr.f32.gmra.mxu0 %v6437_v0  ;;  %1855 = vmatpush1.msra.mxu1 %v1307_v2  ;;  %v6458_v23 = vadd.f32 %v1041_v21, %v914_v11  ;;  %v1268_v21 = vld [vmem:[%s6037_s7 + $0x68] sm:$0xff] }
 0x236   : > { %v4568_v16 = vpop.f32.mrf.mxu1  ;;  %1856 = vmatprep.subr.mxu1 %v1303_v6  ;;  %1605 = vmatmul.mubr.f32.gmra.mxu1 %v6446_v7  ;;  %v1045_v31 = vpop.f32.mrf.mxu0  ;;  %v1273_v6 = vld [vmem:[%s6037_s7 + $0x90] sm:$0xff] }
 0x237   : > { %v6454_v20 = vadd.f32 %v4567_v9, %v936_v4  ;;  %1813 = vmatprep.mubr.f32.mxu0 %v8538_v49  ;;  %1857 = vmatpush1.msra.mxu1 %v1302_v13  ;;  %v6480_v51 = vadd.f32 %v1045_v31, %v916_v38  ;;  %v945_v4 = vld [vmem:[%s6030_s13 + $0x160] sm:$0xff]  ;;  %v923_v13 = vld [vmem:[%s6030_s13 + $0xb0] sm:$0xff] }
 0x238   : > { %v4569_v25 = vpop.f32.mrf.mxu1  ;;  %1858 = vmatprep.subr.mxu1 %v1298_v18  ;;  %1610 = vmatprep.mubr.f32.mxu1 %v6458_v23  ;;  %v1047_v42 = vpop.f32.mrf.mxu0 }
 0x239   : > { %v4570_v30 = vadd.f32 %v4569_v25, %v4568_v16  ;;  %1814 = vmatmul.mubr.f32.gmra.mxu0 %v6454_v20  ;;  %1859 = vmatpush1.msra.mxu1 %v1297_v22  ;;  %v6475_v40 = vadd.f32 %v1047_v42, %v917_v33  ;;  %v922_v16 = vld [vmem:[%s6030_s13 + $0xa8] sm:$0xff]  ;;  %v1267_v25 = vld [vmem:[%s6037_s7 + $0x60] sm:$0xff]  ;;  %v1262_v42 = vld [vmem:[%s6037_s7 + $0x38] sm:$0xff] }
 0x23a   : > { %v4571_v39 = vpop.f32.mrf.mxu1  ;;  %1860 = vmatprep.subr.mxu1 %v1293_v27  ;;  %1611 = vmatmul.mubr.f32.gmra.mxu1 %v6463_v28  ;;  %v1051_v54 = vpop.f32.mrf.mxu0  ;;  %v1263_v33 = vld [vmem:[%s6037_s7 + $0x40] sm:$0xff] }
 0x23b   : > { %v6471_v41 = vadd.f32 %v4570_v30, %v939_v24  ;;  %1819 = vmatprep.mubr.f32.mxu0 %v8538_v49  ;;  %1861 = vmatpush1.msra.mxu1 %v1292_v35  ;;  %v6497_v9 = vadd.f32 %v1051_v54, %v919_v58  ;;  %v948_v30 = vld [vmem:[%s6030_s13 + $0x178] sm:$0xff] }
 0x23c   : > { %v4572_v48 = vpop.f32.mrf.mxu1  ;;  %1862 = vmatprep.subr.mxu1 %v1288_v37  ;;  %1616 = vmatprep.mubr.f32.mxu1 %v6475_v40  ;;  %v1053_v62 = vpop.f32.mrf.mxu0  ;;  %v926_v37 = vld [vmem:[%s6030_s13 + $0xc8] sm:$0xff] }
 0x23d   : > { %v4573_v52 = vadd.f32 %v4572_v48, %v4571_v39  ;;  %1820 = vmatmul.mubr.f32.gmra.mxu0 %v6471_v41  ;;  %1863 = vmatpush1.msra.mxu1 %v1287_v44  ;;  %v6492_v2 = vadd.f32 %v1053_v62, %v920_v56  ;;  %v925_v44 = vld [vmem:[%s6030_s13 + $0xc0] sm:$0xff]  ;;  %v1413_v56 = vld [vmem:[%s6037_s7 + $0x4f0] sm:$0xff] }
 0x23e   : > { %v4574_v59 = vpop.f32.mrf.mxu1  ;;  %1864 = vmatprep.subr.mxu1 %v1283_v50  ;;  %1617 = vmatmul.mubr.f32.gmra.mxu1 %v6480_v51  ;;  %v1057_v11 = vpop.f32.mrf.mxu0  ;;  %v1417_v62 = vld [vmem:[%s6037_s7 + $0x510] sm:$0xff] }
 0x23f   : > { %v6488_v61 = vadd.f32 %v4573_v52, %v942_v43  ;;  %1825 = vmatprep.mubr.f32.mxu0 %v8538_v49  ;;  %1865 = vmatpush1.msra.mxu1 %v1282_v57  ;;  %v6514_v35 = vadd.f32 %v1057_v11, %v922_v16  ;;  %v1258_v43 = vld [vmem:[%s6037_s7 + $0x18] sm:$0xff]  ;;  %v1257_v52 = vld [vmem:[%s6037_s7 + $0x10] sm:$0xff]  ;;  %v1403_v11 = vld [vmem:[%s6037_s7 + $0x4a0] sm:$0xff] }
 0x240   : > { %v4575_v5 = vpop.f32.mrf.mxu1  ;;  %1866 = vmatprep.subr.mxu1 %v1278_v60  ;;  %1622 = vmatprep.mubr.f32.mxu1 %v6492_v2  ;;  %v1059_v24 = vpop.f32.mrf.mxu0  ;;  %v1412_v60 = vld [vmem:[%s6037_s7 + $0x4e8] sm:$0xff] }
 0x241   : > { %v4576_v10 = vadd.f32 %v4575_v5, %v4574_v59  ;;  %1826 = vmatmul.mubr.f32.gmra.mxu0 %v6488_v61  ;;  %1867 = vmatpush1.msra.mxu1 %v1277_v1  ;;  %v6509_v27 = vadd.f32 %v1059_v24, %v923_v13  ;;  %v929_v59 = vld [vmem:[%s6030_s13 + $0xe0] sm:$0xff]  ;;  %v1408_v1 = vld [vmem:[%s6037_s7 + $0x4c8] sm:$0xff]  ;;  %v931_v24 = vld [vmem:[%s6030_s13 + $0xf0] sm:$0xff] }
 0x242   : > { %v4577_v18 = vpop.f32.mrf.mxu1  ;;  %1868 = vmatprep.subr.mxu1 %v1273_v6  ;;  %1623 = vmatmul.mubr.f32.gmra.mxu1 %v6497_v9  ;;  %v1063_v39 = vpop.f32.mrf.mxu0  ;;  %v1407_v6 = vld [vmem:[%s6037_s7 + $0x4c0] sm:$0xff] }
 0x243   : > { %v6505_v22 = vadd.f32 %v4576_v10, %v945_v4  ;;  %1831 = vmatprep.mubr.f32.mxu0 %v8538_v49  ;;  %1869 = vmatpush1.msra.mxu1 %v1272_v15  ;;  %v6530_v57 = vadd.f32 %v1063_v39, %v925_v44  ;;  %v928_v4 = vld [vmem:[%s6030_s13 + $0xd8] sm:$0xff]  ;;  %v1393_v39 = vld [vmem:[%s6037_s7 + $0x450] sm:$0xff]  ;;  %v1392_v44 = vld [vmem:[%s6037_s7 + $0x448] sm:$0xff] }
 0x244   : > { %v4578_v31 = vpop.f32.mrf.mxu1  ;;  %1870 = vmatprep.subr.mxu1 %v1268_v21  ;;  %1628 = vmatprep.mubr.f32.mxu1 %v6509_v27  ;;  %v1065_v50 = vpop.f32.mrf.mxu0  ;;  %v932_v15 = vld [vmem:[%s6030_s13 + $0xf8] sm:$0xff] }
 0x245   : > { %v4579_v38 = vadd.f32 %v4578_v31, %v4577_v18  ;;  %1832 = vmatmul.mubr.f32.gmra.mxu0 %v6505_v22  ;;  %1871 = vmatpush1.msra.mxu1 %v1267_v25  ;;  %v6526_v54 = vadd.f32 %v1065_v50, %v926_v37  ;;  %v1402_v18 = vld [vmem:[%s6037_s7 + $0x498] sm:$0xff]  ;;  %v935_v37 = vld [vmem:[%s6030_s13 + $0x110] sm:$0xff] }
 0x246   : > { %1872 = vmatprep.subr.mxu1 %v1263_v33  ;;  %1629 = vmatmul.mubr.f32.gmra.mxu1 %v6514_v35  ;;  %v1069_v58 = vpop.f32.mrf.mxu0  ;;  %v6551_v21 = vld [vmem:[%s6037_s7 + $0x778] sm:$0xff]  ;;  %v1397_v33 = vld [vmem:[%s6037_s7 + $0x470] sm:$0xff] }
 0x247   : > { %v6522_v48 = vadd.f32 %v4579_v38, %v948_v30  ;;  %1837 = vmatprep.mubr.f32.mxu0 %v8538_v49  ;;  %1873 = vmatpush1.msra.mxu1 %v1262_v42  ;;  %v6546_v16 = vadd.f32 %v1069_v58, %v928_v4  ;;  %v1398_v30 = vld [vmem:[%s6037_s7 + $0x478] sm:$0xff]  ;;  %v1387_v58 = vld [vmem:[%s6037_s7 + $0x420] sm:$0xff] }
 0x248   : > { %1874 = vmatprep.subr.mxu1 %v1258_v43  ;;  %1634 = vmatprep.mubr.f32.mxu1 %v6526_v54  ;;  %v1071_v5 = vpop.f32.mrf.mxu0  ;;  %v934_v43 = vld [vmem:[%s6030_s13 + $0x108] sm:$0xff]  ;;  %v1382_v4 = vld [vmem:[%s6037_s7 + $0x3f8] sm:$0xff] }
 0x249   : > { %1838 = vmatmul.mubr.f32.gmra.mxu0 %v6522_v48  ;;  %1875 = vmatpush1.msra.mxu1 %v1257_v52  ;;  %v6541_v10 = vadd.f32 %v1071_v5, %v929_v59  ;;  %v1388_v52 = vld [vmem:[%s6037_s7 + $0x428] sm:$0xff]  ;;  %v937_v5 = vld [vmem:[%s6030_s13 + $0x120] sm:$0xff] }
 0x24a   : > { %1876 = vmatprep.subr.mxu1 %v1413_v56  ;;  %1635 = vmatmul.mubr.f32.gmra.mxu1 %v6530_v57  ;;  %v1075_v13 = vpop.f32.mrf.mxu0 }
 0x24b   : > { %1877 = vmatpush2.msra.mxu1 %v1412_v60  ;;  %2036 = vmatpush1.msra.mxu0 %v1417_v62  ;;  %v6564_v42 = vadd.f32 %v1075_v13, %v931_v24  ;;  %v1383_v60 = vld [vmem:[%s6037_s7 + $0x400] sm:$0xff]  ;;  %v938_v62 = vld [vmem:[%s6030_s13 + $0x128] sm:$0xff]  ;;  %v1373_v24 = vld [vmem:[%s6037_s7 + $0x3b0] sm:$0xff] }
 0x24c   : > { %2069 = vmatprep.mubr.f32.mxu0 %v8538_v49  ;;  %1878 = vmatprep.subr.mxu1 %v1408_v1  ;;  %v1077_v25 = vpop.f32.mrf.mxu0 }
 0x24d   : > { %2070 = vmatmul.mubr.f32.vlgmr.msra.gmra.mxu0 %v6323_v8  ;;  %1879 = vmatpush2.msra.mxu1 %v1407_v6  ;;  %v6556_v31 = vadd.f32 %v1077_v25, %v932_v15  ;;  %v1377_v15 = vld [vmem:[%s6037_s7 + $0x3d0] sm:$0xff]  ;;  %v941_v25 = vld [vmem:[%s6030_s13 + $0x140] sm:$0xff] }
 0x24e   : > { %1640 = vmatprep.mubr.f32.mxu1 %v6541_v10  ;;  %1880 = vmatprep.subr.mxu1 %v1403_v11  ;;  %v1081_v38 = vpop.f32.mrf.mxu0  ;;  %v1378_v11 = vld [vmem:[%s6037_s7 + $0x3d8] sm:$0xff] }
 0x24f   : > { %1641 = vmatmul.mubr.f32.gmra.mxu1 %v6546_v16  ;;  %2075 = vmatprep.mubr.f32.mxu0 %v8538_v49  ;;  %v6578_v1 = vadd.f32 %v1081_v38, %v934_v43  ;;  %v940_v38 = vld [vmem:[%s6030_s13 + $0x138] sm:$0xff]  ;;  %v1367_v43 = vld [vmem:[%s6037_s7 + $0x380] sm:$0xff] }
 0x250   : > { %1881 = vmatpush2.msra.mxu1 %v1402_v18  ;;  %4903 = vmatprep.subr.mxu0 %v6551_v21  ;;  %v1083_v50 = vpop.f32.mrf.mxu0 }
 0x251   : > { %1882 = vmatprep.subr.mxu1 %v1398_v30  ;;  %2076 = vmatmul.mubr.f32.gmra.mxu0 %v6332_v17  ;;  %v6571_v56 = vadd.f32 %v1083_v50, %v935_v37  ;;  %v1368_v37 = vld [vmem:[%s6037_s7 + $0x388] sm:$0xff] }
 0x252   : > { %1883 = vmatpush2.msra.mxu1 %v1397_v33  ;;  %1646 = vmatprep.mubr.f32.mxu1 %v6556_v31  ;;  %v1087_v59 = vpop.f32.mrf.mxu0  ;;  %v1372_v33 = vld [vmem:[%s6037_s7 + $0x3a8] sm:$0xff] }
 0x253   : > { %1884 = vmatprep.subr.mxu1 %v1393_v39  ;;  %1647 = vmatmul.mubr.f32.gmra.mxu1 %v6564_v42  ;;  %v6592_v30 = vadd.f32 %v1087_v59, %v937_v5  ;;  %v1358_v5 = vld [vmem:[%s6037_s7 + $0x338] sm:$0xff] }
 0x254   : > { %1885 = vmatpush2.msra.mxu1 %v1392_v44  ;;  %2081 = vmatprep.mubr.f32.mxu0 %v8538_v49  ;;  %v1089_v6 = vpop.f32.mrf.mxu0 }
 0x255   : > { %1886 = vmatprep.subr.mxu1 %v1388_v52  ;;  %2082 = vmatmul.mubr.f32.gmra.mxu0 %v6341_v26  ;;  %v6585_v13 = vadd.f32 %v1089_v6, %v938_v62  ;;  %v1363_v52 = vld [vmem:[%s6037_s7 + $0x360] sm:$0xff]  ;;  %v943_v62 = vld [vmem:[%s6030_s13 + $0x150] sm:$0xff] }
 0x256   : > { %1887 = vmatpush2.msra.mxu1 %v1387_v58  ;;  %1652 = vmatprep.mubr.f32.mxu1 %v6571_v56  ;;  %v1093_v18 = vpop.f32.mrf.mxu0  ;;  %v944_v58 = vld [vmem:[%s6030_s13 + $0x158] sm:$0xff] }
 0x257   : > { %1888 = vmatprep.subr.mxu1 %v1383_v60  ;;  %1653 = vmatmul.mubr.f32.gmra.mxu1 %v6578_v1  ;;  %v6606_v59 = vadd.f32 %v1093_v18, %v940_v38  ;;  %v1362_v60 = vld [vmem:[%s6037_s7 + $0x358] sm:$0xff]  ;;  %v1353_v18 = vld [vmem:[%s6037_s7 + $0x310] sm:$0xff]  ;;  %v946_v38 = vld [vmem:[%s6030_s13 + $0x168] sm:$0xff] }
 0x258   : > { %1889 = vmatpush2.msra.mxu1 %v1382_v4  ;;  %2087 = vmatprep.mubr.f32.mxu0 %v8538_v49  ;;  %v1095_v39 = vpop.f32.mrf.mxu0 }
 0x259   : > { %1890 = vmatprep.subr.mxu1 %v1378_v11  ;;  %2088 = vmatmul.mubr.f32.gmra.mxu0 %v6350_v36  ;;  %v6599_v44 = vadd.f32 %v1095_v39, %v941_v25  ;;  %v1357_v11 = vld [vmem:[%s6037_s7 + $0x330] sm:$0xff] }
 0x25a   : > { %1891 = vmatpush2.msra.mxu1 %v1377_v15  ;;  %1658 = vmatprep.mubr.f32.mxu1 %v6585_v13  ;;  %v1099_v50 = vpop.f32.mrf.mxu0 }
 0x25b   : > { %1892 = vmatprep.subr.mxu1 %v1373_v24  ;;  %1659 = vmatmul.mubr.f32.gmra.mxu1 %v6592_v30  ;;  %v947_v24 = vld [vmem:[%s6030_s13 + $0x170] sm:$0xff]  ;;  %v6620_v25 = vadd.f32 %v1099_v50, %v943_v62  ;;  %v1347_v50 = vld [vmem:[%s6037_s7 + $0x2e0] sm:$0xff]  ;;  %v1338_v62 = vld [vmem:[%s6037_s7 + $0x298] sm:$0xff] }
 0x25c   : > { %1893 = vmatpush2.msra.mxu1 %v1372_v33  ;;  %2093 = vmatprep.mubr.f32.mxu0 %v8538_v49  ;;  %v1101_v4 = vpop.f32.mrf.mxu0  ;;  %v1352_v33 = vld [vmem:[%s6037_s7 + $0x308] sm:$0xff] }
 0x25d   : > { %1894 = vmatprep.subr.mxu1 %v1368_v37  ;;  %2094 = vmatmul.mubr.f32.gmra.mxu0 %v6359_v45  ;;  %v6613_v6 = vadd.f32 %v1101_v4, %v944_v58  ;;  %v1348_v37 = vld [vmem:[%s6037_s7 + $0x2e8] sm:$0xff]  ;;  %v1337_v4 = vld [vmem:[%s6037_s7 + $0x290] sm:$0xff] }
 0x25e   : > { %1895 = vmatpush2.msra.mxu1 %v1367_v43  ;;  %1664 = vmatprep.mubr.f32.mxu1 %v6599_v44  ;;  %v1105_v15 = vpop.f32.mrf.mxu0 }
 0x25f   : > { %1896 = vmatprep.subr.mxu1 %v1363_v52  ;;  %1665 = vmatmul.mubr.f32.gmra.mxu1 %v6606_v59  ;;  %v1343_v52 = vld [vmem:[%s6037_s7 + $0x2c0] sm:$0xff]  ;;  %v6633_v58 = vadd.f32 %v1105_v15, %v946_v38  ;;  %v1409_v15 = vld [vmem:[%s6037_s7 + $0x4d0] sm:$0xff]  ;;  %v1404_v38 = vld [vmem:[%s6037_s7 + $0x4a8] sm:$0xff] }
 0x260   : > { %1897 = vmatpush2.msra.mxu1 %v1362_v60  ;;  %2099 = vmatprep.mubr.f32.mxu0 %v8538_v49  ;;  %v1107_v39 = vpop.f32.mrf.mxu0  ;;  %v1342_v60 = vld [vmem:[%s6037_s7 + $0x2b8] sm:$0xff] }
 0x261   : > { %1898 = vmatprep.subr.mxu1 %v1358_v5  ;;  %2100 = vmatmul.mubr.f32.gmra.mxu0 %v6368_v55  ;;  %v6627_v43 = vadd.f32 %v1107_v39, %v947_v24  ;;  %v1414_v5 = vld [vmem:[%s6037_s7 + $0x4f8] sm:$0xff]  ;;  %v1329_v24 = vld [vmem:[%s6037_s7 + $0x250] sm:$0xff]  ;;  %v1479_v39 = vld [vmem:[%s6037_s7 + $0x700] sm:$0xff] }
 0x262   : > { %1899 = vmatpush2.msra.mxu1 %v1357_v11  ;;  %1670 = vmatprep.mubr.f32.mxu1 %v6613_v6  ;;  %v1334_v11 = vld [vmem:[%s6037_s7 + $0x278] sm:$0xff] }
 0x263   : > { %1900 = vmatprep.subr.mxu1 %v1353_v18  ;;  %1671 = vmatmul.mubr.f32.gmra.mxu1 %v6620_v25  ;;  %v1489_v18 = vld [vmem:[%s6037_s7 + $0x750] sm:$0xff] }
 0x264   : > { %1901 = vmatpush2.msra.mxu1 %v1352_v33  ;;  %2105 = vmatprep.mubr.f32.mxu0 %v8538_v49  ;;  %v1484_v33 = vld [vmem:[%s6037_s7 + $0x728] sm:$0xff] }
 0x265   : > { %1902 = vmatprep.subr.mxu1 %v1348_v37  ;;  %2106 = vmatmul.mubr.f32.gmra.mxu0 %v6377_v63  ;;  %v1474_v37 = vld [vmem:[%s6037_s7 + $0x6d8] sm:$0xff] }
 0x266   : > { %1903 = vmatpush2.msra.mxu1 %v1347_v50  ;;  %1676 = vmatprep.mubr.f32.mxu1 %v6627_v43  ;;  %v1399_v50 = vld [vmem:[%s6037_s7 + $0x480] sm:$0xff] }
 0x267   : > { %1904 = vmatprep.subr.mxu1 %v1343_v52  ;;  %1677 = vmatmul.mubr.f32.gmra.mxu1 %v6633_v58  ;;  %v1469_v52 = vld [vmem:[%s6037_s7 + $0x6b0] sm:$0xff] }
 0x268   : > { %1905 = vmatpush2.msra.mxu1 %v1342_v60  ;;  %2111 = vmatprep.mubr.f32.mxu0 %v8538_v49  ;;  %v1319_v60 = vld [vmem:[%s6037_s7 + $0x200] sm:$0xff] }
 0x269   : > { %1906 = vmatprep.subr.mxu1 %v1338_v62  ;;  %1908 = vmatprep.mubr.f32.mxu1 %v6390_v14  ;;  %v1464_v62 = vld [vmem:[%s6037_s7 + $0x688] sm:$0xff] }
 0x26a   : > { %2112 = vmatmul.mubr.f32.gmra.mxu0 %v6388_v12  ;;  %1907 = vmatpush2.msra.mxu1 %v1337_v4  ;;  %v1394_v4 = vld [vmem:[%s6037_s7 + $0x458] sm:$0xff] }
 0x26b   : > { %4580 = vmatprep.subr.mxu1 %v1414_v5  ;;  %1909 = vmatmul.mubr.f32.vlgmr.msra.gmra.mxu1 %v6394_v19  ;;  %v1459_v5 = vld [vmem:[%s6037_s7 + $0x660] sm:$0xff] }
 0x26c   : > { %2117 = vmatprep.mubr.f32.mxu0 %v8538_v49  ;;  %4581 = vmatpush3.msra.mxu1 %v1334_v11  ;;  %v1314_v11 = vld [vmem:[%s6037_s7 + $0x1d8] sm:$0xff] }
 0x26d   : > { %1914 = vmatprep.mubr.f32.mxu1 %v6408_v32  ;;  %4904 = vmatpush3.msra.mxu0 %v6551_v21  ;;  %v1324_v21 = vld [vmem:[%s6037_s7 + $0x228] sm:$0xff] }
 0x26e   : > { %2118 = vmatmul.mubr.f32.gmra.mxu0 %v6404_v29  ;;  %4582 = vmatprep.subr.mxu1 %v1409_v15  ;;  %v1454_v15 = vld [vmem:[%s6037_s7 + $0x638] sm:$0xff] }
 0x26f   : > { %4905 = vmatprep.subr.mxu0 %v1489_v18  ;;  %1915 = vmatmul.mubr.f32.gmra.mxu1 %v6412_v34 }
 0x270   : > { %2123 = vmatprep.mubr.f32.mxu0 %v8538_v49  ;;  %4583 = vmatpush3.msra.mxu1 %v1329_v24  ;;  %v1449_v24 = vld [vmem:[%s6037_s7 + $0x610] sm:$0xff] }
 0x271   : > { %4906 = vmatpush3.msra.mxu0 %v1489_v18  ;;  %1920 = vmatprep.mubr.f32.mxu1 %v6424_v46  ;;  %v1389_v18 = vld [vmem:[%s6037_s7 + $0x430] sm:$0xff] }
 0x272   : > { %2124 = vmatmul.mubr.f32.gmra.mxu0 %v6420_v47  ;;  %4907 = vmatprep.subr.mxu0 %v1484_v33 }
 0x273   : > { %4908 = vmatpush3.msra.mxu0 %v1484_v33  ;;  %4584 = vmatprep.subr.mxu1 %v1404_v38  ;;  %v1309_v33 = vld [vmem:[%s6037_s7 + $0x1b0] sm:$0xff]  ;;  %v1444_v38 = vld [vmem:[%s6037_s7 + $0x5e8] sm:$0xff] }
 0x274   : > { %4909 = vmatprep.subr.mxu0 %v1479_v39  ;;  %1921 = vmatmul.mubr.f32.gmra.mxu1 %v6429_v53 }
 0x275   : > { %2129 = vmatprep.mubr.f32.mxu0 %v8538_v49  ;;  %4585 = vmatpush3.msra.mxu1 %v1324_v21  ;;  %v1439_v21 = vld [vmem:[%s6037_s7 + $0x5c0] sm:$0xff] }
 0x276   : > { %4910 = vmatpush3.msra.mxu0 %v1479_v39  ;;  %1926 = vmatprep.mubr.f32.mxu1 %v6441_v3  ;;  %v1384_v39 = vld [vmem:[%s6037_s7 + $0x408] sm:$0xff] }
 0x277   : > { %2130 = vmatmul.mubr.f32.gmra.mxu0 %v6437_v0  ;;  %4911 = vmatprep.subr.mxu0 %v1474_v37 }
 0x278   : > { %4912 = vmatpush3.msra.mxu0 %v1474_v37  ;;  %4586 = vmatprep.subr.mxu1 %v1399_v50  ;;  %v1304_v37 = vld [vmem:[%s6037_s7 + $0x188] sm:$0xff]  ;;  %v1434_v50 = vld [vmem:[%s6037_s7 + $0x598] sm:$0xff] }
 0x279   : > { %4913 = vmatprep.subr.mxu0 %v1469_v52  ;;  %1927 = vmatmul.mubr.f32.gmra.mxu1 %v6446_v7 }
 0x27a   : > { %2135 = vmatprep.mubr.f32.mxu0 %v8538_v49  ;;  %4587 = vmatpush3.msra.mxu1 %v1319_v60  ;;  %v1429_v60 = vld [vmem:[%s6037_s7 + $0x570] sm:$0xff] }
 0x27b   : > { %4914 = vmatpush3.msra.mxu0 %v1469_v52  ;;  %1932 = vmatprep.mubr.f32.mxu1 %v6458_v23  ;;  %v1379_v52 = vld [vmem:[%s6037_s7 + $0x3e0] sm:$0xff] }
 0x27c   : > { %2136 = vmatmul.mubr.f32.gmra.mxu0 %v6454_v20  ;;  %4915 = vmatprep.subr.mxu0 %v1464_v62 }
 0x27d   : > { %4916 = vmatpush3.msra.mxu0 %v1464_v62  ;;  %4588 = vmatprep.subr.mxu1 %v1394_v4  ;;  %v1299_v62 = vld [vmem:[%s6037_s7 + $0x160] sm:$0xff]  ;;  %v1424_v4 = vld [vmem:[%s6037_s7 + $0x548] sm:$0xff] }
 0x27e   : > { %4917 = vmatprep.subr.mxu0 %v1459_v5  ;;  %1933 = vmatmul.mubr.f32.gmra.mxu1 %v6463_v28 }
 0x27f   : > { %2141 = vmatprep.mubr.f32.mxu0 %v8538_v49  ;;  %4589 = vmatpush3.msra.mxu1 %v1314_v11  ;;  %v1419_v11 = vld [vmem:[%s6037_s7 + $0x520] sm:$0xff] }
 0x280   : > { %4918 = vmatpush3.msra.mxu0 %v1459_v5  ;;  %1938 = vmatprep.mubr.f32.mxu1 %v6475_v40  ;;  %v1374_v5 = vld [vmem:[%s6037_s7 + $0x3b8] sm:$0xff] }
 0x281   : > { %2142 = vmatmul.mubr.f32.gmra.mxu0 %v6471_v41  ;;  %4919 = vmatprep.subr.mxu0 %v1454_v15 }
 0x282   : > { %4920 = vmatpush3.msra.mxu0 %v1454_v15  ;;  %4590 = vmatprep.subr.mxu1 %v1389_v18  ;;  %v1294_v15 = vld [vmem:[%s6037_s7 + $0x138] sm:$0xff]  ;;  %v1369_v18 = vld [vmem:[%s6037_s7 + $0x390] sm:$0xff] }
 0x283   : > { %4921 = vmatprep.subr.mxu0 %v1449_v24  ;;  %1939 = vmatmul.mubr.f32.gmra.mxu1 %v6480_v51 }
 0x284   : > { %2147 = vmatprep.mubr.f32.mxu0 %v8538_v49  ;;  %4591 = vmatpush3.msra.mxu1 %v1309_v33  ;;  %v1364_v33 = vld [vmem:[%s6037_s7 + $0x368] sm:$0xff] }
 0x285   : > { %4922 = vmatpush3.msra.mxu0 %v1449_v24  ;;  %1944 = vmatprep.mubr.f32.mxu1 %v6492_v2  ;;  %v1289_v24 = vld [vmem:[%s6037_s7 + $0x110] sm:$0xff] }
 0x286   : > { %2148 = vmatmul.mubr.f32.gmra.mxu0 %v6488_v61  ;;  %4923 = vmatprep.subr.mxu0 %v1444_v38 }
 0x287   : > { %4924 = vmatpush3.msra.mxu0 %v1444_v38  ;;  %4592 = vmatprep.subr.mxu1 %v1384_v39  ;;  %v1359_v38 = vld [vmem:[%s6037_s7 + $0x340] sm:$0xff] }
 0x288   : > { %4925 = vmatprep.subr.mxu0 %v1439_v21  ;;  %1945 = vmatmul.mubr.f32.gmra.mxu1 %v6497_v9  ;;  %v1279_v39 = vld [vmem:[%s6037_s7 + $0xc0] sm:$0xff] }
 0x289   : > { %2153 = vmatprep.mubr.f32.mxu0 %v8538_v49  ;;  %4593 = vmatpush3.msra.mxu1 %v1304_v37  ;;  %v1269_v37 = vld [vmem:[%s6037_s7 + $0x70] sm:$0xff] }
 0x28a   : > { %4926 = vmatpush3.msra.mxu0 %v1439_v21  ;;  %1950 = vmatprep.mubr.f32.mxu1 %v6509_v27  ;;  %v1354_v21 = vld [vmem:[%s6037_s7 + $0x318] sm:$0xff] }
 0x28b   : > { %2154 = vmatmul.mubr.f32.gmra.mxu0 %v6505_v22  ;;  %4927 = vmatprep.subr.mxu0 %v1434_v50 }
 0x28c   : > { %4928 = vmatpush3.msra.mxu0 %v1434_v50  ;;  %4594 = vmatprep.subr.mxu1 %v1379_v52  ;;  %v1344_v50 = vld [vmem:[%s6037_s7 + $0x2c8] sm:$0xff]  ;;  %v1259_v52 = vld [vmem:[%s6037_s7 + $0x20] sm:$0xff] }
 0x28d   : > { %4929 = vmatprep.subr.mxu0 %v1429_v60  ;;  %1951 = vmatmul.mubr.f32.gmra.mxu1 %v6514_v35 }
 0x28e   : > { %2159 = vmatprep.mubr.f32.mxu0 %v8538_v49  ;;  %4595 = vmatpush3.msra.mxu1 %v1299_v62  ;;  %v2675_v62 = vld [vmem:[%s6045_s11 + $0x458] sm:$0xff] }
 0x28f   : > { %4930 = vmatpush3.msra.mxu0 %v1429_v60  ;;  %1956 = vmatprep.mubr.f32.mxu1 %v6526_v54  ;;  %v2582_v60 = vld [vmem:[%s6045_s11 + $0x170] sm:$0xff] }
 0x290   : > { %2160 = vmatmul.mubr.f32.gmra.mxu0 %v6522_v48  ;;  %4931 = vmatprep.subr.mxu0 %v1424_v4 }
 0x291   : > { %4932 = vmatpush3.msra.mxu0 %v1424_v4  ;;  %4935 = vmatprep.mubr.f32.mxu0 %v6323_v8  ;;  %v1284_v8 = vld [vmem:[%s6037_s7 + $0xe8] sm:$0xff] }
 0x292   : > { %4596 = vmatprep.subr.mxu1 %v1374_v5  ;;  %4933 = vmatprep.subr.mxu0 %v1419_v11  ;;  %v2671_v4 = vld [vmem:[%s6045_s11 + $0x438] sm:$0xff]  ;;  %v2669_v5 = vld [vmem:[%s6045_s11 + $0x428] sm:$0xff] }
 0x293   : > { %1957 = vmatmul.mubr.f32.gmra.mxu1 %v6530_v57  ;;  %4934 = vmatpush3.msra.mxu0 %v1419_v11  ;;  %v2665_v11 = vld [vmem:[%s6045_s11 + $0x408] sm:$0xff] }
 0x294   : > { %4597 = vmatpush3.msra.mxu1 %v1294_v15  ;;  %1962 = vmatprep.mubr.f32.mxu1 %v6541_v10  ;;  %v2663_v15 = vld [vmem:[%s6045_s11 + $0x3f8] sm:$0xff] }
 0x295   : > { %4936 = vmatmul.mubr.f32.vlgmr.msra.gmra.mxu0 %v6332_v17  ;;  %4598 = vmatprep.subr.mxu1 %v1369_v18  ;;  %v1274_v17 = vld [vmem:[%s6037_s7 + $0x98] sm:$0xff]  ;;  %v2659_v18 = vld [vmem:[%s6045_s11 + $0x3d8] sm:$0xff] }
 0x296   : > { %4938 = vmatprep.mubr.f32.mxu0 %v6341_v26  ;;  %4599 = vmatpush3.msra.mxu1 %v1289_v24  ;;  %v1349_v26 = vld [vmem:[%s6037_s7 + $0x2f0] sm:$0xff] }
 0x297   : > { %1963 = vmatmul.mubr.f32.gmra.mxu1 %v6546_v16  ;;  %4600 = vmatprep.subr.mxu1 %v1364_v33  ;;  %v2657_v24 = vld [vmem:[%s6045_s11 + $0x3c8] sm:$0xff]  ;;  %v2656_v33 = vld [vmem:[%s6045_s11 + $0x3c0] sm:$0xff] }
 0x298   : > { %1968 = vmatprep.mubr.f32.mxu1 %v6556_v31  ;;  %4601 = vmatpush3.msra.mxu1 %v1284_v8  ;;  %v2578_v8 = vld [vmem:[%s6045_s11 + $0x150] sm:$0xff] }
 0x299   : > { %4939 = vmatmul.mubr.f32.gmra.mxu0 %v6350_v36  ;;  %4602 = vmatprep.subr.mxu1 %v1359_v38  ;;  %v1264_v36 = vld [vmem:[%s6037_s7 + $0x48] sm:$0xff]  ;;  %v2654_v38 = vld [vmem:[%s6045_s11 + $0x3b0] sm:$0xff] }
 0x29a   : > { %4941 = vmatprep.mubr.f32.mxu0 %v6359_v45  ;;  %4603 = vmatpush3.msra.mxu1 %v1279_v39  ;;  %v1339_v45 = vld [vmem:[%s6037_s7 + $0x2a0] sm:$0xff]  ;;  %v2573_v39 = vld [vmem:[%s6045_s11 + $0x128] sm:$0xff] }
 0x29b   : > { %1969 = vmatmul.mubr.f32.gmra.mxu1 %v6564_v42  ;;  %4604 = vmatprep.subr.mxu1 %v1354_v21  ;;  %v2572_v21 = vld [vmem:[%s6045_s11 + $0x120] sm:$0xff] }
 0x29c   : > { %1974 = vmatprep.mubr.f32.mxu1 %v6571_v56  ;;  %4605 = vmatpush3.msra.mxu1 %v1274_v17  ;;  %v2570_v17 = vld [vmem:[%s6045_s11 + $0x110] sm:$0xff] }
 0x29d   : > { %4942 = vmatmul.mubr.f32.gmra.mxu0 %v6368_v55  ;;  %4606 = vmatprep.subr.mxu1 %v1349_v26  ;;  %v2678_v55 = vld [vmem:[%s6045_s11 + $0x470] sm:$0xff]  ;;  %v2569_v26 = vld [vmem:[%s6045_s11 + $0x108] sm:$0xff] }
 0x29e   : > { %4944 = vmatprep.mubr.f32.mxu0 %v6377_v63  ;;  %4607 = vmatpush3.msra.mxu1 %v1269_v37  ;;  %v2677_v63 = vld [vmem:[%s6045_s11 + $0x468] sm:$0xff]  ;;  %v2567_v37 = vld [vmem:[%s6045_s11 + $0xf8] sm:$0xff] }
 0x29f   : > { %1975 = vmatmul.mubr.f32.gmra.mxu1 %v6578_v1  ;;  %4608 = vmatprep.subr.mxu1 %v1344_v50  ;;  %v2566_v50 = vld [vmem:[%s6045_s11 + $0xf0] sm:$0xff] }
 0x2a0   : > { %1980 = vmatprep.mubr.f32.mxu1 %v6585_v13  ;;  %4609 = vmatpush3.msra.mxu1 %v1264_v36  ;;  %v2564_v36 = vld [vmem:[%s6045_s11 + $0xe0] sm:$0xff] }
 0x2a1   : > { %4945 = vmatmul.mubr.f32.gmra.mxu0 %v6388_v12  ;;  %4610 = vmatprep.subr.mxu1 %v1339_v45  ;;  %v2674_v12 = vld [vmem:[%s6045_s11 + $0x450] sm:$0xff]  ;;  %v2563_v45 = vld [vmem:[%s6045_s11 + $0xd8] sm:$0xff] }
 0x2a2   : > { %4947 = vmatprep.mubr.f32.mxu0 %v6404_v29  ;;  %4611 = vmatpush3.msra.mxu1 %v1259_v52  ;;  %v2672_v29 = vld [vmem:[%s6045_s11 + $0x440] sm:$0xff]  ;;  %v2561_v52 = vld [vmem:[%s6045_s11 + $0xc8] sm:$0xff] }
 0x2a3   : > { %1981 = vmatmul.mubr.f32.gmra.mxu1 %v6592_v30  ;;  %2793 = vmatprep.subr.mxu1 %v2582_v60  ;;  %v2560_v60 = vld [vmem:[%s6045_s11 + $0xc0] sm:$0xff] }
 0x2a4   : > { %1986 = vmatprep.mubr.f32.mxu1 %v6599_v44  ;;  %2954 = vmatprep.subr.mxu0 %v2678_v55  ;;  %v2558_v55 = vld [vmem:[%s6045_s11 + $0xb0] sm:$0xff] }
 0x2a5   : > { %4948 = vmatmul.mubr.f32.gmra.mxu0 %v6420_v47  ;;  %v2668_v47 = vld [vmem:[%s6045_s11 + $0x420] sm:$0xff] }
 0x2a6   : > { %4950 = vmatprep.mubr.f32.mxu0 %v6437_v0  ;;  %2955 = vmatpush1.msra.mxu0 %v2677_v63  ;;  %v2666_v0 = vld [vmem:[%s6045_s11 + $0x410] sm:$0xff]  ;;  %v2557_v63 = vld [vmem:[%s6045_s11 + $0xa8] sm:$0xff] }
 0x2a7   : > { %1987 = vmatmul.mubr.f32.gmra.mxu1 %v6606_v59  ;;  %2956 = vmatprep.subr.mxu0 %v2675_v62  ;;  %v2555_v62 = vld [vmem:[%s6045_s11 + $0x98] sm:$0xff] }
 0x2a8   : > { %1992 = vmatprep.mubr.f32.mxu1 %v6613_v6  ;;  %2957 = vmatpush1.msra.mxu0 %v2674_v12  ;;  %v2554_v12 = vld [vmem:[%s6045_s11 + $0x90] sm:$0xff] }
 0x2a9   : > { %4951 = vmatmul.mubr.f32.gmra.mxu0 %v6454_v20  ;;  %2958 = vmatprep.subr.mxu0 %v2672_v29  ;;  %v2662_v20 = vld [vmem:[%s6045_s11 + $0x3f0] sm:$0xff]  ;;  %v2552_v29 = vld [vmem:[%s6045_s11 + $0x80] sm:$0xff] }
 0x2aa   : > { %4953 = vmatprep.mubr.f32.mxu0 %v6471_v41  ;;  %2959 = vmatpush1.msra.mxu0 %v2671_v4  ;;  %v2660_v41 = vld [vmem:[%s6045_s11 + $0x3e0] sm:$0xff]  ;;  %v2551_v4 = vld [vmem:[%s6045_s11 + $0x78] sm:$0xff] }
 0x2ab   : > { %1993 = vmatmul.mubr.f32.gmra.mxu1 %v6620_v25  ;;  %2960 = vmatprep.subr.mxu0 %v2669_v5  ;;  %v2549_v5 = vld [vmem:[%s6045_s11 + $0x68] sm:$0xff] }
 0x2ac   : > { %1998 = vmatprep.mubr.f32.mxu1 %v6627_v43  ;;  %2961 = vmatpush1.msra.mxu0 %v2668_v47  ;;  %v2548_v47 = vld [vmem:[%s6045_s11 + $0x60] sm:$0xff] }
 0x2ad   : > { %4954 = vmatmul.mubr.f32.gmra.mxu0 %v6488_v61  ;;  %2962 = vmatprep.subr.mxu0 %v2666_v0  ;;  %v2581_v61 = vld [vmem:[%s6045_s11 + $0x168] sm:$0xff]  ;;  %v2546_v0 = vld [vmem:[%s6045_s11 + $0x50] sm:$0xff] }
 0x2ae   : > { %4956 = vmatprep.mubr.f32.mxu0 %v6505_v22  ;;  %2963 = vmatpush1.msra.mxu0 %v2665_v11  ;;  %v2579_v22 = vld [vmem:[%s6045_s11 + $0x158] sm:$0xff]  ;;  %v2545_v11 = vld [vmem:[%s6045_s11 + $0x48] sm:$0xff] }
 0x2af   : > { %1999 = vmatmul.mubr.f32.gmra.mxu1 %v6633_v58  ;;  %2964 = vmatprep.subr.mxu0 %v2663_v15  ;;  %v2543_v15 = vld [vmem:[%s6045_s11 + $0x38] sm:$0xff] }
 0x2b0   : > { %2230 = vmatprep.mubr.f32.mxu1 %v6390_v14  ;;  %2965 = vmatpush1.msra.mxu0 %v2662_v20  ;;  %v2576_v14 = vld [vmem:[%s6045_s11 + $0x140] sm:$0xff]  ;;  %v2638_v20 = vld [vmem:[%s6045_s11 + $0x330] sm:$0xff] }
 0x2b1   : > { %4957 = vmatmul.mubr.f32.gmra.mxu0 %v6522_v48  ;;  %2966 = vmatprep.subr.mxu0 %v2660_v41  ;;  %v2575_v48 = vld [vmem:[%s6045_s11 + $0x138] sm:$0xff]  ;;  %v2636_v41 = vld [vmem:[%s6045_s11 + $0x320] sm:$0xff] }
 0x2b2   : > { %2967 = vmatpush1.msra.mxu0 %v2659_v18  ;;  %v2540_v18 = vld [vmem:[%s6045_s11 + $0x20] sm:$0xff] }
 0x2b3   : > { %2231 = vmatmul.mubr.f32.vlgmr.msra.gmra.mxu1 %v6394_v19  ;;  %2968 = vmatprep.subr.mxu0 %v2657_v24  ;;  %v2653_v19 = vld [vmem:[%s6045_s11 + $0x3a8] sm:$0xff]  ;;  %v2539_v24 = vld [vmem:[%s6045_s11 + $0x18] sm:$0xff] }
 0x2b4   : > { %2235 = vmatprep.mubr.f32.mxu1 %v6408_v32  ;;  %2794 = vmatpush1.msra.mxu1 %v2581_v61  ;;  %v2651_v32 = vld [vmem:[%s6045_s11 + $0x398] sm:$0xff] }
 0x2b5   : > { %2795 = vmatprep.subr.mxu1 %v2579_v22  ;;  %2969 = vmatpush1.msra.mxu0 %v2656_v33  ;;  %v2635_v22 = vld [vmem:[%s6045_s11 + $0x318] sm:$0xff]  ;;  %v2633_v33 = vld [vmem:[%s6045_s11 + $0x308] sm:$0xff] }
 0x2b6   : > { %2796 = vmatpush1.msra.mxu1 %v2578_v8  ;;  %2970 = vmatprep.subr.mxu0 %v2654_v38  ;;  %v2630_v38 = vld [vmem:[%s6045_s11 + $0x2f0] sm:$0xff] }
 0x2b7   : > { %2236 = vmatmul.mubr.f32.gmra.mxu1 %v6412_v34  ;;  %2797 = vmatprep.subr.mxu1 %v2576_v14  ;;  %v2650_v34 = vld [vmem:[%s6045_s11 + $0x390] sm:$0xff]  ;;  %v2629_v14 = vld [vmem:[%s6045_s11 + $0x2e8] sm:$0xff] }
 0x2b8   : > { %2240 = vmatprep.mubr.f32.mxu1 %v6424_v46  ;;  %2798 = vmatpush1.msra.mxu1 %v2575_v48  ;;  %v2648_v46 = vld [vmem:[%s6045_s11 + $0x380] sm:$0xff] }
 0x2b9   : > { %2799 = vmatprep.subr.mxu1 %v2573_v39  ;;  %2971 = vmatpush1.msra.mxu0 %v2653_v19  ;;  %v2632_v39 = vld [vmem:[%s6045_s11 + $0x300] sm:$0xff]  ;;  %v2726_v19 = vld [vmem:[%s6045_s11 + $0x5f0] sm:$0xff] }
 0x2ba   : > { %2800 = vmatpush1.msra.mxu1 %v2572_v21  ;;  %2972 = vmatprep.subr.mxu0 %v2651_v32  ;;  %v2624_v32 = vld [vmem:[%s6045_s11 + $0x2c0] sm:$0xff] }
 0x2bb   : > { %2241 = vmatmul.mubr.f32.gmra.mxu1 %v6429_v53  ;;  %2801 = vmatprep.subr.mxu1 %v2570_v17  ;;  %v2647_v53 = vld [vmem:[%s6045_s11 + $0x378] sm:$0xff] }
 0x2bc   : > { %2245 = vmatprep.mubr.f32.mxu1 %v6441_v3  ;;  %2802 = vmatpush1.msra.mxu1 %v2569_v26  ;;  %v2645_v3 = vld [vmem:[%s6045_s11 + $0x368] sm:$0xff]  ;;  %v2623_v17 = vld [vmem:[%s6045_s11 + $0x2b8] sm:$0xff] }
 0x2bd   : > { %2803 = vmatprep.subr.mxu1 %v2567_v37  ;;  %2973 = vmatpush1.msra.mxu0 %v2650_v34  ;;  %v2725_v37 = vld [vmem:[%s6045_s11 + $0x5e8] sm:$0xff]  ;;  %v2723_v34 = vld [vmem:[%s6045_s11 + $0x5d8] sm:$0xff] }
 0x2be   : > { %2804 = vmatpush1.msra.mxu1 %v2566_v50  ;;  %2974 = vmatprep.subr.mxu0 %v2648_v46  ;;  %v2618_v46 = vld [vmem:[%s6045_s11 + $0x290] sm:$0xff] }
 0x2bf   : > { %2246 = vmatmul.mubr.f32.gmra.mxu1 %v6446_v7  ;;  %2805 = vmatprep.subr.mxu1 %v2564_v36  ;;  %v2644_v7 = vld [vmem:[%s6045_s11 + $0x360] sm:$0xff]  ;;  %v2617_v36 = vld [vmem:[%s6045_s11 + $0x288] sm:$0xff] }
 0x2c0   : > { %2250 = vmatprep.mubr.f32.mxu1 %v6458_v23  ;;  %2806 = vmatpush1.msra.mxu1 %v2563_v45  ;;  %v2642_v23 = vld [vmem:[%s6045_s11 + $0x350] sm:$0xff] }
 0x2c1   : > { %2807 = vmatprep.subr.mxu1 %v2561_v52  ;;  %2975 = vmatpush1.msra.mxu0 %v2647_v53  ;;  %v2722_v52 = vld [vmem:[%s6045_s11 + $0x5d0] sm:$0xff]  ;;  %v1497_v53 = vlaneseq }
 0x2c2   : > { %2808 = vmatpush1.msra.mxu1 %v2560_v60  ;;  %2976 = vmatprep.subr.mxu0 %v2645_v3  ;;  %v2720_v60 = vld [vmem:[%s6045_s11 + $0x5c0] sm:$0xff] }
 0x2c3   : > { %2251 = vmatmul.mubr.f32.gmra.mxu1 %v6463_v28  ;;  %2809 = vmatprep.subr.mxu1 %v2558_v55  ;;  %v2641_v28 = vld [vmem:[%s6045_s11 + $0x348] sm:$0xff]  ;;  %v2612_v55 = vld [vmem:[%s6045_s11 + $0x260] sm:$0xff] }
 0x2c4   : > { %2255 = vmatprep.mubr.f32.mxu1 %v6475_v40  ;;  %2810 = vmatpush1.msra.mxu1 %v2557_v63  ;;  %v2639_v40 = vld [vmem:[%s6045_s11 + $0x338] sm:$0xff] }
 0x2c5   : > { %2811 = vmatprep.subr.mxu1 %v2555_v62  ;;  %2977 = vmatpush1.msra.mxu0 %v2644_v7  ;;  %v2611_v63 = vld [vmem:[%s6045_s11 + $0x258] sm:$0xff] }
 0x2c6   : > { %2812 = vmatpush1.msra.mxu1 %v2554_v12  ;;  %2978 = vmatprep.subr.mxu0 %v2642_v23  ;;  %v2719_v7 = vld [vmem:[%s6045_s11 + $0x5b8] sm:$0xff]  ;;  %v6885_v12 = vshrl.u32 %v1497_v53, 7  ;;  %v2717_v23 = vld [vmem:[%s6045_s11 + $0x5a8] sm:$0xff] }
 0x2c7   : > { %2256 = vmatmul.mubr.f32.gmra.mxu1 %v6480_v51  ;;  %2813 = vmatprep.subr.mxu1 %v2552_v29  ;;  %v2542_v51 = vld [vmem:[%s6045_s11 + $0x30] sm:$0xff] }
 0x2c8   : > { %2260 = vmatprep.mubr.f32.mxu1 %v6492_v2  ;;  %2814 = vmatpush1.msra.mxu1 %v2551_v4  ;;  %v2606_v4 = vld [vmem:[%s6045_s11 + $0x230] sm:$0xff] }
 0x2c9   : > { %2815 = vmatprep.subr.mxu1 %v2549_v5  ;;  %2979 = vmatpush1.msra.mxu0 %v2641_v28  ;;  %v2605_v5 = vld [vmem:[%s6045_s11 + $0x228] sm:$0xff]  ;;  %v2603_v28 = vld [vmem:[%s6045_s11 + $0x218] sm:$0xff] }
 0x2ca   : > { %2816 = vmatpush1.msra.mxu1 %v2548_v47  ;;  %2980 = vmatprep.subr.mxu0 %v2639_v40  ;;  %v2716_v47 = vld [vmem:[%s6045_s11 + $0x5a0] sm:$0xff]  ;;  %v8505_v40 = vsub.s32 0, %v6885_v12 }
 0x2cb   : > { %2261 = vmatmul.mubr.f32.gmra.mxu1 %v6497_v9  ;;  %2817 = vmatprep.subr.mxu1 %v2546_v0  ;;  %v2537_v9 = vld [vmem:[%s6045_s11 + $0x8] sm:$0xff]  ;;  %v2714_v0 = vld [vmem:[%s6045_s11 + $0x590] sm:$0xff] }
 0x2cc   : > { %2265 = vmatprep.mubr.f32.mxu1 %v6509_v27  ;;  %2818 = vmatpush1.msra.mxu1 %v2545_v11  ;;  %v2536_v27 = vld [vmem:[%s6045_s11] sm:$0xff] }
 0x2cd   : > { %v6827_v2 = vpop.f32.mrf.mxu0  ;;  %2819 = vmatprep.subr.mxu1 %v2543_v15  ;;  %2981 = vmatpush1.msra.mxu0 %v2638_v20  ;;  %v2600_v15 = vld [vmem:[%s6045_s11 + $0x200] sm:$0xff]  ;;  %v6906_v20 = vld [vmem:[%s6043_s0] sm:$0x1f] }
 0x2ce   : > { %2820 = vmatpush1.msra.mxu1 %v2542_v51  ;;  %2982 = vmatprep.subr.mxu0 %v2636_v41  ;;  %v2599_v51 = vld [vmem:[%s6045_s11 + $0x1f8] sm:$0xff] }
 0x2cf   : > { %v6831_v61 = vpop.f32.mrf.mxu0  ;;  %2266 = vmatmul.mubr.f32.gmra.mxu1 %v6514_v35  ;;  %2821 = vmatprep.subr.mxu1 %v2540_v18  ;;  %v2627_v35 = vld [vmem:[%s6045_s11 + $0x2d8] sm:$0xff]  ;;  %v2597_v18 = vld [vmem:[%s6045_s11 + $0x1e8] sm:$0xff] }
 0x2d0   : > { %2270 = vmatprep.mubr.f32.mxu1 %v6526_v54  ;;  %2822 = vmatpush1.msra.mxu1 %v2539_v24  ;;  %v2626_v54 = vld [vmem:[%s6045_s11 + $0x2d0] sm:$0xff]  ;;  %v6918_v24 = vrot.slane %v6906_v20, %v8505_v40  ;;  %v2743_v40 = vld [vmem:[%s6045_s11 + $0x678] sm:$0xff] }
 0x2d1   : > { %v6839_v8 = vpop.f32.mrf.mxu0  ;;  %2823 = vmatprep.subr.mxu1 %v2537_v9  ;;  %2983 = vmatpush1.msra.mxu0 %v2635_v22  ;;  %v2596_v9 = vld [vmem:[%s6045_s11 + $0x1e0] sm:$0xff]  ;;  %v2711_v22 = vld [vmem:[%s6045_s11 + $0x578] sm:$0xff] }
 0x2d2   : > { %2824 = vmatpush1.msra.mxu1 %v2536_v27  ;;  %2984 = vmatprep.subr.mxu0 %v2633_v33  ;;  %v2594_v33 = vld [vmem:[%s6045_s11 + $0x1d0] sm:$0xff] }
 0x2d3   : > { %v6843_v48 = vpop.f32.mrf.mxu0  ;;  %2271 = vmatmul.mubr.f32.gmra.mxu1 %v6530_v57  ;;  %2825 = vmatprep.subr.mxu1 %v2630_v38  ;;  %v2621_v57 = vld [vmem:[%s6045_s11 + $0x2a8] sm:$0xff] }
 0x2d4   : > { %2275 = vmatprep.mubr.f32.mxu1 %v6541_v10  ;;  %2826 = vmatpush2.msra.mxu1 %v2629_v14  ;;  %v2620_v10 = vld [vmem:[%s6045_s11 + $0x2a0] sm:$0xff]  ;;  %v2593_v38 = vld [vmem:[%s6045_s11 + $0x1c8] sm:$0xff] }
 0x2d5   : > { %v6851_v21 = vpop.f32.mrf.mxu0  ;;  %2827 = vmatprep.subr.mxu1 %v2627_v35  ;;  %2985 = vmatpush1.msra.mxu0 %v2632_v39  ;;  %v2710_v39 = vld [vmem:[%s6045_s11 + $0x570] sm:$0xff] }
 0x2d6   : > { %2828 = vmatpush2.msra.mxu1 %v2626_v54  ;;  %2986 = vmatprep.subr.mxu0 %v2726_v19  ;;  %v2590_v19 = vld [vmem:[%s6045_s11 + $0x1b0] sm:$0xff] }
 0x2d7   : > { %v6855_v26 = vpop.f32.mrf.mxu0  ;;  %2276 = vmatmul.mubr.f32.gmra.mxu1 %v6546_v16  ;;  %2829 = vmatprep.subr.mxu1 %v2624_v32  ;;  %v2615_v16 = vld [vmem:[%s6045_s11 + $0x278] sm:$0xff]  ;;  %v2708_v32 = vld [vmem:[%s6045_s11 + $0x560] sm:$0xff] }
 0x2d8   : > { %2280 = vmatprep.mubr.f32.mxu1 %v6556_v31  ;;  %2830 = vmatpush2.msra.mxu1 %v2623_v17  ;;  %v2614_v31 = vld [vmem:[%s6045_s11 + $0x270] sm:$0xff] }
 0x2d9   : > { %v6863_v50 = vpop.f32.mrf.mxu0  ;;  %2831 = vmatprep.subr.mxu1 %v2621_v57  ;;  %2987 = vmatpush2.msra.mxu0 %v2725_v37  ;;  %v2588_v37 = vld [vmem:[%s6045_s11 + $0x1a0] sm:$0xff] }
 0x2da   : > { %2832 = vmatpush2.msra.mxu1 %v2620_v10  ;;  %2988 = vmatprep.subr.mxu0 %v2723_v34  ;;  %v2707_v34 = vld [vmem:[%s6045_s11 + $0x558] sm:$0xff] }
 0x2db   : > { %v6867_v45 = vpop.f32.mrf.mxu0  ;;  %2281 = vmatmul.mubr.f32.gmra.mxu1 %v6564_v42  ;;  %2833 = vmatprep.subr.mxu1 %v2618_v46  ;;  %v2609_v42 = vld [vmem:[%s6045_s11 + $0x248] sm:$0xff] }
 0x2dc   : > { %2285 = vmatprep.mubr.f32.mxu1 %v6571_v56  ;;  %2834 = vmatpush2.msra.mxu1 %v2617_v36  ;;  %v2608_v56 = vld [vmem:[%s6045_s11 + $0x240] sm:$0xff] }
 0x2dd   : > { %v6875_v3 = vpop.f32.mrf.mxu0  ;;  %2835 = vmatprep.subr.mxu1 %v2615_v16  ;;  %2989 = vmatpush2.msra.mxu0 %v2722_v52  ;;  %v2585_v16 = vld [vmem:[%s6045_s11 + $0x188] sm:$0xff] }
 0x2de   : > { %2836 = vmatpush2.msra.mxu1 %v2614_v31  ;;  %2990 = vmatprep.subr.mxu0 %v2720_v60  ;;  %v2705_v52 = vld [vmem:[%s6045_s11 + $0x548] sm:$0xff]  ;;  %v2584_v60 = vld [vmem:[%s6045_s11 + $0x180] sm:$0xff] }
 0x2df   : > { %v6879_v62 = vpop.f32.mrf.mxu0  ;;  %2286 = vmatmul.mubr.f32.gmra.mxu1 %v6578_v1  ;;  %2837 = vmatprep.subr.mxu1 %v2612_v55 }
 0x2e0   : > { %2290 = vmatprep.mubr.f32.mxu1 %v6585_v13  ;;  %2838 = vmatpush2.msra.mxu1 %v2611_v63  ;;  %v2602_v13 = vld [vmem:[%s6045_s11 + $0x210] sm:$0xff] }
 0x2e1   : > { %v6889_v29 = vpop.f32.mrf.mxu0  ;;  %2839 = vmatprep.subr.mxu1 %v2609_v42  ;;  %2991 = vmatpush2.msra.mxu0 %v2719_v7  ;;  %v2702_v42 = vld [vmem:[%s6045_s11 + $0x530] sm:$0xff] }
 0x2e2   : > { %2840 = vmatpush2.msra.mxu1 %v2608_v56  ;;  %2992 = vmatprep.subr.mxu0 %v2717_v23 }
 0x2e3   : > { %v6893_v1 = vpop.f32.mrf.mxu0  ;;  %2291 = vmatmul.mubr.f32.gmra.mxu1 %v6592_v30  ;;  %2841 = vmatprep.subr.mxu1 %v2606_v4  ;;  %v8504_v30 = vsub.s32 1, %v6885_v12 }
 0x2e4   : > { %2295 = vmatprep.mubr.f32.mxu1 %v6599_v44  ;;  %2842 = vmatpush2.msra.mxu1 %v2605_v5  ;;  %v2713_v44 = vld [vmem:[%s6045_s11 + $0x588] sm:$0xff] }
 0x2e5   : > { %v6902_v11 = vpop.f32.mrf.mxu0  ;;  %2843 = vmatprep.subr.mxu1 %v2603_v28  ;;  %2993 = vmatpush2.msra.mxu0 %v2716_v47  ;;  %v2699_v28 = vld [vmem:[%s6045_s11 + $0x518] sm:$0xff]  ;;  %v2774_v47 = vld [vmem:[%s6045_s11 + $0x770] sm:$0xff] }
 0x2e6   : > { %2844 = vmatpush2.msra.mxu1 %v2602_v13  ;;  %2994 = vmatprep.subr.mxu0 %v2714_v0 }
 0x2e7   : > { %v6910_v41 = vpop.f32.mrf.mxu0  ;;  %2296 = vmatmul.mubr.f32.gmra.mxu1 %v6606_v59  ;;  %2845 = vmatprep.subr.mxu1 %v2600_v15  ;;  %v6929_v59 = vrot.slane %v6906_v20, %v8504_v30  ;;  %v2773_v15 = vld [vmem:[%s6045_s11 + $0x768] sm:$0xff] }
 0x2e8   : > { %2300 = vmatprep.mubr.f32.mxu1 %v6613_v6  ;;  %2846 = vmatpush2.msra.mxu1 %v2599_v51  ;;  %v1588_v35 = vpop.f32.mrf.mxu1  ;;  %v2591_v6 = vld [vmem:[%s6045_s11 + $0x1b8] sm:$0xff] }
 0x2e9   : > { %v6923_v27 = vpop.f32.mrf.mxu0  ;;  %2847 = vmatprep.subr.mxu1 %v2597_v18  ;;  %2995 = vmatpush2.msra.mxu0 %v2713_v44  ;;  %v1589_v54 = vadd.f32 %v1588_v35, %v6918_v24  ;;  %v2696_v44 = vld [vmem:[%s6045_s11 + $0x500] sm:$0xff] }
 0x2ea   : > { %2848 = vmatpush2.msra.mxu1 %v2596_v9  ;;  %2996 = vmatprep.subr.mxu0 %v2711_v22  ;;  %v1590_v57 = vpop.f32.mrf.mxu1  ;;  %v2695_v22 = vld [vmem:[%s6045_s11 + $0x4f8] sm:$0xff] }
 0x2eb   : > { %v6932_v14 = vpop.f32.mrf.mxu0  ;;  %2301 = vmatmul.mubr.f32.gmra.mxu1 %v6620_v25  ;;  %2849 = vmatprep.subr.mxu1 %v2594_v33  ;;  %v1591_v10 = vadd.f32 %v1590_v57, %v6929_v59  ;;  %v2587_v25 = vld [vmem:[%s6045_s11 + $0x198] sm:$0xff]  ;;  %v6948_v46 = vadd.f32 %v6827_v2, %v1589_v54  ;;  %v2704_v2 = vld [vmem:[%s6045_s11 + $0x540] sm:$0xff]  ;;  %v2770_v57 = vld [vmem:[%s6045_s11 + $0x750] sm:$0xff] }
 0x2ec   : > { %2305 = vmatprep.mubr.f32.mxu1 %v6627_v43  ;;  %2850 = vmatpush2.msra.mxu1 %v2593_v38  ;;  %v2771_v54 = vld [vmem:[%s6045_s11 + $0x758] sm:$0xff] }
 0x2ed   : > { %v6941_v17 = vpop.f32.mrf.mxu0  ;;  %2851 = vmatprep.subr.mxu1 %v2591_v6  ;;  %2997 = vmatpush2.msra.mxu0 %v2710_v39  ;;  %v6956_v31 = vadd.f32 %v6831_v61, %v1591_v10  ;;  %v2701_v61 = vld [vmem:[%s6045_s11 + $0x528] sm:$0xff]  ;;  %v8530_v56 = vmax.f32 %v6948_v46, 0.0 }
 0x2ee   : > { %v1594_v43 = vpop.f32.mrf.mxu1  ;;  %2852 = vmatpush2.msra.mxu1 %v2590_v19  ;;  %2998 = vmatprep.subr.mxu0 %v2708_v32  ;;  %v2693_v39 = vld [vmem:[%s6045_s11 + $0x4e8] sm:$0xff] }
 0x2ef   : > { %v6950_v36 = vpop.f32.mrf.mxu0  ;;  %2306 = vmatmul.mubr.f32.gmra.mxu1 %v6633_v58  ;;  %v1595_v53 = vadd.f32 %v1594_v43, %v6918_v24  ;;  %2853 = vmatprep.subr.mxu1 %v2588_v37  ;;  %v8541_v58 = vmax.f32 %v6956_v31, 0.0  ;;  %v2689_v43 = vld [vmem:[%s6045_s11 + $0x4c8] sm:$0xff] }
 0x2f0   : > { %v1596_v63 = vpop.f32.mrf.mxu1  ;;  %2854 = vmatpush2.msra.mxu1 %v2587_v25  ;;  %2999 = vmatpush2.msra.mxu0 %v2707_v34  ;;  %v2690_v25 = vld [vmem:[%s6045_s11 + $0x4d0] sm:$0xff] }
 0x2f1   : > { %v6961_v55 = vpop.f32.mrf.mxu0  ;;  %v1597_v7 = vadd.f32 %v1596_v63, %v6929_v59  ;;  %2855 = vmatprep.subr.mxu1 %v2585_v16  ;;  %3000 = vmatprep.subr.mxu0 %v2705_v52  ;;  %v6969_v23 = vadd.f32 %v6839_v8, %v1595_v53  ;;  %v2698_v8 = vld [vmem:[%s6045_s11 + $0x510] sm:$0xff]  ;;  %v2768_v63 = vld [vmem:[%s6045_s11 + $0x740] sm:$0xff] }
 0x2f2   : > { %v1600_v5 = vpop.f32.mrf.mxu1  ;;  %2856 = vmatpush2.msra.mxu1 %v2584_v60  ;;  %3001 = vmatpush2.msra.mxu0 %v2704_v2  ;;  %v2687_v2 = vld [vmem:[%s6045_s11 + $0x4b8] sm:$0xff] }
 0x2f3   : > { %v6971_v4 = vpop.f32.mrf.mxu0  ;;  %v6976_v13 = vadd.f32 %v6843_v48, %v1597_v7  ;;  %v1601_v0 = vadd.f32 %v1600_v5, %v6918_v24  ;;  %2857 = vmatprep.mubr.f32.mxu1 %v8541_v58  ;;  %3002 = vmatprep.subr.mxu0 %v2702_v42  ;;  %v8527_v33 = vmax.f32 %v6969_v23, 0.0  ;;  %v2577_v58 = vld [vmem:[%s6045_s11 + $0x148] sm:$0xff] }
 0x2f4   : > { %v1602_v18 = vpop.f32.mrf.mxu1  ;;  %2858 = vmatmul.mubr.f32.vlgmr.msra.gmra.mxu1 %v8530_v56  ;;  %3003 = vmatpush2.msra.mxu0 %v2701_v61  ;;  %v2767_v61 = vld [vmem:[%s6045_s11 + $0x738] sm:$0xff] }
 0x2f5   : > { %v6983_v51 = vpop.f32.mrf.mxu0  ;;  %v1603_v48 = vadd.f32 %v1602_v18, %v6929_v59  ;;  %v8528_v9 = vmax.f32 %v6976_v13, 0.0  ;;  %3004 = vmatprep.subr.mxu0 %v2699_v28  ;;  %3115 = vmatprep.subr.mxu1 %v2774_v47  ;;  %v6993_v38 = vadd.f32 %v6851_v21, %v1601_v0  ;;  %v2692_v21 = vld [vmem:[%s6045_s11 + $0x4e0] sm:$0xff] }
 0x2f6   : > { %v1606_v6 = vpop.f32.mrf.mxu1  ;;  %3005 = vmatpush2.msra.mxu0 %v2698_v8  ;;  %3116 = vmatpush1.msra.mxu1 %v2773_v15  ;;  %v2684_v47 = vld [vmem:[%s6045_s11 + $0x4a0] sm:$0xff]  ;;  %v2683_v8 = vld [vmem:[%s6045_s11 + $0x498] sm:$0xff] }
 0x2f7   : > { %v6995_v35 = vpop.f32.mrf.mxu0  ;;  %v7000_v19 = vadd.f32 %v6855_v26, %v1603_v48  ;;  %v1607_v32 = vadd.f32 %v1606_v6, %v6918_v24  ;;  %2863 = vmatprep.mubr.f32.mxu1 %v8528_v9  ;;  %3006 = vmatprep.subr.mxu0 %v2696_v44  ;;  %v8523_v16 = vmax.f32 %v6993_v38, 0.0  ;;  %v2765_v6 = vld [vmem:[%s6045_s11 + $0x728] sm:$0xff] }
 0x2f8   : > { %v1608_v10 = vpop.f32.mrf.mxu1  ;;  %2864 = vmatmul.mubr.f32.gmra.mxu1 %v8527_v33  ;;  %3007 = vmatpush2.msra.mxu0 %v2695_v22  ;;  %v2681_v22 = vld [vmem:[%s6045_s11 + $0x488] sm:$0xff] }
 0x2f9   : > { %v7007_v37 = vpop.f32.mrf.mxu0  ;;  %v1609_v26 = vadd.f32 %v1608_v10, %v6929_v59  ;;  %v8525_v34 = vmax.f32 %v7000_v19, 0.0  ;;  %3008 = vmatprep.subr.mxu0 %v2693_v39  ;;  %3117 = vmatprep.subr.mxu1 %v2771_v54  ;;  %v7017_v52 = vadd.f32 %v6863_v50, %v1607_v32  ;;  %v2686_v50 = vld [vmem:[%s6045_s11 + $0x4b0] sm:$0xff]  ;;  %v2764_v32 = vld [vmem:[%s6045_s11 + $0x720] sm:$0xff] }
 0x2fa   : > { %v1612_v60 = vpop.f32.mrf.mxu1  ;;  %3009 = vmatpush2.msra.mxu0 %v2692_v21  ;;  %3118 = vmatpush1.msra.mxu1 %v2770_v57  ;;  %v2762_v10 = vld [vmem:[%s6045_s11 + $0x710] sm:$0xff] }
 0x2fb   : > { %v7019_v53 = vpop.f32.mrf.mxu0  ;;  %v7024_v42 = vadd.f32 %v6867_v45, %v1609_v26  ;;  %v1613_v7 = vadd.f32 %v1612_v60, %v6918_v24  ;;  %2869 = vmatprep.mubr.f32.mxu1 %v8525_v34  ;;  %3010 = vmatprep.subr.mxu0 %v2690_v25  ;;  %v8516_v15 = vmax.f32 %v7017_v52, 0.0  ;;  %v2631_v26 = vld [vmem:[%s6045_s11 + $0x2f8] sm:$0xff] }
 0x2fc   : > { %v1614_v28 = vpop.f32.mrf.mxu1  ;;  %2870 = vmatmul.mubr.f32.gmra.mxu1 %v8523_v16  ;;  %3011 = vmatpush2.msra.mxu0 %v2689_v43 }
 0x2fd   : > { %v7031_v5 = vpop.f32.mrf.mxu0  ;;  %v1615_v45 = vadd.f32 %v1614_v28, %v6929_v59  ;;  %v8518_v0 = vmax.f32 %v7024_v42, 0.0  ;;  %3012 = vmatprep.subr.mxu0 %v2687_v2  ;;  %3119 = vmatprep.subr.mxu1 %v2768_v63  ;;  %v7041_v18 = vadd.f32 %v6875_v3, %v1613_v7  ;;  %v2680_v3 = vld [vmem:[%s6045_s11 + $0x480] sm:$0xff]  ;;  %v2761_v7 = vld [vmem:[%s6045_s11 + $0x708] sm:$0xff]  ;;  %v2759_v28 = vld [vmem:[%s6045_s11 + $0x6f8] sm:$0xff] }
 0x2fe   : > { %v1618_v48 = vpop.f32.mrf.mxu1  ;;  %3013 = vmatpush2.msra.mxu0 %v2686_v50  ;;  %3120 = vmatpush1.msra.mxu1 %v2767_v61 }
 0x2ff   : > { %v7043_v44 = vpop.f32.mrf.mxu0  ;;  %v7048_v39 = vadd.f32 %v6879_v62, %v1615_v45  ;;  %v1619_v54 = vadd.f32 %v1618_v48, %v6918_v24  ;;  %2875 = vmatprep.mubr.f32.mxu1 %v8518_v0  ;;  %3014 = vmatprep.subr.mxu0 %v2684_v47  ;;  %v8512_v43 = vmax.f32 %v7041_v18, 0.0  ;;  %v2758_v45 = vld [vmem:[%s6045_s11 + $0x6f0] sm:$0xff]  ;;  %v2756_v48 = vld [vmem:[%s6045_s11 + $0x6e0] sm:$0xff] }
 0x300   : > { %v1620_v57 = vpop.f32.mrf.mxu1  ;;  %2876 = vmatmul.mubr.f32.gmra.mxu1 %v8516_v15  ;;  %3015 = vmatpush2.msra.mxu0 %v2683_v8 }
 0x301   : > { %v7055_v21 = vpop.f32.mrf.mxu0  ;;  %v1621_v62 = vadd.f32 %v1620_v57, %v6929_v59  ;;  %v8515_v25 = vmax.f32 %v7048_v39, 0.0  ;;  %3016 = vmatprep.subr.mxu0 %v2681_v22  ;;  %3121 = vmatprep.subr.mxu1 %v2765_v6  ;;  %v7065_v60 = vadd.f32 %v6889_v29, %v1619_v54 }
 0x302   : > { %v1624_v63 = vpop.f32.mrf.mxu1  ;;  %3017 = vmatpush2.msra.mxu0 %v2680_v3  ;;  %3122 = vmatpush1.msra.mxu1 %v2764_v32  ;;  %v2755_v32 = vld [vmem:[%s6045_s11 + $0x6d8] sm:$0xff] }
 0x303   : > { %v7067_v2 = vpop.f32.mrf.mxu0  ;;  %v7071_v50 = vadd.f32 %v6893_v1, %v1621_v62  ;;  %v1625_v61 = vadd.f32 %v1624_v63, %v6918_v24  ;;  %2881 = vmatprep.mubr.f32.mxu1 %v8515_v25  ;;  %3123 = vmatprep.subr.mxu1 %v2762_v10  ;;  %v8510_v22 = vmax.f32 %v7065_v60, 0.0  ;;  %v2753_v62 = vld [vmem:[%s6045_s11 + $0x6c8] sm:$0xff]  ;;  %v2752_v63 = vld [vmem:[%s6045_s11 + $0x6c0] sm:$0xff] }
 0x304   : > { %v1626_v47 = vpop.f32.mrf.mxu1  ;;  %2882 = vmatmul.mubr.f32.gmra.mxu1 %v8512_v43  ;;  %4692 = vmatprep.subr.mxu0 %v2631_v26 }
 0x305   : > { %v7077_v29 = vpop.f32.mrf.mxu0  ;;  %v1627_v1 = vadd.f32 %v1626_v47, %v6929_v59  ;;  %v8511_v8 = vmax.f32 %v7071_v50, 0.0  ;;  %3124 = vmatpush1.msra.mxu1 %v2761_v7  ;;  %v7087_v6 = vadd.f32 %v6902_v11, %v1625_v61  ;;  %v2750_v61 = vld [vmem:[%s6045_s11 + $0x6b0] sm:$0xff] }
 0x306   : > { %v1630_v3 = vpop.f32.mrf.mxu1  ;;  %3125 = vmatprep.subr.mxu1 %v2759_v28 }
 0x307   : > { %v7089_v54 = vpop.f32.mrf.mxu0  ;;  %v7093_v57 = vadd.f32 %v6910_v41, %v1627_v1  ;;  %v1631_v10 = vadd.f32 %v1630_v3, %v6918_v24  ;;  %2887 = vmatprep.mubr.f32.mxu1 %v8511_v8  ;;  %3126 = vmatpush1.msra.mxu1 %v2758_v45  ;;  %v8506_v28 = vmax.f32 %v7087_v6, 0.0 }
 0x308   : > { %v1632_v11 = vpop.f32.mrf.mxu1  ;;  %2888 = vmatmul.mubr.f32.gmra.mxu1 %v8510_v22  ;;  %3127 = vmatprep.subr.mxu1 %v2756_v48  ;;  %v2749_v48 = vld [vmem:[%s6045_s11 + $0x6a8] sm:$0xff] }
 0x309   : > { %v7099_v26 = vpop.f32.mrf.mxu0  ;;  %v1633_v41 = vadd.f32 %v1632_v11, %v6929_v59  ;;  %v8507_v7 = vmax.f32 %v7093_v57, 0.0  ;;  %3128 = vmatpush1.msra.mxu1 %v2755_v32  ;;  %v7109_v47 = vadd.f32 %v6923_v27, %v1631_v10  ;;  %v2747_v32 = vld [vmem:[%s6045_s11 + $0x698] sm:$0xff]  ;;  %v2746_v27 = vld [vmem:[%s6045_s11 + $0x690] sm:$0xff] }
 0x30a   : > { %v1636_v1 = vpop.f32.mrf.mxu1  ;;  %3129 = vmatprep.subr.mxu1 %v2753_v62 }
 0x30b   : > { %v7111_v45 = vpop.f32.mrf.mxu0  ;;  %v7115_v3 = vadd.f32 %v6932_v14, %v1633_v41  ;;  %v1637_v11 = vadd.f32 %v1636_v1, %v6918_v24  ;;  %2893 = vmatprep.mubr.f32.mxu1 %v8507_v7  ;;  %3130 = vmatpush1.msra.mxu1 %v2752_v63  ;;  %v2744_v41 = vld [vmem:[%s6045_s11 + $0x680] sm:$0xff]  ;;  %v8509_v1 = vmax.f32 %v7109_v47, 0.0 }
 0x30c   : > { %v1638_v30 = vpop.f32.mrf.mxu1  ;;  %2894 = vmatmul.mubr.f32.gmra.mxu1 %v8506_v28  ;;  %3131 = vmatprep.subr.mxu1 %v2750_v61 }
 0x30d   : > { %v7124_v10 = vpop.f32.mrf.mxu0  ;;  %v1639_v14 = vadd.f32 %v1638_v30, %v6929_v59  ;;  %v8508_v62 = vmax.f32 %v7115_v3, 0.0  ;;  %3132 = vmatpush1.msra.mxu1 %v2749_v48  ;;  %v7131_v63 = vadd.f32 %v6941_v17, %v1637_v11  ;;  %v2741_v30 = vld [vmem:[%s6045_s11 + $0x668] sm:$0xff]  ;;  %v2740_v17 = vld [vmem:[%s6045_s11 + $0x660] sm:$0xff] }
 0x30e   : > { %3133 = vmatprep.subr.mxu1 %v2747_v32 }
 0x30f   : > { %v7135_v61 = vadd.f32 %v6950_v36, %v1639_v14  ;;  %v7137_v28 = vpop.f32.mrf.mxu0  ;;  %v1642_v7 = vpop.f32.mrf.mxu1  ;;  %2899 = vmatprep.mubr.f32.mxu1 %v8508_v62  ;;  %3134 = vmatpush1.msra.mxu1 %v2746_v27  ;;  %v2738_v14 = vld [vmem:[%s6045_s11 + $0x650] sm:$0xff]  ;;  %v8514_v62 = vmax.f32 %v7131_v63, 0.0 }
 0x310   : > { %v1643_v48 = vadd.f32 %v1642_v7, %v6918_v24  ;;  %2900 = vmatmul.mubr.f32.gmra.mxu1 %v8509_v1  ;;  %3135 = vmatprep.subr.mxu1 %v2744_v41  ;;  %v2737_v7 = vld [vmem:[%s6045_s11 + $0x648] sm:$0xff] }
 0x311   : > { %v7146_v11 = vpop.f32.mrf.mxu0  ;;  %v1644_v36 = vpop.f32.mrf.mxu1  ;;  %v8513_v32 = vmax.f32 %v7135_v61, 0.0  ;;  %3136 = vmatpush1.msra.mxu1 %v2743_v40  ;;  %v2735_v40 = vld [vmem:[%s6045_s11 + $0x638] sm:$0xff] }
 0x312   : > { %v1645_v27 = vadd.f32 %v1644_v36, %v6929_v59  ;;  %3137 = vmatprep.subr.mxu1 %v2741_v30  ;;  %v7154_v1 = vadd.f32 %v6961_v55, %v1643_v48  ;;  %v2734_v55 = vld [vmem:[%s6045_s11 + $0x630] sm:$0xff]  ;;  %v2732_v36 = vld [vmem:[%s6045_s11 + $0x620] sm:$0xff] }
 0x313   : > { %v7156_v41 = vpop.f32.mrf.mxu0  ;;  %v1648_v22 = vpop.f32.mrf.mxu1  ;;  %2905 = vmatprep.mubr.f32.mxu1 %v8513_v32  ;;  %3138 = vmatpush1.msra.mxu1 %v2740_v17 }
 0x314   : > { %v7162_v8 = vadd.f32 %v6971_v4, %v1645_v27  ;;  %v1649_v43 = vadd.f32 %v1648_v22, %v6918_v24  ;;  %2906 = vmatmul.mubr.f32.gmra.mxu1 %v8514_v62  ;;  %3139 = vmatprep.subr.mxu1 %v2738_v14  ;;  %v8519_v4 = vmax.f32 %v7154_v1, 0.0  ;;  %v2731_v62 = vld [vmem:[%s6045_s11 + $0x618] sm:$0xff] }
 0x315   : > { %v7168_v30 = vpop.f32.mrf.mxu0  ;;  %v1650_v48 = vpop.f32.mrf.mxu1  ;;  %3140 = vmatpush1.msra.mxu1 %v2737_v7 }
 0x316   : > { %v1651_v17 = vadd.f32 %v1650_v48, %v6929_v59  ;;  %v8517_v32 = vmax.f32 %v7162_v8, 0.0  ;;  %3141 = vmatprep.subr.mxu1 %v2735_v40  ;;  %v7175_v22 = vadd.f32 %v6983_v51, %v1649_v43  ;;  %v2729_v40 = vld [vmem:[%s6045_s11 + $0x608] sm:$0xff]  ;;  %v2728_v43 = vld [vmem:[%s6045_s11 + $0x600] sm:$0xff] }
 0x317   : > { %v7177_v27 = vpop.f32.mrf.mxu0  ;;  %v1654_v14 = vpop.f32.mrf.mxu1  ;;  %3142 = vmatpush1.msra.mxu1 %v2734_v55 }
 0x318   : > { %v7181_v7 = vadd.f32 %v6995_v35, %v1651_v17  ;;  %v1655_v48 = vadd.f32 %v1654_v14, %v6918_v24  ;;  %2911 = vmatprep.mubr.f32.mxu1 %v8517_v32  ;;  %3143 = vmatprep.subr.mxu1 %v2732_v36  ;;  %v2727_v35 = vld [vmem:[%s6045_s11 + $0x5f8] sm:$0xff]  ;;  %v8521_v17 = vmax.f32 %v7175_v22, 0.0 }
 0x319   : > { %v7187_v25 = vpop.f32.mrf.mxu0  ;;  %v1656_v51 = vpop.f32.mrf.mxu1  ;;  %2912 = vmatmul.mubr.f32.gmra.mxu1 %v8519_v4 }
 0x31a   : > { %v1657_v55 = vadd.f32 %v1656_v51, %v6929_v59  ;;  %v8520_v15 = vmax.f32 %v7181_v7, 0.0  ;;  %3144 = vmatpush1.msra.mxu1 %v2731_v62  ;;  %v7197_v14 = vadd.f32 %v7007_v37, %v1655_v48 }
 0x31b   : > { %v7199_v36 = vpop.f32.mrf.mxu0  ;;  %v1660_v32 = vpop.f32.mrf.mxu1  ;;  %3145 = vmatprep.subr.mxu1 %v2729_v40 }
 0x31c   : > { %v7202_v0 = vadd.f32 %v7019_v53, %v1657_v55  ;;  %v1661_v4 = vadd.f32 %v1660_v32, %v6918_v24  ;;  %2917 = vmatprep.mubr.f32.mxu1 %v8520_v15  ;;  %3146 = vmatpush1.msra.mxu1 %v2728_v43  ;;  %v8524_v53 = vmax.f32 %v7197_v14, 0.0 }
 0x31d   : > { %v7207_v62 = vpop.f32.mrf.mxu0  ;;  %v1662_v51 = vpop.f32.mrf.mxu1  ;;  %2918 = vmatmul.mubr.f32.gmra.mxu1 %v8521_v17  ;;  %4772 = vmatprep.subr.mxu1 %v2727_v35 }
 0x31e   : > { %v1663_v37 = vadd.f32 %v1662_v51, %v6929_v59  ;;  %v8522_v48 = vmax.f32 %v7202_v0, 0.0  ;;  %v7215_v40 = vadd.f32 %v7031_v5, %v1661_v4 }
 0x31f   : > { %v7217_v32 = vpop.f32.mrf.mxu0  ;;  %v1666_v55 = vpop.f32.mrf.mxu1 }
 0x320   : > { %v7220_v43 = vadd.f32 %v7043_v44, %v1663_v37  ;;  %v1667_v15 = vadd.f32 %v1666_v55, %v6918_v24  ;;  %2923 = vmatprep.mubr.f32.mxu1 %v8522_v48  ;;  %v8529_v17 = vmax.f32 %v7215_v40, 0.0 }
 0x321   : > { %v7225_v35 = vpop.f32.mrf.mxu0  ;;  %v1668_v51 = vpop.f32.mrf.mxu1  ;;  %2924 = vmatmul.mubr.f32.gmra.mxu1 %v8524_v53 }
 0x322   : > { %v1669_v5 = vadd.f32 %v1668_v51, %v6929_v59  ;;  %v8526_v4 = vmax.f32 %v7220_v43, 0.0  ;;  %v7233_v44 = vadd.f32 %v7055_v21, %v1667_v15  ;;  %v8531_v51 = vsub.s32 2, %v6885_v12 }
 0x323   : > { %v7235_v37 = vpop.f32.mrf.mxu0  ;;  %v1672_v55 = vpop.f32.mrf.mxu1 }
 0x324   : > { %v7238_v48 = vadd.f32 %v7067_v2, %v1669_v5  ;;  %v1673_v16 = vadd.f32 %v1672_v55, %v6918_v24  ;;  %2929 = vmatprep.mubr.f32.mxu1 %v8526_v4  ;;  %v1511_v2 = vsub.s32 3, %v6885_v12  ;;  %v8537_v5 = vmax.f32 %v7233_v44, 0.0 }
 0x325   : > { %v7244_v53 = vpop.f32.mrf.mxu0  ;;  %v1674_v34 = vpop.f32.mrf.mxu1  ;;  %2930 = vmatmul.mubr.f32.gmra.mxu1 %v8529_v17 }
 0x326   : > { %v1675_v15 = vadd.f32 %v1674_v34, %v6929_v59  ;;  %v8532_v21 = vmax.f32 %v7238_v48, 0.0  ;;  %v7253_v55 = vadd.f32 %v7077_v29, %v1673_v16  ;;  %v7264_v34 = vrot.slane %v6906_v20, %v8531_v51 }
 0x327   : > { %v1678_v4 = vpop.f32.mrf.mxu1  ;;  %v7266_v17 = vpop.f32.mrf.mxu0 }
 0x328   : > { %v7256_v33 = vadd.f32 %v7089_v54, %v1675_v15  ;;  %v1679_v9 = vadd.f32 %v1678_v4, %v6918_v24  ;;  %2935 = vmatprep.mubr.f32.mxu1 %v8532_v21  ;;  %v7273_v24 = vrot.slane %v6906_v20, %v1511_v2  ;;  %v8533_v54 = vmax.f32 %v7253_v55, 0.0 }
 0x329   : > { %v1680_v56 = vpop.f32.mrf.mxu1  ;;  %2936 = vmatmul.mubr.f32.gmra.mxu1 %v8537_v5 }
 0x32a   : > { %v1681_v16 = vadd.f32 %v1680_v56, %v6929_v59  ;;  %v8535_v29 = vmax.f32 %v7256_v33, 0.0  ;;  %v7277_v4 = vadd.f32 %v7099_v26, %v1679_v9  ;;  %v7285_v59 = vpop.f32.mrf.mxu0 }
 0x32b   : > { %v1910_v15 = vpop.f32.mrf.mxu1 }
 0x32c   : > { %v7280_v51 = vadd.f32 %v7111_v45, %v1681_v16  ;;  %v1911_v21 = vadd.f32 %v1910_v15, %v7264_v34  ;;  %2941 = vmatprep.mubr.f32.mxu1 %v8535_v29  ;;  %v8536_v26 = vmax.f32 %v7277_v4, 0.0 }
 0x32d   : > { %v1912_v56 = vpop.f32.mrf.mxu1  ;;  %2942 = vmatmul.mubr.f32.gmra.mxu1 %v8533_v54  ;;  %v7301_v54 = vpop.f32.mrf.mxu0 }
 0x32e   : > { %v1913_v20 = vadd.f32 %v1912_v56, %v7273_v24  ;;  %v8534_v9 = vmax.f32 %v7280_v51, 0.0  ;;  %v7293_v45 = vadd.f32 %v7124_v10, %v1911_v21 }
 0x32f   : > { %v1916_v2 = vpop.f32.mrf.mxu1 }
 0x330   : > { %8654 = vst [vmem:[#allocation42_spill] sm:$0xff] %v7293_v45  ;;  %v7296_v16 = vadd.f32 %v7137_v28, %v1913_v20  ;;  %v1917_v15 = vadd.f32 %v1916_v2, %v7264_v34  ;;  %2947 = vmatprep.mubr.f32.mxu1 %v8534_v9  ;;  %v8543_v28 = vmax.f32 %v7293_v45, 0.0  ;;  %v2583_v2 = vld [vmem:[%s6045_s11 + $0x178] sm:$0xff] }
 0x331   : > { %v1918_v56 = vpop.f32.mrf.mxu1  ;;  %2948 = vmatmul.mubr.f32.gmra.mxu1 %v8536_v26  ;;  %v7319_v26 = vpop.f32.mrf.mxu0 }
 0x332   : > { %8655 = vst [vmem:[#allocation43_spill] sm:$0xff] %v7296_v16  ;;  %v1919_v10 = vadd.f32 %v1918_v56, %v7273_v24  ;;  %v8540_v21 = vmax.f32 %v7296_v16, 0.0  ;;  %3179 = vmatprep.mubr.f32.mxu1 %v8538_v49  ;;  %v7310_v20 = vadd.f32 %v7146_v11, %v1917_v15  ;;  %v2628_v56 = vld [vmem:[%s6045_s11 + $0x2e0] sm:$0xff] }
 0x333   : > { %v2580_v11 = vld [vmem:[%s6045_s11 + $0x160] sm:$0xff] }
 0x334   : > { %v7314_v9 = vadd.f32 %v7156_v41, %v1919_v10  ;;  %v1922_v29 = vpop.f32.mrf.mxu1  ;;  %3018 = vmatprep.mubr.f32.mxu0 %v8540_v21  ;;  %v2625_v41 = vld [vmem:[%s6045_s11 + $0x2c8] sm:$0xff]  ;;  %v8657_v45 = vmax.f32 %v7310_v20, 0.0 }
 0x335   : > { %v1923_v5 = vadd.f32 %v1922_v29, %v7264_v34  ;;  %3019 = vmatmul.mubr.f32.vlgmr.msra.gmra.mxu0 %v8543_v28  ;;  %v2622_v29 = vld [vmem:[%s6045_s11 + $0x2b0] sm:$0xff]  ;;  %v7336_v28 = vpop.f32.mrf.mxu0 }
 0x336   : > { %v1924_v15 = vpop.f32.mrf.mxu1  ;;  %v8545_v49 = vmax.f32 %v7314_v9, 0.0  ;;  %4693 = vmatpush3.msra.mxu0 %v2583_v2 }
 0x337   : > { %v1925_v21 = vadd.f32 %v1924_v15, %v7273_v24  ;;  %4694 = vmatprep.subr.mxu0 %v2628_v56  ;;  %v7331_v16 = vadd.f32 %v7168_v30, %v1923_v5  ;;  %v2574_v56 = vld [vmem:[%s6045_s11 + $0x130] sm:$0xff]  ;;  %v2619_v5 = vld [vmem:[%s6045_s11 + $0x298] sm:$0xff] }
 0x338   : > { %3024 = vmatprep.mubr.f32.mxu0 %v8545_v49  ;;  %4695 = vmatpush3.msra.mxu0 %v2580_v11  ;;  %v2571_v49 = vld [vmem:[%s6045_s11 + $0x118] sm:$0xff] }
 0x339   : > { %8656 = vst [vmem:[#allocation44_spill] sm:$0xff] %v7331_v16  ;;  %v7339_v2 = vadd.f32 %v7177_v27, %v1925_v21  ;;  %v1928_v10 = vpop.f32.mrf.mxu1  ;;  %3025 = vmatmul.mubr.f32.gmra.mxu0 %v8657_v45  ;;  %4696 = vmatprep.subr.mxu0 %v2625_v41  ;;  %v8547_v27 = vmax.f32 %v7331_v16, 0.0  ;;  %v7350_v45 = vpop.f32.mrf.mxu0 }
 0x33a   : > { %v1929_v30 = vadd.f32 %v1928_v10, %v7264_v34  ;;  %4697 = vmatpush3.msra.mxu0 %v2577_v58  ;;  %v2616_v58 = vld [vmem:[%s6045_s11 + $0x280] sm:$0xff] }
 0x33b   : > { %v1930_v11 = vpop.f32.mrf.mxu1  ;;  %v8546_v15 = vmax.f32 %v7339_v2, 0.0  ;;  %4698 = vmatprep.subr.mxu0 %v2622_v29 }
 0x33c   : > { %v1931_v21 = vadd.f32 %v1930_v11, %v7273_v24  ;;  %4699 = vmatpush3.msra.mxu0 %v2574_v56  ;;  %v7353_v41 = vadd.f32 %v7187_v25, %v1929_v30  ;;  %v2568_v56 = vld [vmem:[%s6045_s11 + $0x100] sm:$0xff]  ;;  %v2613_v25 = vld [vmem:[%s6045_s11 + $0x268] sm:$0xff] }
 0x33d   : > { %3030 = vmatprep.mubr.f32.mxu0 %v8546_v15  ;;  %4700 = vmatprep.subr.mxu0 %v2619_v5  ;;  %v7367_v5 = vpop.f32.mrf.mxu0 }
 0x33e   : > { %8658 = vst [vmem:[#allocation45_spill] sm:$0xff] %v7353_v41  ;;  %v7359_v10 = vadd.f32 %v7199_v36, %v1931_v21  ;;  %v1934_v29 = vpop.f32.mrf.mxu1  ;;  %3031 = vmatmul.mubr.f32.gmra.mxu0 %v8547_v27  ;;  %v8550_v36 = vmax.f32 %v7353_v41, 0.0  ;;  %v2565_v27 = vld [vmem:[%s6045_s11 + $0xe8] sm:$0xff] }
 0x33f   : > { %v1935_v11 = vadd.f32 %v1934_v29, %v7264_v34  ;;  %4701 = vmatpush3.msra.mxu0 %v2571_v49  ;;  %v2610_v49 = vld [vmem:[%s6045_s11 + $0x250] sm:$0xff] }
 0x340   : > { %v1936_v30 = vpop.f32.mrf.mxu1  ;;  %v8549_v15 = vmax.f32 %v7359_v10, 0.0  ;;  %4702 = vmatprep.subr.mxu0 %v2616_v58 }
 0x341   : > { %v1937_v21 = vadd.f32 %v1936_v30, %v7273_v24  ;;  %4703 = vmatpush3.msra.mxu0 %v2568_v56  ;;  %v7373_v16 = vadd.f32 %v7207_v62, %v1935_v11  ;;  %v2562_v30 = vld [vmem:[%s6045_s11 + $0xd0] sm:$0xff]  ;;  %v2607_v62 = vld [vmem:[%s6045_s11 + $0x238] sm:$0xff]  ;;  %v7386_v11 = vpop.f32.mrf.mxu0 }
 0x342   : > { %3036 = vmatprep.mubr.f32.mxu0 %v8549_v15  ;;  %4704 = vmatprep.subr.mxu0 %v2613_v25 }
 0x343   : > { %8659 = vst [vmem:[#allocation46_spill] sm:$0xff] %v7373_v16  ;;  %v7379_v58 = vadd.f32 %v7217_v32, %v1937_v21  ;;  %v1940_v29 = vpop.f32.mrf.mxu1  ;;  %3037 = vmatmul.mubr.f32.gmra.mxu0 %v8550_v36  ;;  %v8553_v32 = vmax.f32 %v7373_v16, 0.0  ;;  %v2559_v36 = vld [vmem:[%s6045_s11 + $0xb8] sm:$0xff] }
 0x344   : > { %v1941_v56 = vadd.f32 %v1940_v29, %v7264_v34  ;;  %4705 = vmatpush3.msra.mxu0 %v2565_v27  ;;  %v2604_v27 = vld [vmem:[%s6045_s11 + $0x220] sm:$0xff] }
 0x345   : > { %8660 = vst [vmem:[#allocation47_spill] sm:$0xff] %v7379_v58  ;;  %v1942_v15 = vpop.f32.mrf.mxu1  ;;  %v8552_v25 = vmax.f32 %v7379_v58, 0.0  ;;  %4706 = vmatprep.subr.mxu0 %v2610_v49 }
 0x346   : > { %v1943_v21 = vadd.f32 %v1942_v15, %v7273_v24  ;;  %4707 = vmatpush3.msra.mxu0 %v2562_v30  ;;  %v7393_v41 = vadd.f32 %v7225_v35, %v1941_v56  ;;  %v2556_v15 = vld [vmem:[%s6045_s11 + $0xa0] sm:$0xff]  ;;  %v7404_v30 = vpop.f32.mrf.mxu0  ;;  %v2601_v56 = vld [vmem:[%s6045_s11 + $0x208] sm:$0xff] }
 0x347   : > { %3042 = vmatprep.mubr.f32.mxu0 %v8552_v25  ;;  %4708 = vmatprep.subr.mxu0 %v2607_v62 }
 0x348   : > { %8661 = vst [vmem:[#allocation48_spill] sm:$0xff] %v7393_v41  ;;  %v7399_v29 = vadd.f32 %v7235_v37, %v1943_v21  ;;  %v1946_v49 = vpop.f32.mrf.mxu1  ;;  %3043 = vmatmul.mubr.f32.gmra.mxu0 %v8553_v32  ;;  %v8558_v37 = vmax.f32 %v7393_v41, 0.0  ;;  %v2553_v32 = vld [vmem:[%s6045_s11 + $0x88] sm:$0xff] }
 0x349   : > { %v1947_v35 = vadd.f32 %v1946_v49, %v7264_v34  ;;  %4709 = vmatpush3.msra.mxu0 %v2559_v36  ;;  %v2598_v36 = vld [vmem:[%s6045_s11 + $0x1f0] sm:$0xff]  ;;  %v7418_v49 = vpop.f32.mrf.mxu0 }
 0x34a   : > { %v1948_v25 = vpop.f32.mrf.mxu1  ;;  %v8556_v62 = vmax.f32 %v7399_v29, 0.0  ;;  %4710 = vmatprep.subr.mxu0 %v2604_v27 }
 0x34b   : > { %v1949_v21 = vadd.f32 %v1948_v25, %v7273_v24  ;;  %4711 = vmatpush3.msra.mxu0 %v2556_v15  ;;  %v7413_v16 = vadd.f32 %v7244_v53, %v1947_v35  ;;  %v2550_v25 = vld [vmem:[%s6045_s11 + $0x70] sm:$0xff]  ;;  %v2595_v15 = vld [vmem:[%s6045_s11 + $0x1d8] sm:$0xff]  ;;  %v7432_v41 = vpop.f32.mrf.mxu0 }
 0x34c   : > { %3048 = vmatprep.mubr.f32.mxu0 %v8556_v62  ;;  %4712 = vmatprep.subr.mxu0 %v2601_v56 }
 0x34d   : > { %8662 = vst [vmem:[#allocation49_spill] sm:$0xff] %v7413_v16  ;;  %v7421_v27 = vadd.f32 %v7266_v17, %v1949_v21  ;;  %v1952_v58 = vpop.f32.mrf.mxu1  ;;  %3049 = vmatmul.mubr.f32.gmra.mxu0 %v8558_v37  ;;  %v8560_v62 = vmax.f32 %v7413_v16, 0.0  ;;  %v2547_v21 = vld [vmem:[%s6045_s11 + $0x58] sm:$0xff] }
 0x34e   : > { %v1953_v53 = vadd.f32 %v1952_v58, %v7264_v34  ;;  %4713 = vmatpush3.msra.mxu0 %v2553_v32  ;;  %v2592_v58 = vld [vmem:[%s6045_s11 + $0x1c0] sm:$0xff] }
 0x34f   : > { %8663 = vst [vmem:[#allocation50_spill] sm:$0xff] %v7421_v27  ;;  %v1954_v35 = vpop.f32.mrf.mxu1  ;;  %v8559_v56 = vmax.f32 %v7421_v27, 0.0  ;;  %4714 = vmatprep.subr.mxu0 %v2598_v36  ;;  %v2544_v36 = vld [vmem:[%s6045_s11 + $0x40] sm:$0xff] }
 0x350   : > { %v1955_v17 = vadd.f32 %v1954_v35, %v7273_v24  ;;  %4715 = vmatpush3.msra.mxu0 %v2550_v25  ;;  %v7435_v37 = vadd.f32 %v7285_v59, %v1953_v53  ;;  %v2589_v35 = vld [vmem:[%s6045_s11 + $0x1a8] sm:$0xff] }
 0x351   : > { %3054 = vmatprep.mubr.f32.mxu0 %v8559_v56  ;;  %4716 = vmatprep.subr.mxu0 %v2595_v15  ;;  %v2143_v56 = vpop.f32.mrf.mxu0 }
 0x352   : > { %v7441_v32 = vadd.f32 %v7301_v54, %v1955_v17  ;;  %3055 = vmatmul.mubr.f32.gmra.mxu0 %v8560_v62  ;;  %v8565_v15 = vmax.f32 %v7435_v37, 0.0  ;;  %v2541_v17 = vld [vmem:[%s6045_s11 + $0x28] sm:$0xff] }
 0x353   : > { %v1958_v25 = vpop.f32.mrf.mxu1  ;;  %4717 = vmatpush3.msra.mxu0 %v2547_v21  ;;  %v2586_v21 = vld [vmem:[%s6045_s11 + $0x190] sm:$0xff] }
 0x354   : > { %8664 = vst [vmem:[#allocation51_spill] sm:$0xff] %v7441_v32  ;;  %v1959_v59 = vadd.f32 %v1958_v25, %v7264_v34  ;;  %v8564_v53 = vmax.f32 %v7441_v32, 0.0  ;;  %4718 = vmatprep.subr.mxu0 %v2592_v58  ;;  %v2538_v58 = vld [vmem:[%s6045_s11 + $0x10] sm:$0xff]  ;;  %v2145_v32 = vpop.f32.mrf.mxu0 }
 0x355   : > { %v1960_v54 = vpop.f32.mrf.mxu1  ;;  %4719 = vmatpush3.msra.mxu0 %v2544_v36 }
 0x356   : > { %v1961_v62 = vadd.f32 %v1960_v54, %v7273_v24  ;;  %3060 = vmatprep.mubr.f32.mxu0 %v8564_v53  ;;  %4720 = vmatprep.subr.mxu0 %v2589_v35  ;;  %v7456_v16 = vadd.f32 %v7319_v26, %v1959_v59  ;;  %v7466_v54 = vld [vmem:[%s6045_s11 + $0x778] sm:$0xff] }
 0x357   : > { %v1964_v25 = vpop.f32.mrf.mxu1  ;;  %3061 = vmatmul.mubr.f32.gmra.mxu0 %v8565_v15 }
 0x358   : > { %8665 = vst [vmem:[#allocation52_spill] sm:$0xff] %v7456_v16  ;;  %v7462_v27 = vadd.f32 %v7336_v28, %v1961_v62  ;;  %v1965_v36 = vadd.f32 %v1964_v25, %v7264_v34  ;;  %4721 = vmatpush3.msra.mxu0 %v2541_v17  ;;  %v8567_v59 = vmax.f32 %v7456_v16, 0.0 }
 0x359   : > { %v1966_v53 = vpop.f32.mrf.mxu1  ;;  %4722 = vmatprep.subr.mxu0 %v2586_v21 }
 0x35a   : > { %v1967_v35 = vadd.f32 %v1966_v53, %v7273_v24  ;;  %v8566_v26 = vmax.f32 %v7462_v27, 0.0  ;;  %4723 = vmatpush3.msra.mxu0 %v2538_v58  ;;  %v7472_v15 = vadd.f32 %v7350_v45, %v1965_v36  ;;  %v2149_v53 = vpop.f32.mrf.mxu0 }
 0x35b   : > { %v1970_v28 = vpop.f32.mrf.mxu1  ;;  %4959 = vmatprep.subr.mxu0 %v7466_v54 }
 0x35c   : > { %8666 = vst [vmem:[#allocation53_spill] sm:$0xff] %v7472_v15  ;;  %v7476_v62 = vadd.f32 %v7367_v5, %v1967_v35  ;;  %v1971_v17 = vadd.f32 %v1970_v28, %v7264_v34  ;;  %3066 = vmatprep.mubr.f32.mxu0 %v8566_v26  ;;  %v8570_v58 = vmax.f32 %v7472_v15, 0.0  ;;  %v2151_v26 = vpop.f32.mrf.mxu0 }
 0x35d   : > { %v1972_v21 = vpop.f32.mrf.mxu1  ;;  %3067 = vmatmul.mubr.f32.gmra.mxu0 %v8567_v59 }
 0x35e   : > { %v1973_v25 = vadd.f32 %v1972_v21, %v7273_v24  ;;  %v8569_v45 = vmax.f32 %v7476_v62, 0.0  ;;  %v7487_v36 = vadd.f32 %v7386_v11, %v1971_v17 }
 0x35f   : > { %v1976_v5 = vpop.f32.mrf.mxu1 }
 0x360   : > { %v7490_v35 = vadd.f32 %v7404_v30, %v1973_v25  ;;  %v1977_v28 = vadd.f32 %v1976_v5, %v7264_v34  ;;  %3072 = vmatprep.mubr.f32.mxu0 %v8569_v45  ;;  %v8574_v11 = vmax.f32 %v7487_v36, 0.0  ;;  %v2155_v45 = vpop.f32.mrf.mxu0 }
 0x361   : > { %v1978_v59 = vpop.f32.mrf.mxu1  ;;  %3073 = vmatmul.mubr.f32.gmra.mxu0 %v8570_v58 }
 0x362   : > { %8667 = vst [vmem:[#allocation54_spill] sm:$0xff] %v7490_v35  ;;  %v1979_v21 = vadd.f32 %v1978_v59, %v7273_v24  ;;  %v8572_v16 = vmax.f32 %v7490_v35, 0.0  ;;  %v7501_v17 = vadd.f32 %v7418_v49, %v1977_v28 }
 0x363   : > { %v1982_v30 = vpop.f32.mrf.mxu1 }
 0x364   : > { %v7504_v25 = vadd.f32 %v7432_v41, %v1979_v21  ;;  %v1983_v5 = vadd.f32 %v1982_v30, %v7264_v34  ;;  %3078 = vmatprep.mubr.f32.mxu0 %v8572_v16  ;;  %v8577_v49 = vmax.f32 %v7501_v17, 0.0  ;;  %v2157_v16 = vpop.f32.mrf.mxu0 }
 0x365   : > { %v1984_v58 = vpop.f32.mrf.mxu1  ;;  %3079 = vmatmul.mubr.f32.gmra.mxu0 %v8574_v11 }
 0x366   : > { %8668 = vst [vmem:[#allocation55_spill] sm:$0xff] %v7504_v25  ;;  %v1985_v59 = vadd.f32 %v1984_v58, %v7273_v24  ;;  %v8575_v15 = vmax.f32 %v7504_v25, 0.0  ;;  %v7514_v28 = vadd.f32 %v2143_v56, %v1983_v5 }
 0x367   : > { %v1988_v41 = vpop.f32.mrf.mxu1 }
 0x368   : > { %8669 = vst [vmem:[#allocation56_spill] sm:$0xff] %v7514_v28  ;;  %v7516_v21 = vadd.f32 %v2145_v32, %v1985_v59  ;;  %v1989_v30 = vadd.f32 %v1988_v41, %v7264_v34  ;;  %3084 = vmatprep.mubr.f32.mxu0 %v8575_v15  ;;  %v8579_v56 = vmax.f32 %v7514_v28, 0.0  ;;  %v2161_v15 = vpop.f32.mrf.mxu0 }
 0x369   : > { %v1990_v35 = vpop.f32.mrf.mxu1  ;;  %3085 = vmatmul.mubr.f32.gmra.mxu0 %v8577_v49 }
 0x36a   : > { %v1991_v58 = vadd.f32 %v1990_v35, %v7273_v24  ;;  %v8578_v11 = vmax.f32 %v7516_v21, 0.0  ;;  %v7526_v5 = vadd.f32 %v2149_v53, %v1989_v30 }
 0x36b   : > { %v1994_v32 = vpop.f32.mrf.mxu1 }
 0x36c   : > { %8670 = vst [vmem:[#allocation57_spill] sm:$0xff] %v7526_v5  ;;  %v7528_v59 = vadd.f32 %v2151_v26, %v1991_v58  ;;  %v1995_v41 = vadd.f32 %v1994_v32, %v7264_v34  ;;  %3090 = vmatprep.mubr.f32.mxu0 %v8578_v11  ;;  %v8586_v53 = vmax.f32 %v7526_v5, 0.0  ;;  %v1515_v11 = vsub.s32 4, %v6885_v12 }
 0x36d   : > { %v1996_v25 = vpop.f32.mrf.mxu1  ;;  %3091 = vmatmul.mubr.f32.gmra.mxu0 %v8579_v56  ;;  %v2163_v56 = vpop.f32.mrf.mxu0 }
 0x36e   : > { %8671 = vst [vmem:[#allocation58_spill] sm:$0xff] %v7528_v59  ;;  %v1997_v35 = vadd.f32 %v1996_v25, %v7273_v24  ;;  %v8581_v49 = vmax.f32 %v7528_v59, 0.0  ;;  %v7538_v30 = vadd.f32 %v2155_v45, %v1995_v41 }
 0x36f   : > { %v2000_v26 = vpop.f32.mrf.mxu1  ;;  %v4937_v59 = vpop.f32.mrf.mxu0 }
 0x370   : > { %8672 = vst [vmem:[#allocation59_spill] sm:$0xff] %v7538_v30  ;;  %v7540_v58 = vadd.f32 %v2157_v16, %v1997_v35  ;;  %v2001_v32 = vadd.f32 %v2000_v26, %v7264_v34  ;;  %3096 = vmatprep.mubr.f32.mxu0 %v8581_v49  ;;  %v8584_v41 = vmax.f32 %v7538_v30, 0.0  ;;  %v5254_v26 = vld [vmem:[%s6043_s0] sm:$0x1f]  ;;  %v8676_v30 = vmax.f32 %v6948_v46, 0.0 }
 0x371   : > { %v2002_v28 = vpop.f32.mrf.mxu1  ;;  %3097 = vmatmul.mubr.f32.gmra.mxu0 %v8586_v53  ;;  %v7558_v49 = vrot.slane %v5254_v26, %v1515_v11  ;;  %v2377_v11 = vpop.f32.mrf.mxu0  ;;  %v2679_v53 = vld [vmem:[%s6045_s11 + $0x478] sm:$0xff] }
 0x372   : > { %v2003_v25 = vadd.f32 %v2002_v28, %v7273_v24  ;;  %v8585_v45 = vmax.f32 %v7540_v58, 0.0  ;;  %v7551_v16 = vadd.f32 %v2161_v15, %v2001_v32 }
 0x373   : > { %v4612_v35 = vpop.f32.mrf.mxu1 }
 0x374   : > { %8673 = vst [vmem:[#allocation60_spill] sm:$0xff] %v7551_v16  ;;  %v7553_v34 = vadd.f32 %v2163_v56, %v2003_v25  ;;  %3102 = vmatprep.mubr.f32.mxu0 %v8585_v45  ;;  %v8590_v15 = vmax.f32 %v7551_v16, 0.0 }
 0x375   : > { %v4613_v5 = vpop.f32.mrf.mxu1  ;;  %3103 = vmatmul.mubr.f32.gmra.mxu0 %v8584_v41 }
 0x376   : > { %8674 = vst [vmem:[#allocation61_spill] sm:$0xff] %v7553_v34  ;;  %v4614_v24 = vadd.f32 %v4613_v5, %v4612_v35  ;;  %v8587_v28 = vmax.f32 %v7553_v34, 0.0  ;;  %v8675_v35 = vmax.f32 %v6956_v31, 0.0  ;;  %v8677_v31 = vmax.f32 %v6976_v13, 0.0 }
 0x377   : > { %v4615_v32 = vpop.f32.mrf.mxu1  ;;  %v8679_v13 = vmax.f32 %v6969_v23, 0.0 }
 0x378   : > { %v2233_v56 = vadd.f32 %v4614_v24, %v7558_v49  ;;  %3108 = vmatprep.mubr.f32.mxu0 %v8587_v28  ;;  %v4940_v28 = vpop.f32.mrf.mxu0 }
 0x379   : > { %v4616_v25 = vpop.f32.mrf.mxu1  ;;  %3109 = vmatmul.mubr.f32.gmra.mxu0 %v8590_v15  ;;  %v2724_v15 = vld [vmem:[%s6045_s11 + $0x5e0] sm:$0xff] }
 0x37a   : > { %v7569_v26 = vadd.f32 %v2377_v11, %v2233_v56  ;;  %v4617_v5 = vadd.f32 %v4616_v25, %v4615_v32  ;;  %3340 = vmatprep.mubr.f32.mxu0 %v8675_v35  ;;  %v2676_v32 = vld [vmem:[%s6045_s11 + $0x460] sm:$0xff]  ;;  %v8678_v25 = vmov 0.0  }
 0x37b   : > { %v4618_v41 = vpop.f32.mrf.mxu1 }
 0x37c   : > { %v2460_v45 = vmax.f32 %v7569_v26, 0.0  ;;  %v2238_v24 = vadd.f32 %v4617_v5, %v7558_v49  ;;  %v2772_v5 = vld [vmem:[%s6045_s11 + $0x760] sm:$0xff] }
 0x37d   : > { %v4619_v34 = vpop.f32.mrf.mxu1  ;;  %3341 = vmatmul.mubr.f32.vlgmr.msra.gmra.mxu0 %v8676_v30  ;;  %v2721_v30 = vld [vmem:[%s6045_s11 + $0x5c8] sm:$0xff] }
 0x37e   : > { %v7579_v16 = vadd.f32 %v4937_v59, %v2238_v24  ;;  %v4620_v56 = vadd.f32 %v4619_v34, %v4618_v41  ;;  %3180 = vmatmul.mubr.f32.vlgmr.msra.gmra.mxu1 %v2460_v45  ;;  %3345 = vmatprep.mubr.f32.mxu0 %v8677_v31  ;;  %v2387_v41 = vpop.f32.mrf.mxu0 }
 0x37f   : > { %4773 = vmatpush3.msra.mxu1 %v2679_v53  ;;  %v4621_v11 = vpop.f32.mrf.mxu1  ;;  %3185 = vmatprep.mubr.f32.mxu1 %v8678_v25  ;;  %v2673_v53 = vld [vmem:[%s6045_s11 + $0x448] sm:$0xff] }
 0x380   : > { %v2465_v46 = vmax.f32 %v7579_v16, 0.0  ;;  %v2243_v59 = vadd.f32 %v4620_v56, %v7558_v49  ;;  %4774 = vmatprep.subr.mxu1 %v2724_v15  ;;  %4960 = vmatpush3.msra.mxu0 %v7466_v54  ;;  %v8680_v15 = vmax.f32 %v7000_v19, 0.0  ;;  %v2718_v54 = vld [vmem:[%s6045_s11 + $0x5b0] sm:$0xff]  ;;  %v2715_v19 = vld [vmem:[%s6045_s11 + $0x598] sm:$0xff]  ;;  %v8714_v16 = vmax.f32 %v7339_v2, 0.0 }
 0x381   : > { %v4622_v34 = vpop.f32.mrf.mxu1  ;;  %3346 = vmatmul.mubr.f32.gmra.mxu0 %v8679_v13  ;;  %4775 = vmatpush3.msra.mxu1 %v2676_v32  ;;  %v2670_v32 = vld [vmem:[%s6045_s11 + $0x430] sm:$0xff] }
 0x382   : > { %v7595_v35 = vadd.f32 %v2387_v41, %v2243_v59  ;;  %v4623_v24 = vadd.f32 %v4622_v34, %v4621_v11  ;;  %3186 = vmatmul.mubr.f32.gmra.mxu1 %v2465_v46  ;;  %3350 = vmatprep.mubr.f32.mxu0 %v8680_v15  ;;  %v4943_v11 = vpop.f32.mrf.mxu0  ;;  %v8681_v41 = vmax.f32 %v6993_v38, 0.0  ;;  %v2712_v15 = vld [vmem:[%s6045_s11 + $0x580] sm:$0xff] }
 0x383   : > { %v4624_v56 = vpop.f32.mrf.mxu1  ;;  %3191 = vmatprep.mubr.f32.mxu1 %v8678_v25  ;;  %4776 = vmatprep.subr.mxu1 %v2721_v30  ;;  %v8682_v30 = vmax.f32 %v7024_v42, 0.0  ;;  %v2664_v42 = vld [vmem:[%s6045_s11 + $0x400] sm:$0xff] }
 0x384   : > { %v2470_v23 = vmax.f32 %v7595_v35, 0.0  ;;  %v2248_v31 = vadd.f32 %v4623_v24, %v7558_v49  ;;  %4777 = vmatpush3.msra.mxu1 %v2673_v53  ;;  %4961 = vmatprep.subr.mxu0 %v2772_v5  ;;  %v2667_v53 = vld [vmem:[%s6045_s11 + $0x418] sm:$0xff] }
 0x385   : > { %v4625_v59 = vpop.f32.mrf.mxu1  ;;  %3351 = vmatmul.mubr.f32.gmra.mxu0 %v8681_v41  ;;  %4778 = vmatprep.subr.mxu1 %v2718_v54  ;;  %v2397_v54 = vpop.f32.mrf.mxu0 }
 0x386   : > { %v7609_v34 = vadd.f32 %v4940_v28, %v2248_v31  ;;  %v4626_v13 = vadd.f32 %v4625_v59, %v4624_v56  ;;  %3192 = vmatmul.mubr.f32.gmra.mxu1 %v2470_v23  ;;  %3355 = vmatprep.mubr.f32.mxu0 %v8682_v30  ;;  %v8683_v31 = vmax.f32 %v7017_v52, 0.0  ;;  %v2769_v59 = vld [vmem:[%s6045_s11 + $0x748] sm:$0xff] }
 0x387   : > { %v4627_v24 = vpop.f32.mrf.mxu1  ;;  %3197 = vmatprep.mubr.f32.mxu1 %v8678_v25  ;;  %4779 = vmatpush3.msra.mxu1 %v2670_v32 }
 0x388   : > { %v2475_v38 = vmax.f32 %v7609_v34, 0.0  ;;  %v2253_v28 = vadd.f32 %v4626_v13, %v7558_v49  ;;  %4780 = vmatprep.subr.mxu1 %v2715_v19  ;;  %4962 = vmatpush3.msra.mxu0 %v2772_v5  ;;  %v8684_v19 = vmax.f32 %v7048_v39, 0.0  ;;  %v2709_v5 = vld [vmem:[%s6045_s11 + $0x568] sm:$0xff]  ;;  %v2706_v39 = vld [vmem:[%s6045_s11 + $0x550] sm:$0xff] }
 0x389   : > { %v4628_v56 = vpop.f32.mrf.mxu1  ;;  %3356 = vmatmul.mubr.f32.gmra.mxu0 %v8683_v31  ;;  %4781 = vmatpush3.msra.mxu1 %v2667_v53  ;;  %v2661_v53 = vld [vmem:[%s6045_s11 + $0x3e8] sm:$0xff] }
 0x38a   : > { %v7624_v41 = vadd.f32 %v2397_v54, %v2253_v28  ;;  %v4629_v32 = vadd.f32 %v4628_v56, %v4627_v24  ;;  %3198 = vmatmul.mubr.f32.gmra.mxu1 %v2475_v38  ;;  %3360 = vmatprep.mubr.f32.mxu0 %v8684_v19  ;;  %v4946_v24 = vpop.f32.mrf.mxu0  ;;  %v8685_v54 = vmax.f32 %v7041_v18, 0.0  ;;  %v2703_v19 = vld [vmem:[%s6045_s11 + $0x538] sm:$0xff] }
 0x38b   : > { %v4630_v13 = vpop.f32.mrf.mxu1  ;;  %3203 = vmatprep.mubr.f32.mxu1 %v8678_v25  ;;  %4782 = vmatprep.subr.mxu1 %v2712_v15  ;;  %v8686_v15 = vmax.f32 %v7071_v50, 0.0  ;;  %v2655_v50 = vld [vmem:[%s6045_s11 + $0x3b8] sm:$0xff] }
 0x38c   : > { %v2480_v52 = vmax.f32 %v7624_v41, 0.0  ;;  %v2258_v30 = vadd.f32 %v4629_v32, %v7558_v49  ;;  %4783 = vmatpush3.msra.mxu1 %v2664_v42  ;;  %4963 = vmatprep.subr.mxu0 %v2769_v59  ;;  %v2658_v42 = vld [vmem:[%s6045_s11 + $0x3d0] sm:$0xff] }
 0x38d   : > { %v4631_v28 = vpop.f32.mrf.mxu1  ;;  %3361 = vmatmul.mubr.f32.gmra.mxu0 %v8685_v54  ;;  %4784 = vmatprep.subr.mxu1 %v2709_v5  ;;  %v2407_v5 = vpop.f32.mrf.mxu0 }
 0x38e   : > { %v7638_v56 = vadd.f32 %v4943_v11, %v2258_v30  ;;  %v4632_v31 = vadd.f32 %v4631_v28, %v4630_v13  ;;  %3204 = vmatmul.mubr.f32.gmra.mxu1 %v2480_v52  ;;  %3365 = vmatprep.mubr.f32.mxu0 %v8686_v15  ;;  %v8687_v30 = vmax.f32 %v7065_v60, 0.0  ;;  %v2766_v28 = vld [vmem:[%s6045_s11 + $0x730] sm:$0xff] }
 0x38f   : > { %v4633_v32 = vpop.f32.mrf.mxu1  ;;  %3209 = vmatprep.mubr.f32.mxu1 %v8678_v25  ;;  %4785 = vmatpush3.msra.mxu1 %v2661_v53 }
 0x390   : > { %v2485_v18 = vmax.f32 %v7638_v56, 0.0  ;;  %v2263_v11 = vadd.f32 %v4632_v31, %v7558_v49  ;;  %4786 = vmatprep.subr.mxu1 %v2706_v39  ;;  %4964 = vmatpush3.msra.mxu0 %v2769_v59  ;;  %v8688_v39 = vmax.f32 %v7093_v57, 0.0  ;;  %v2700_v59 = vld [vmem:[%s6045_s11 + $0x520] sm:$0xff]  ;;  %v2697_v57 = vld [vmem:[%s6045_s11 + $0x508] sm:$0xff] }
 0x391   : > { %v4634_v13 = vpop.f32.mrf.mxu1  ;;  %3366 = vmatmul.mubr.f32.gmra.mxu0 %v8687_v30  ;;  %4787 = vmatpush3.msra.mxu1 %v2658_v42  ;;  %v2652_v42 = vld [vmem:[%s6045_s11 + $0x3a0] sm:$0xff] }
 0x392   : > { %v7653_v54 = vadd.f32 %v2407_v5, %v2263_v11  ;;  %v4635_v53 = vadd.f32 %v4634_v13, %v4633_v32  ;;  %3210 = vmatmul.mubr.f32.gmra.mxu1 %v2485_v18  ;;  %3370 = vmatprep.mubr.f32.mxu0 %v8688_v39  ;;  %v4949_v32 = vpop.f32.mrf.mxu0  ;;  %v8689_v5 = vmax.f32 %v7087_v6, 0.0 }
 0x393   : > { %v4636_v31 = vpop.f32.mrf.mxu1  ;;  %3215 = vmatprep.mubr.f32.mxu1 %v8678_v25  ;;  %4788 = vmatprep.subr.mxu1 %v2703_v19  ;;  %v8690_v19 = vmax.f32 %v7115_v3, 0.0  ;;  %v2694_v3 = vld [vmem:[%s6045_s11 + $0x4f0] sm:$0xff] }
 0x394   : > { %v2490_v60 = vmax.f32 %v7653_v54, 0.0  ;;  %v2268_v15 = vadd.f32 %v4635_v53, %v7558_v49  ;;  %4789 = vmatpush3.msra.mxu1 %v2655_v50  ;;  %4965 = vmatprep.subr.mxu0 %v2766_v28  ;;  %v2763_v50 = vld [vmem:[%s6045_s11 + $0x718] sm:$0xff]  ;;  %v8725_v54 = vld [vmem:[#allocation48_spill] sm:$0xff] }
 0x395   : > { %v4637_v11 = vpop.f32.mrf.mxu1  ;;  %3371 = vmatmul.mubr.f32.gmra.mxu0 %v8689_v5  ;;  %4790 = vmatprep.subr.mxu1 %v2700_v59  ;;  %v2417_v59 = vpop.f32.mrf.mxu0 }
 0x396   : > { %v7667_v13 = vadd.f32 %v4946_v24, %v2268_v15  ;;  %v4638_v30 = vadd.f32 %v4637_v11, %v4636_v31  ;;  %3216 = vmatmul.mubr.f32.gmra.mxu1 %v2490_v60  ;;  %3375 = vmatprep.mubr.f32.mxu0 %v8690_v19  ;;  %v2649_v24 = vld [vmem:[%s6045_s11 + $0x388] sm:$0xff]  ;;  %v8691_v15 = vmax.f32 %v7109_v47, 0.0 }
 0x397   : > { %v4639_v53 = vpop.f32.mrf.mxu1  ;;  %3221 = vmatprep.mubr.f32.mxu1 %v8678_v25  ;;  %4791 = vmatpush3.msra.mxu1 %v2652_v42  ;;  %v8692_v42 = vmax.f32 %v7135_v61, 0.0  ;;  %v4952_v19 = vpop.f32.mrf.mxu0  ;;  %v2757_v61 = vld [vmem:[%s6045_s11 + $0x6e8] sm:$0xff] }
 0x398   : > { %v2495_v6 = vmax.f32 %v7667_v13, 0.0  ;;  %v2273_v39 = vadd.f32 %v4638_v30, %v7558_v49  ;;  %4966 = vmatpush3.msra.mxu0 %v2766_v28  ;;  %4792 = vmatprep.subr.mxu1 %v2697_v57  ;;  %v2760_v28 = vld [vmem:[%s6045_s11 + $0x700] sm:$0xff] }
 0x399   : > { %v4640_v31 = vpop.f32.mrf.mxu1  ;;  %3376 = vmatmul.mubr.f32.gmra.mxu0 %v8691_v15  ;;  %4967 = vmatprep.subr.mxu0 %v2763_v50 }
 0x39a   : > { %v7681_v11 = vadd.f32 %v2417_v59, %v2273_v39  ;;  %v4641_v5 = vadd.f32 %v4640_v31, %v4639_v53  ;;  %3222 = vmatmul.mubr.f32.gmra.mxu1 %v2495_v6  ;;  %3380 = vmatprep.mubr.f32.mxu0 %v8692_v42  ;;  %v8693_v39 = vmax.f32 %v7131_v63, 0.0  ;;  %v2646_v59 = vld [vmem:[%s6045_s11 + $0x370] sm:$0xff] }
 0x39b   : > { %v4642_v57 = vpop.f32.mrf.mxu1  ;;  %3227 = vmatprep.mubr.f32.mxu1 %v8678_v25  ;;  %4793 = vmatpush3.msra.mxu1 %v2649_v24  ;;  %v8694_v24 = vmax.f32 %v7162_v8, 0.0  ;;  %v2643_v8 = vld [vmem:[%s6045_s11 + $0x358] sm:$0xff] }
 0x39c   : > { %v2500_v47 = vmax.f32 %v7681_v11, 0.0  ;;  %v2278_v30 = vadd.f32 %v4641_v5, %v7558_v49  ;;  %4968 = vmatpush3.msra.mxu0 %v2763_v50  ;;  %4794 = vmatprep.subr.mxu1 %v2694_v3  ;;  %v2691_v50 = vld [vmem:[%s6045_s11 + $0x4d8] sm:$0xff] }
 0x39d   : > { %v4643_v53 = vpop.f32.mrf.mxu1  ;;  %3381 = vmatmul.mubr.f32.gmra.mxu0 %v8693_v39  ;;  %4969 = vmatprep.subr.mxu0 %v2760_v28 }
 0x39e   : > { %v7695_v31 = vadd.f32 %v4949_v32, %v2278_v30  ;;  %v4644_v15 = vadd.f32 %v4643_v53, %v4642_v57  ;;  %3228 = vmatmul.mubr.f32.gmra.mxu1 %v2500_v47  ;;  %3385 = vmatprep.mubr.f32.mxu0 %v8694_v24  ;;  %v2427_v32 = vpop.f32.mrf.mxu0  ;;  %v8695_v57 = vmax.f32 %v7154_v1, 0.0  ;;  %v2754_v30 = vld [vmem:[%s6045_s11 + $0x6d0] sm:$0xff] }
 0x39f   : > { %v4645_v3 = vpop.f32.mrf.mxu1  ;;  %3233 = vmatprep.mubr.f32.mxu1 %v8678_v25  ;;  %4970 = vmatpush3.msra.mxu0 %v2760_v28  ;;  %v8696_v28 = vmax.f32 %v7181_v7, 0.0  ;;  %v2640_v7 = vld [vmem:[%s6045_s11 + $0x340] sm:$0xff] }
 0x3a0   : > { %v2505_v63 = vmax.f32 %v7695_v31, 0.0  ;;  %v2283_v5 = vadd.f32 %v4644_v15, %v7558_v49  ;;  %4971 = vmatprep.subr.mxu0 %v2757_v61  ;;  %4795 = vmatpush3.msra.mxu1 %v2646_v59  ;;  %v2688_v59 = vld [vmem:[%s6045_s11 + $0x4c0] sm:$0xff] }
 0x3a1   : > { %v4646_v42 = vpop.f32.mrf.mxu1  ;;  %3386 = vmatmul.mubr.f32.gmra.mxu0 %v8695_v57  ;;  %4796 = vmatprep.subr.mxu1 %v2691_v50  ;;  %v4955_v50 = vpop.f32.mrf.mxu0 }
 0x3a2   : > { %v7709_v53 = vadd.f32 %v2427_v32, %v2283_v5  ;;  %v4647_v39 = vadd.f32 %v4646_v42, %v4645_v3  ;;  %3234 = vmatmul.mubr.f32.gmra.mxu1 %v2505_v63  ;;  %3390 = vmatprep.mubr.f32.mxu0 %v8696_v28  ;;  %v8697_v5 = vmax.f32 %v7175_v22, 0.0  ;;  %v2751_v32 = vld [vmem:[%s6045_s11 + $0x6b8] sm:$0xff] }
 0x3a3   : > { %v4648_v15 = vpop.f32.mrf.mxu1  ;;  %3239 = vmatprep.mubr.f32.mxu1 %v8678_v25  ;;  %4972 = vmatpush3.msra.mxu0 %v2757_v61  ;;  %v8698_v61 = vmax.f32 %v7202_v0, 0.0  ;;  %v2637_v0 = vld [vmem:[%s6045_s11 + $0x328] sm:$0xff] }
 0x3a4   : > { %v2510_v1 = vmax.f32 %v7709_v53, 0.0  ;;  %v2288_v24 = vadd.f32 %v4647_v39, %v7558_v49  ;;  %4973 = vmatprep.subr.mxu0 %v2754_v30  ;;  %4797 = vmatpush3.msra.mxu1 %v2643_v8  ;;  %v2685_v8 = vld [vmem:[%s6045_s11 + $0x4a8] sm:$0xff] }
 0x3a5   : > { %v4649_v3 = vpop.f32.mrf.mxu1  ;;  %3391 = vmatmul.mubr.f32.gmra.mxu0 %v8697_v5  ;;  %4798 = vmatprep.subr.mxu1 %v2688_v59 }
 0x3a6   : > { %v7723_v42 = vadd.f32 %v4952_v19, %v2288_v24  ;;  %v4650_v57 = vadd.f32 %v4649_v3, %v4648_v15  ;;  %3240 = vmatmul.mubr.f32.gmra.mxu1 %v2510_v1  ;;  %3395 = vmatprep.mubr.f32.mxu0 %v8698_v61  ;;  %v2437_v19 = vpop.f32.mrf.mxu0  ;;  %v8699_v15 = vmax.f32 %v7197_v14, 0.0  ;;  %v2748_v24 = vld [vmem:[%s6045_s11 + $0x6a0] sm:$0xff] }
 0x3a7   : > { %v4651_v39 = vpop.f32.mrf.mxu1  ;;  %3245 = vmatprep.mubr.f32.mxu1 %v8678_v25  ;;  %4974 = vmatpush3.msra.mxu0 %v2754_v30  ;;  %v8700_v30 = vmax.f32 %v7220_v43, 0.0  ;;  %v2634_v43 = vld [vmem:[%s6045_s11 + $0x310] sm:$0xff] }
 0x3a8   : > { %v2515_v22 = vmax.f32 %v7723_v42, 0.0  ;;  %v2293_v28 = vadd.f32 %v4650_v57, %v7558_v49  ;;  %4975 = vmatprep.subr.mxu0 %v2751_v32  ;;  %4799 = vmatpush3.msra.mxu1 %v2640_v7  ;;  %v2682_v7 = vld [vmem:[%s6045_s11 + $0x490] sm:$0xff] }
 0x3a9   : > { %v4652_v59 = vpop.f32.mrf.mxu1  ;;  %3396 = vmatmul.mubr.f32.gmra.mxu0 %v8699_v15  ;;  %4800 = vmatprep.subr.mxu1 %v2685_v8  ;;  %v4958_v8 = vpop.f32.mrf.mxu0 }
 0x3aa   : > { %v7737_v3 = vadd.f32 %v2437_v19, %v2293_v28  ;;  %v4653_v5 = vadd.f32 %v4652_v59, %v4651_v39  ;;  %3246 = vmatmul.mubr.f32.gmra.mxu1 %v2515_v22  ;;  %3400 = vmatprep.mubr.f32.mxu0 %v8700_v30  ;;  %v8701_v28 = vmax.f32 %v7215_v40, 0.0  ;;  %v2745_v19 = vld [vmem:[%s6045_s11 + $0x688] sm:$0xff] }
 0x3ab   : > { %v4654_v57 = vpop.f32.mrf.mxu1  ;;  %3251 = vmatprep.mubr.f32.mxu1 %v8678_v25  ;;  %4976 = vmatpush3.msra.mxu0 %v2751_v32  ;;  %v8702_v32 = vmax.f32 %v7238_v48, 0.0 }
 0x3ac   : > { %v2520_v14 = vmax.f32 %v7737_v3, 0.0  ;;  %v2298_v61 = vadd.f32 %v4653_v5, %v7558_v49  ;;  %4977 = vmatprep.subr.mxu0 %v2748_v24  ;;  %4801 = vmatpush3.msra.mxu1 %v2637_v0  ;;  %v8735_v3 = vld [vmem:[#allocation52_spill] sm:$0xff] }
 0x3ad   : > { %v4655_v39 = vpop.f32.mrf.mxu1  ;;  %3401 = vmatmul.mubr.f32.gmra.mxu0 %v8701_v28  ;;  %4802 = vmatprep.subr.mxu1 %v2682_v7  ;;  %v8703_v7 = vmax.f32 %v7233_v44, 0.0 }
 0x3ae   : > { %v7751_v59 = vadd.f32 %v4955_v50, %v2298_v61  ;;  %v4656_v15 = vadd.f32 %v4655_v39, %v4654_v57  ;;  %3252 = vmatmul.mubr.f32.gmra.mxu1 %v2520_v14  ;;  %3405 = vmatprep.mubr.f32.mxu0 %v8702_v32  ;;  %v2447_v50 = vpop.f32.mrf.mxu0  ;;  %v2742_v57 = vld [vmem:[%s6045_s11 + $0x670] sm:$0xff]  ;;  %v2739_v39 = vld [vmem:[%s6045_s11 + $0x658] sm:$0xff]  ;;  %v2736_v32 = vld [vmem:[%s6045_s11 + $0x640] sm:$0xff] }
 0x3af   : > { %v4657_v5 = vpop.f32.mrf.mxu1  ;;  %4978 = vmatpush3.msra.mxu0 %v2748_v24  ;;  %3257 = vmatprep.mubr.f32.mxu1 %v8678_v25  ;;  %v8704_v24 = vmax.f32 %v7256_v33, 0.0  ;;  %v8706_v33 = vmax.f32 %v7280_v51, 0.0 }
 0x3b0   : > { %v2525_v40 = vmax.f32 %v7751_v59, 0.0  ;;  %v2303_v0 = vadd.f32 %v4656_v15, %v7558_v49  ;;  %4979 = vmatprep.subr.mxu0 %v2745_v19  ;;  %4803 = vmatpush3.msra.mxu1 %v2634_v43  ;;  %v8705_v15 = vmax.f32 %v7253_v55, 0.0  ;;  %v8708_v55 = vld [vmem:[#allocation43_spill] sm:$0xff] }
 0x3b1   : > { %v4658_v30 = vpop.f32.mrf.mxu1  ;;  %3406 = vmatmul.mubr.f32.gmra.mxu0 %v8703_v7  ;;  %v8709_v51 = vmax.f32 %v8708_v55, 0.0  ;;  %v8738_v7 = vld [vmem:[#allocation53_spill] sm:$0xff] }
 0x3b2   : > { %v7763_v48 = vadd.f32 %v2447_v50, %v2303_v0  ;;  %v4659_v61 = vadd.f32 %v4658_v30, %v4657_v5  ;;  %3258 = vmatmul.mubr.f32.gmra.mxu1 %v2525_v40  ;;  %3410 = vmatprep.mubr.f32.mxu0 %v8704_v24  ;;  %v2733_v5 = vld [vmem:[%s6045_s11 + $0x628] sm:$0xff]  ;;  %v8712_v30 = vmax.f32 %v7314_v9, 0.0 }
 0x3b3   : > { %4980 = vmatpush3.msra.mxu0 %v2745_v19  ;;  %3263 = vmatprep.mubr.f32.mxu1 %v8678_v25 }
 0x3b4   : > { %v2530_v28 = vmax.f32 %v7763_v48, 0.0  ;;  %v2308_v44 = vadd.f32 %v4659_v61, %v7558_v49  ;;  %4981 = vmatprep.subr.mxu0 %v2742_v57  ;;  %v8707_v49 = vmax.f32 %v7277_v4, 0.0  ;;  %v2859_v0 = vpop.f32.mrf.mxu1  ;;  %v8740_v61 = vld [vmem:[#allocation54_spill] sm:$0xff] }
 0x3b5   : > { %4982 = vmatpush3.msra.mxu0 %v2742_v57  ;;  %v8739_v57 = vmax.f32 %v8738_v7, 0.0  ;;  %v8741_v24 = vmax.f32 %v8740_v61, 0.0 }
 0x3b6   : > { %v2453_v43 = vadd.f32 %v4958_v8, %v2308_v44  ;;  %3411 = vmatmul.mubr.f32.gmra.mxu0 %v8705_v15  ;;  %4983 = vmatprep.subr.mxu0 %v2739_v39  ;;  %v2730_v8 = vld [vmem:[%s6045_s11 + $0x610] sm:$0xff]  ;;  %v2861_v4 = vpop.f32.mrf.mxu1  ;;  %v8745_v44 = vmax.f32 %v7501_v17, 0.0  ;;  %v8746_v15 = vmax.f32 %v7516_v21, 0.0  ;;  %v8752_v17 = vsub.s32 1, %v6885_v12 }
 0x3b7   : > { %3264 = vmatmul.mubr.f32.gmra.mxu1 %v2530_v28  ;;  %3415 = vmatprep.mubr.f32.mxu0 %v8706_v33 }
 0x3b8   : > { %v2535_v19 = vmax.f32 %v2453_v43, 0.0  ;;  %4984 = vmatpush3.msra.mxu0 %v2739_v39  ;;  %3269 = vmatprep.mubr.f32.mxu1 %v8678_v25  ;;  %v8710_v25 = vld [vmem:[#allocation42_spill] sm:$0xff]  ;;  %v2865_v26 = vpop.f32.mrf.mxu1 }
 0x3b9   : > { %4985 = vmatprep.subr.mxu0 %v2736_v32  ;;  %v8711_v50 = vmax.f32 %v8710_v25, 0.0  ;;  %v7860_v43 = vld [vmem:[%s6052_s23] sm:$0x7] }
 0x3ba   : > { %4986 = vmatpush3.msra.mxu0 %v2736_v32  ;;  %v2867_v9 = vpop.f32.mrf.mxu1  ;;  %v8747_v32 = vsub.s32 0, %v6885_v12  ;;  %v7876_v55 = vrot.slane %v7860_v43, %v8752_v17 }
 0x3bb   : > { %3416 = vmatmul.mubr.f32.gmra.mxu0 %v8707_v49  ;;  %4987 = vmatprep.subr.mxu0 %v2733_v5  ;;  %v8750_v49 = vld [vmem:[#allocation58_spill] sm:$0xff] }
 0x3bc   : > { %3270 = vmatmul.mubr.f32.gmra.mxu1 %v2535_v19  ;;  %4988 = vmatpush3.msra.mxu0 %v2733_v5  ;;  %v2871_v2 = vpop.f32.mrf.mxu1  ;;  %v7867_v33 = vrot.slane %v7860_v43, %v8747_v32 }
 0x3bd   : > { %4991 = vmatprep.mubr.f32.mxu0 %v2460_v45  ;;  %3485 = vmatprep.mubr.f32.mxu1 %v8709_v51  ;;  %v8713_v45 = vmax.f32 %v7310_v20, 0.0  ;;  %v8717_v20 = vmax.f32 %v7359_v10, 0.0  ;;  %v8753_v51 = vld [vmem:[#allocation57_spill] sm:$0xff] }
 0x3be   : > { %4989 = vmatprep.subr.mxu0 %v2730_v8  ;;  %v2873_v10 = vpop.f32.mrf.mxu1  ;;  %v2860_v21 = vadd.f32 %v2859_v0, %v7867_v33  ;;  %v8754_v25 = vmax.f32 %v8753_v51, 0.0 }
 0x3bf   : > { %4990 = vmatpush3.msra.mxu0 %v2730_v8  ;;  %v8751_v8 = vmax.f32 %v8750_v49, 0.0 }
 0x3c0   : > { %4992 = vmatmul.mubr.f32.vlgmr.msra.gmra.mxu0 %v2465_v46  ;;  %3486 = vmatmul.mubr.f32.vlgmr.msra.gmra.mxu1 %v8711_v50  ;;  %v8715_v46 = vld [vmem:[#allocation44_spill] sm:$0xff]  ;;  %v2877_v13 = vpop.f32.mrf.mxu1 }
 0x3c1   : > { %4994 = vmatprep.mubr.f32.mxu0 %v2470_v23  ;;  %3490 = vmatprep.mubr.f32.mxu1 %v8712_v30  ;;  %v8716_v35 = vmax.f32 %v8715_v46, 0.0  ;;  %v8718_v23 = vld [vmem:[#allocation45_spill] sm:$0xff]  ;;  %v8755_v30 = vmax.f32 %v7540_v58, 0.0  ;;  %v2868_v58 = vadd.f32 %v2867_v9, %v7876_v55  ;;  %v2878_v9 = vadd.f32 %v2877_v13, %v7867_v33 }
 0x3c2   : > { %v8719_v34 = vmax.f32 %v8718_v23, 0.0  ;;  %v8756_v23 = vld [vmem:[#allocation59_spill] sm:$0xff] }
 0x3c4   : > { %4995 = vmatmul.mubr.f32.gmra.mxu0 %v2475_v38  ;;  %3491 = vmatmul.mubr.f32.gmra.mxu1 %v8713_v45  ;;  %v8720_v38 = vld [vmem:[#allocation47_spill] sm:$0xff] }
 0x3c5   : > { %4997 = vmatprep.mubr.f32.mxu0 %v2480_v52  ;;  %3495 = vmatprep.mubr.f32.mxu1 %v8714_v16  ;;  %v8721_v41 = vmax.f32 %v8720_v38, 0.0  ;;  %v8722_v52 = vld [vmem:[#allocation46_spill] sm:$0xff]  ;;  %v2862_v16 = vadd.f32 %v2861_v4, %v7876_v55 }
 0x3c6   : > { %v8723_v56 = vmax.f32 %v8722_v52, 0.0 }
 0x3c8   : > { %4998 = vmatmul.mubr.f32.gmra.mxu0 %v2485_v18  ;;  %3496 = vmatmul.mubr.f32.gmra.mxu1 %v8716_v35  ;;  %v8724_v18 = vmax.f32 %v7399_v29, 0.0  ;;  %v2879_v29 = vpop.f32.mrf.mxu1 }
 0x3c9   : > { %5000 = vmatprep.mubr.f32.mxu0 %v2490_v60  ;;  %3500 = vmatprep.mubr.f32.mxu1 %v8717_v20  ;;  %v8726_v60 = vmax.f32 %v8725_v54, 0.0  ;;  %v2866_v20 = vadd.f32 %v2865_v26, %v7867_v33  ;;  %v8760_v54 = vld [vmem:[#allocation60_spill] sm:$0xff]  ;;  %v2872_v26 = vadd.f32 %v2871_v2, %v7867_v33 }
 0x3ca   : > { %v2883_v42 = vpop.f32.mrf.mxu1 }
 0x3cb   : > { %v2884_v61 = vadd.f32 %v2883_v42, %v7867_v33 }
 0x3cc   : > { %5001 = vmatmul.mubr.f32.gmra.mxu0 %v2495_v6  ;;  %3501 = vmatmul.mubr.f32.gmra.mxu1 %v8719_v34  ;;  %v8727_v6 = vld [vmem:[#allocation50_spill] sm:$0xff]  ;;  %v2885_v59 = vpop.f32.mrf.mxu1  ;;  %v8757_v34 = vmax.f32 %v8756_v23, 0.0 }
 0x3cd   : > { %5003 = vmatprep.mubr.f32.mxu0 %v2500_v47  ;;  %3505 = vmatprep.mubr.f32.mxu1 %v8721_v41  ;;  %v8728_v11 = vmax.f32 %v8727_v6, 0.0  ;;  %v8729_v47 = vld [vmem:[#allocation49_spill] sm:$0xff] }
 0x3ce   : > { %v8730_v31 = vmax.f32 %v8729_v47, 0.0  ;;  %v2889_v48 = vpop.f32.mrf.mxu1  ;;  %v8758_v41 = vld [vmem:[#allocation61_spill] sm:$0xff] }
 0x3cf   : > { %v8759_v52 = vmax.f32 %v8758_v41, 0.0  ;;  %v2890_v13 = vadd.f32 %v2889_v48, %v7867_v33 }
 0x3d0   : > { %5004 = vmatmul.mubr.f32.gmra.mxu0 %v2505_v63  ;;  %3506 = vmatmul.mubr.f32.gmra.mxu1 %v8723_v56  ;;  %v8731_v63 = vld [vmem:[#allocation51_spill] sm:$0xff]  ;;  %v2891_v39 = vpop.f32.mrf.mxu1 }
 0x3d1   : > { %5006 = vmatprep.mubr.f32.mxu0 %v2510_v1  ;;  %3510 = vmatprep.mubr.f32.mxu1 %v8724_v18  ;;  %v8732_v53 = vmax.f32 %v8731_v63, 0.0  ;;  %v8733_v1 = vmax.f32 %v7435_v37, 0.0  ;;  %v8742_v37 = vmax.f32 %v7487_v36, 0.0  ;;  %v8748_v36 = vld [vmem:[#allocation56_spill] sm:$0xff]  ;;  %v2892_v32 = vadd.f32 %v2891_v39, %v7876_v55 }
 0x3d4   : > { %5007 = vmatmul.mubr.f32.gmra.mxu0 %v2515_v22  ;;  %3511 = vmatmul.mubr.f32.gmra.mxu1 %v8726_v60  ;;  %v8734_v22 = vmax.f32 %v7462_v27, 0.0  ;;  %v8743_v27 = vld [vmem:[#allocation55_spill] sm:$0xff]  ;;  %v8761_v60 = vmax.f32 %v8760_v54, 0.0 }
 0x3d5   : > { %5009 = vmatprep.mubr.f32.mxu0 %v2520_v14  ;;  %3515 = vmatprep.mubr.f32.mxu1 %v8728_v11  ;;  %v8736_v14 = vmax.f32 %v8735_v3, 0.0 }
 0x3d8   : > { %5010 = vmatmul.mubr.f32.gmra.mxu0 %v2525_v40  ;;  %3516 = vmatmul.mubr.f32.gmra.mxu1 %v8730_v31  ;;  %v8737_v40 = vmax.f32 %v7476_v62, 0.0  ;;  %v2895_v62 = vpop.f32.mrf.mxu1  ;;  %v2874_v31 = vadd.f32 %v2873_v10, %v7876_v55 }
 0x3d9   : > { %5012 = vmatprep.mubr.f32.mxu0 %v2530_v28  ;;  %3520 = vmatprep.mubr.f32.mxu1 %v8732_v53  ;;  %v8744_v28 = vmax.f32 %v8743_v27, 0.0  ;;  %v2896_v42 = vadd.f32 %v2895_v62, %v7867_v33 }
 0x3da   : > { %v2897_v5 = vpop.f32.mrf.mxu1 }
 0x3db   : > { %v2898_v17 = vadd.f32 %v2897_v5, %v7876_v55 }
 0x3dc   : > { %5013 = vmatmul.mubr.f32.gmra.mxu0 %v2535_v19  ;;  %3521 = vmatmul.mubr.f32.gmra.mxu1 %v8733_v1  ;;  %v8749_v19 = vmax.f32 %v8748_v36, 0.0  ;;  %v2901_v50 = vpop.f32.mrf.mxu1 }
 0x3dd   : > { %3525 = vmatprep.mubr.f32.mxu1 %v8734_v22 }
 0x3de   : > { %v2903_v0 = vpop.f32.mrf.mxu1 }
 0x3e0   : > { %3526 = vmatmul.mubr.f32.gmra.mxu1 %v8736_v14  ;;  %v2907_v11 = vpop.f32.mrf.mxu1  ;;  %v2880_v14 = vadd.f32 %v2879_v29, %v7876_v55 }
 0x3e1   : > { %3530 = vmatprep.mubr.f32.mxu1 %v8737_v40  ;;  %v2908_v23 = vadd.f32 %v2907_v11, %v7867_v33 }
 0x3e2   : > { %v2909_v1 = vpop.f32.mrf.mxu1 }
 0x3e3   : > { %v2910_v41 = vadd.f32 %v2909_v1, %v7876_v55 }
 0x3e4   : > { %3531 = vmatmul.mubr.f32.gmra.mxu1 %v8739_v57  ;;  %v2913_v7 = vpop.f32.mrf.mxu1 }
 0x3e5   : > { %3535 = vmatprep.mubr.f32.mxu1 %v8741_v24  ;;  %v2886_v24 = vadd.f32 %v2885_v59, %v7876_v55 }
 0x3e8   : > { %3536 = vmatmul.mubr.f32.gmra.mxu1 %v8742_v37  ;;  %v2915_v37 = vpop.f32.mrf.mxu1 }
 0x3e9   : > { %3540 = vmatprep.mubr.f32.mxu1 %v8744_v28  ;;  %v2916_v54 = vadd.f32 %v2915_v37, %v7876_v55 }
 0x3ea   : > { %v2919_v29 = vpop.f32.mrf.mxu1 }
 0x3eb   : > { %v2920_v11 = vadd.f32 %v2919_v29, %v7867_v33 }
 0x3ec   : > { %3541 = vmatmul.mubr.f32.gmra.mxu1 %v8745_v44  ;;  %v2921_v59 = vpop.f32.mrf.mxu1 }
 0x3ed   : > { %3545 = vmatprep.mubr.f32.mxu1 %v8746_v15  ;;  %v2922_v1 = vadd.f32 %v2921_v59, %v7876_v55 }
 0x3f0   : > { %3546 = vmatmul.mubr.f32.gmra.mxu1 %v8749_v19 }
 0x3f1   : > { %3550 = vmatprep.mubr.f32.mxu1 %v8751_v8 }
 0x3f4   : > { %3551 = vmatmul.mubr.f32.gmra.mxu1 %v8754_v25  ;;  %v2925_v25 = vpop.f32.mrf.mxu1 }
 0x3f5   : > { %3555 = vmatprep.mubr.f32.mxu1 %v8755_v30  ;;  %v3020_v45 = vpop.f32.mrf.mxu0  ;;  %v2902_v30 = vadd.f32 %v2901_v50, %v7867_v33  ;;  %v2914_v50 = vadd.f32 %v2913_v7, %v7867_v33 }
 0x3f6   : > { %v7884_v46 = vadd.f32 %v3020_v45, %v2860_v21  ;;  %v2904_v45 = vadd.f32 %v2903_v0, %v7876_v55 }
 0x3f7   : > { %v3022_v35 = vpop.f32.mrf.mxu0 }
 0x3f8   : > { %3556 = vmatmul.mubr.f32.gmra.mxu1 %v8757_v34  ;;  %v7889_v38 = vadd.f32 %v3022_v35, %v2862_v16  ;;  %v2927_v35 = vpop.f32.mrf.mxu1 }
 0x3f9   : > { %3560 = vmatprep.mubr.f32.mxu1 %v8759_v52  ;;  %v3026_v56 = vpop.f32.mrf.mxu0 }
 0x3fa   : > { %v7894_v18 = vadd.f32 %v3026_v56, %v2866_v20  ;;  %v2931_v5 = vpop.f32.mrf.mxu1 }
 0x3fb   : > { %v3028_v4 = vpop.f32.mrf.mxu0 }
 0x3fc   : > { %3561 = vmatmul.mubr.f32.gmra.mxu1 %v8761_v60  ;;  %v7898_v6 = vadd.f32 %v3028_v4, %v2868_v58  ;;  %v2933_v0 = vpop.f32.mrf.mxu1 }
 0x3fe   : > { %v3032_v47 = vpop.f32.mrf.mxu0 }
 0x3ff   : > { %v7902_v63 = vadd.f32 %v3032_v47, %v2872_v26 }
 0x400   : > { %v3034_v53 = vpop.f32.mrf.mxu0 }
 0x401   : > { %v7904_v22 = vadd.f32 %v3034_v53, %v2874_v31  ;;  %v2937_v31 = vpop.f32.mrf.mxu1 }
 0x402   : > { %v2938_v59 = vadd.f32 %v2937_v31, %v7867_v33 }
 0x403   : > { %v3038_v3 = vpop.f32.mrf.mxu0 }
 0x404   : > { %v7908_v40 = vadd.f32 %v3038_v3, %v2878_v9 }
 0x405   : > { %v3040_v57 = vpop.f32.mrf.mxu0 }
 0x406   : > { %v7910_v2 = vadd.f32 %v3040_v57, %v2880_v14  ;;  %v2926_v14 = vadd.f32 %v2925_v25, %v7867_v33  ;;  %v2939_v57 = vpop.f32.mrf.mxu1 }
 0x407   : > { %v2940_v25 = vadd.f32 %v2939_v57, %v7876_v55 }
 0x408   : > { %v3044_v10 = vpop.f32.mrf.mxu0  ;;  %v2943_v29 = vpop.f32.mrf.mxu1 }
 0x409   : > { %v7914_v27 = vadd.f32 %v3044_v10, %v2884_v61  ;;  %v2928_v10 = vadd.f32 %v2927_v35, %v7876_v55 }
 0x40a   : > { %v3046_v28 = vpop.f32.mrf.mxu0 }
 0x40b   : > { %v7916_v44 = vadd.f32 %v3046_v28, %v2886_v24  ;;  %v2932_v28 = vadd.f32 %v2931_v5, %v7867_v33 }
 0x40d   : > { %v3050_v15 = vpop.f32.mrf.mxu0 }
 0x40e   : > { %v7920_v36 = vadd.f32 %v3050_v15, %v2890_v13 }
 0x40f   : > { %v3052_v19 = vpop.f32.mrf.mxu0 }
 0x410   : > { %v7922_v49 = vadd.f32 %v3052_v19, %v2892_v32  ;;  %v2934_v32 = vadd.f32 %v2933_v0, %v7876_v55 }
 0x412   : > { %v3056_v8 = vpop.f32.mrf.mxu0 }
 0x413   : > { %v7926_v21 = vadd.f32 %v3056_v8, %v2896_v42 }
 0x414   : > { %v3058_v51 = vpop.f32.mrf.mxu0 }
 0x415   : > { %v7928_v48 = vadd.f32 %v3058_v51, %v2898_v17  ;;  %v2945_v17 = vpop.f32.mrf.mxu1 }
 0x416   : > { %v2946_v5 = vadd.f32 %v2945_v17, %v7876_v55 }
 0x417   : > { %v3062_v39 = vpop.f32.mrf.mxu0 }
 0x418   : > { %v7932_v16 = vadd.f32 %v3062_v39, %v2902_v30 }
 0x419   : > { %v3064_v20 = vpop.f32.mrf.mxu0 }
 0x41a   : > { %v7934_v62 = vadd.f32 %v3064_v20, %v2904_v45  ;;  %v2944_v45 = vadd.f32 %v2943_v29, %v7867_v33  ;;  %v2949_v20 = vpop.f32.mrf.mxu1 }
 0x41d   : > { %v3068_v34 = vpop.f32.mrf.mxu0 }
 0x41e   : > { %v7938_v52 = vadd.f32 %v3068_v34, %v2908_v23 }
 0x41f   : > { %v3070_v56 = vpop.f32.mrf.mxu0 }
 0x420   : > { %v7941_v58 = vadd.f32 %v3070_v56, %v2910_v41  ;;  %v2950_v56 = vadd.f32 %v2949_v20, %v7867_v33 }
 0x421   : > { %v3074_v4 = vpop.f32.mrf.mxu0 }
 0x422   : > { %v7944_v60 = vadd.f32 %v3074_v4, %v2914_v50 }
 0x423   : > { %v3076_v26 = vpop.f32.mrf.mxu0 }
 0x424   : > { %v7947_v47 = vadd.f32 %v3076_v26, %v2916_v54  ;;  %v7983_v26 = vpop.f32.mrf.mxu1 }
 0x425   : > { %v3080_v53 = vpop.f32.mrf.mxu0 }
 0x426   : > { %v7950_v9 = vadd.f32 %v3080_v53, %v2920_v11 }
 0x427   : > { %v3082_v3 = vpop.f32.mrf.mxu0 }
 0x428   : > { %v7953_v7 = vadd.f32 %v3082_v3, %v2922_v1 }
 0x429   : > { %v3086_v61 = vpop.f32.mrf.mxu0 }
 0x42a   : > { %v7956_v24 = vadd.f32 %v3086_v61, %v2926_v14 }
 0x42b   : > { %v3088_v37 = vpop.f32.mrf.mxu0 }
 0x42c   : > { %v7959_v13 = vadd.f32 %v3088_v37, %v2928_v10 }
 0x42d   : > { %v3092_v15 = vpop.f32.mrf.mxu0 }
 0x42e   : > { %v7962_v19 = vadd.f32 %v3092_v15, %v2932_v28 }
 0x42f   : > { %v3094_v42 = vpop.f32.mrf.mxu0 }
 0x430   : > { %v7965_v8 = vadd.f32 %v3094_v42, %v2934_v32 }
 0x431   : > { %v3098_v51 = vpop.f32.mrf.mxu0 }
 0x432   : > { %v7968_v30 = vadd.f32 %v3098_v51, %v2938_v59 }
 0x433   : > { %v3100_v39 = vpop.f32.mrf.mxu0 }
 0x434   : > { %v7971_v35 = vadd.f32 %v3100_v39, %v2940_v25 }
 0x435   : > { %v3104_v23 = vpop.f32.mrf.mxu0 }
 0x436   : > { %v7974_v34 = vadd.f32 %v3104_v23, %v2944_v45 }
 0x437   : > { %v3106_v41 = vpop.f32.mrf.mxu0 }
 0x438   : > { %v7977_v50 = vadd.f32 %v3106_v41, %v2946_v5 }
 0x439   : > { %v3110_v0 = vpop.f32.mrf.mxu0 }
 0x43a   : > { %v7979_v4 = vadd.f32 %v3110_v0, %v2950_v56 }
 0x43b   : > { %v7981_v54 = vpop.f32.mrf.mxu0 }
 0x43d   : > { %v4724_v11 = vpop.f32.mrf.mxu0 }
 0x43e   : > { %v3181_v31 = vpop.f32.mrf.mxu1 }
 0x43f   : > { %v7986_v53 = vadd.f32 %v3181_v31, %v7884_v46  ;;  %v4725_v1 = vpop.f32.mrf.mxu0 }
 0x440   : > { %v7988_v3 = vadd.f32 %v4725_v1, %v4724_v11  ;;  %v3183_v14 = vpop.f32.mrf.mxu1 }
 0x441   : > { %v7991_v33 = vadd.f32 %v3183_v14, %v7889_v38  ;;  %v4727_v57 = vpop.f32.mrf.mxu0 }
 0x442   : > { %v3187_v61 = vpop.f32.mrf.mxu1 }
 0x443   : > { %v7994_v10 = vadd.f32 %v3187_v61, %v7894_v18  ;;  %v4728_v37 = vpop.f32.mrf.mxu0 }
 0x444   : > { %v7997_v28 = vadd.f32 %v4728_v37, %v4727_v57  ;;  %v3189_v29 = vpop.f32.mrf.mxu1 }
 0x445   : > { %v8000_v46 = vadd.f32 %v3189_v29, %v7898_v6  ;;  %v4730_v15 = vpop.f32.mrf.mxu0 }
 0x446   : > { %v3193_v32 = vpop.f32.mrf.mxu1 }
 0x447   : > { %v8003_v42 = vadd.f32 %v3193_v32, %v7902_v63  ;;  %v4731_v38 = vpop.f32.mrf.mxu0 }
 0x448   : > { %v8005_v59 = vadd.f32 %v4731_v38, %v4730_v15  ;;  %v3195_v17 = vpop.f32.mrf.mxu1 }
 0x449   : > { %v8008_v18 = vadd.f32 %v3195_v17, %v7904_v22  ;;  %v4733_v51 = vpop.f32.mrf.mxu0 }
 0x44a   : > { %v3199_v25 = vpop.f32.mrf.mxu1 }
 0x44b   : > { %v8011_v39 = vadd.f32 %v3199_v25, %v7908_v40  ;;  %v4734_v45 = vpop.f32.mrf.mxu0 }
 0x44c   : > { %v8013_v6 = vadd.f32 %v4734_v45, %v4733_v51  ;;  %v3201_v20 = vpop.f32.mrf.mxu1 }
 0x44d   : > { %v8016_v23 = vadd.f32 %v3201_v20, %v7910_v2  ;;  %v4736_v63 = vpop.f32.mrf.mxu0 }
 0x44e   : > { %v3205_v5 = vpop.f32.mrf.mxu1 }
 0x44f   : > { %v8019_v41 = vadd.f32 %v3205_v5, %v7914_v27  ;;  %v4737_v56 = vpop.f32.mrf.mxu0 }
 0x450   : > { %v8021_v22 = vadd.f32 %v4737_v56, %v4736_v63  ;;  %v3207_v0 = vpop.f32.mrf.mxu1 }
 0x451   : > { %v8024_v11 = vadd.f32 %v3207_v0, %v7916_v44  ;;  %v4739_v40 = vpop.f32.mrf.mxu0 }
 0x452   : > { %v3211_v31 = vpop.f32.mrf.mxu1 }
 0x453   : > { %v8027_v1 = vadd.f32 %v3211_v31, %v7920_v36  ;;  %v4740_v14 = vpop.f32.mrf.mxu0 }
 0x454   : > { %v8029_v2 = vadd.f32 %v4740_v14, %v4739_v40  ;;  %v3213_v57 = vpop.f32.mrf.mxu1 }
 0x455   : > { %v8032_v61 = vadd.f32 %v3213_v57, %v7922_v49  ;;  %v8034_v27 = vpop.f32.mrf.mxu0 }
 0x456   : > { %v3217_v37 = vpop.f32.mrf.mxu1 }
 0x457   : > { %v8037_v29 = vadd.f32 %v3217_v37, %v7926_v21  ;;  %v8039_v44 = vpop.f32.mrf.mxu0 }
 0x458   : > { %v3219_v15 = vpop.f32.mrf.mxu1 }
 0x459   : > { %v8042_v32 = vadd.f32 %v3219_v15, %v7928_v48  ;;  %v8044_v36 = vpop.f32.mrf.mxu0 }
 0x45a   : > { %v3223_v38 = vpop.f32.mrf.mxu1 }
 0x45b   : > { %v8047_v17 = vadd.f32 %v3223_v38, %v7932_v16  ;;  %v8049_v49 = vpop.f32.mrf.mxu0 }
 0x45c   : > { %v3225_v51 = vpop.f32.mrf.mxu1 }
 0x45d   : > { %v8052_v25 = vadd.f32 %v3225_v51, %v7934_v62  ;;  %v8054_v21 = vpop.f32.mrf.mxu0 }
 0x45e   : > { %v3229_v45 = vpop.f32.mrf.mxu1 }
 0x45f   : > { %v8057_v20 = vadd.f32 %v3229_v45, %v7938_v52  ;;  %v8059_v48 = vpop.f32.mrf.mxu0 }
 0x460   : > { %v3231_v63 = vpop.f32.mrf.mxu1 }
 0x461   : > { %v8062_v5 = vadd.f32 %v3231_v63, %v7941_v58  ;;  %v8064_v16 = vpop.f32.mrf.mxu0 }
 0x462   : > { %v3235_v56 = vpop.f32.mrf.mxu1 }
 0x463   : > { %v8067_v0 = vadd.f32 %v3235_v56, %v7944_v60  ;;  %v8069_v62 = vpop.f32.mrf.mxu0 }
 0x464   : > { %v3237_v40 = vpop.f32.mrf.mxu1 }
 0x465   : > { %8763 = vst [vmem:[#allocation43_spill] sm:$0xff] %v8067_v0  ;;  %v8072_v31 = vadd.f32 %v3237_v40, %v7947_v47  ;;  %v8074_v52 = vpop.f32.mrf.mxu0 }
 0x466   : > { %v3241_v14 = vpop.f32.mrf.mxu1 }
 0x467   : > { %8764 = vst [vmem:[#allocation42_spill] sm:$0xff] %v8072_v31  ;;  %v8077_v57 = vadd.f32 %v3241_v14, %v7950_v9  ;;  %v8079_v58 = vpop.f32.mrf.mxu0 }
 0x468   : > { %v3243_v37 = vpop.f32.mrf.mxu1 }
 0x469   : > { %8765 = vst [vmem:[#allocation44_spill] sm:$0xff] %v8077_v57  ;;  %v8082_v15 = vadd.f32 %v3243_v37, %v7953_v7  ;;  %v8084_v60 = vpop.f32.mrf.mxu0 }
 0x46a   : > { %v3247_v38 = vpop.f32.mrf.mxu1 }
 0x46b   : > { %8766 = vst [vmem:[#allocation45_spill] sm:$0xff] %v8082_v15  ;;  %v8087_v51 = vadd.f32 %v3247_v38, %v7956_v24  ;;  %v8089_v47 = vpop.f32.mrf.mxu0 }
 0x46c   : > { %v3249_v45 = vpop.f32.mrf.mxu1 }
 0x46d   : > { %8767 = vst [vmem:[#allocation47_spill] sm:$0xff] %v8087_v51  ;;  %v8092_v63 = vadd.f32 %v3249_v45, %v7959_v13  ;;  %v8094_v9 = vpop.f32.mrf.mxu0 }
 0x46e   : > { %v3253_v56 = vpop.f32.mrf.mxu1 }
 0x46f   : > { %8768 = vst [vmem:[#allocation46_spill] sm:$0xff] %v8092_v63  ;;  %v8097_v40 = vadd.f32 %v3253_v56, %v7962_v19  ;;  %v8099_v7 = vpop.f32.mrf.mxu0 }
 0x470   : > { %v3255_v14 = vpop.f32.mrf.mxu1 }
 0x471   : > { %8769 = vst [vmem:[#allocation48_spill] sm:$0xff] %v8097_v40  ;;  %v8102_v37 = vadd.f32 %v3255_v14, %v7965_v8  ;;  %v8104_v24 = vpop.f32.mrf.mxu0 }
 0x472   : > { %v3259_v38 = vpop.f32.mrf.mxu1 }
 0x473   : > { %8770 = vst [vmem:[#allocation50_spill] sm:$0xff] %v8102_v37  ;;  %v8107_v51 = vadd.f32 %v3259_v38, %v7968_v30  ;;  %v8109_v13 = vpop.f32.mrf.mxu0  ;;  %v2952_v30 = vadd.f32 %v7983_v26, %v7876_v55 }
 0x474   : > { %v3261_v45 = vpop.f32.mrf.mxu1 }
 0x475   : > { %8771 = vst [vmem:[#allocation49_spill] sm:$0xff] %v8107_v51  ;;  %v8112_v63 = vadd.f32 %v3261_v45, %v7971_v35  ;;  %v3113_v35 = vadd.f32 %v7981_v54, %v2952_v30 }
 0x476   : > { %v8114_v19 = vpop.f32.mrf.mxu0 }
 0x477   : > { %8772 = vst [vmem:[#allocation51_spill] sm:$0xff] %v8112_v63  ;;  %v3265_v56 = vpop.f32.mrf.mxu1 }
 0x478   : > { %v8117_v40 = vadd.f32 %v3265_v56, %v7974_v34  ;;  %v8119_v8 = vpop.f32.mrf.mxu0  ;;  %v8776_v56 = vsub.s32 2, %v6885_v12 }
 0x479   : > { %v3267_v14 = vpop.f32.mrf.mxu1 }
 0x47a   : > { %8773 = vst [vmem:[#allocation52_spill] sm:$0xff] %v8117_v40  ;;  %v8122_v37 = vadd.f32 %v3267_v14, %v7977_v50  ;;  %v8137_v40 = vrot.slane %v7860_v43, %v8776_v56 }
 0x47b   : > { %v8126_v38 = vpop.f32.mrf.mxu0 }
 0x47c   : > { %8774 = vst [vmem:[#allocation53_spill] sm:$0xff] %v8122_v37  ;;  %v3271_v51 = vpop.f32.mrf.mxu1  ;;  %v3343_v37 = vadd.f32 %v7988_v3, %v8137_v40  ;;  %v3348_v15 = vadd.f32 %v7997_v28, %v8137_v40  ;;  %v3353_v57 = vadd.f32 %v8005_v59, %v8137_v40  ;;  %v3358_v28 = vadd.f32 %v8013_v6, %v8137_v40 }
 0x47d   : > { %v8130_v45 = vadd.f32 %v3271_v51, %v7979_v4  ;;  %v8132_v63 = vpop.f32.mrf.mxu0  ;;  %v3363_v59 = vadd.f32 %v8021_v22, %v8137_v40  ;;  %v3368_v6 = vadd.f32 %v8029_v2, %v8137_v40 }
 0x47e   : > { %v3273_v34 = vpop.f32.mrf.mxu1 }
 0x47f   : > { %8775 = vst [vmem:[#allocation54_spill] sm:$0xff] %v8130_v45  ;;  %v8139_v50 = vadd.f32 %v3273_v34, %v3113_v35 }
 0x480   : > { %v4804_v14 = vpop.f32.mrf.mxu1  ;;  %v4993_v55 = vpop.f32.mrf.mxu0 }
 0x481   : > { %8777 = vst [vmem:[#allocation55_spill] sm:$0xff] %v8139_v50 }
 0x482   : > { %v4805_v26 = vpop.f32.mrf.mxu1  ;;  %v3632_v51 = vpop.f32.mrf.mxu0 }
 0x483   : > { %v4806_v54 = vadd.f32 %v4805_v26, %v4804_v14 }
 0x484   : > { %v4807_v30 = vpop.f32.mrf.mxu1  ;;  %v4996_v34 = vpop.f32.mrf.mxu0 }
 0x485   : > { %v3488_v4 = vadd.f32 %v4806_v54, %v3343_v37 }
 0x486   : > { %v4808_v45 = vpop.f32.mrf.mxu1  ;;  %v3642_v26 = vpop.f32.mrf.mxu0 }
 0x487   : > { %v8145_v12 = vadd.f32 %v3632_v51, %v3488_v4  ;;  %v4809_v43 = vadd.f32 %v4808_v45, %v4807_v30 }
 0x488   : > { %v4810_v56 = vpop.f32.mrf.mxu1  ;;  %v4999_v51 = vpop.f32.mrf.mxu0 }
 0x489   : > { %v3493_v35 = vadd.f32 %v4809_v43, %v3348_v15 }
 0x48a   : > { %v4811_v50 = vpop.f32.mrf.mxu1 }
 0x48b   : > { %v8149_v31 = vadd.f32 %v4993_v55, %v3493_v35  ;;  %v4812_v3 = vadd.f32 %v4811_v50, %v4810_v56  ;;  %v3652_v35 = vpop.f32.mrf.mxu0 }
 0x48c   : > { %v4813_v14 = vpop.f32.mrf.mxu1 }
 0x48d   : > { %v3498_v37 = vadd.f32 %v4812_v3, %v3353_v57 }
 0x48e   : > { %v4814_v54 = vpop.f32.mrf.mxu1 }
 0x48f   : > { %v8153_v4 = vadd.f32 %v3642_v26, %v3498_v37  ;;  %v4815_v45 = vadd.f32 %v4814_v54, %v4813_v14  ;;  %v4744_v14 = vadd.f32 %v8039_v44, %v8034_v27  ;;  %v4750_v44 = vadd.f32 %v8059_v48, %v8054_v21 }
 0x490   : > { %v4816_v30 = vpop.f32.mrf.mxu1  ;;  %v4756_v48 = vadd.f32 %v8079_v58, %v8074_v52  ;;  %v4762_v58 = vadd.f32 %v8099_v7, %v8094_v9  ;;  %v4768_v7 = vadd.f32 %v8119_v8, %v8114_v19 }
 0x491   : > { %v3503_v15 = vadd.f32 %v4815_v45, %v3358_v28  ;;  %v5002_v45 = vpop.f32.mrf.mxu0 }
 0x492   : > { %v4817_v43 = vpop.f32.mrf.mxu1 }
 0x493   : > { %v8157_v55 = vadd.f32 %v4996_v34, %v3503_v15  ;;  %v4818_v50 = vadd.f32 %v4817_v43, %v4816_v30  ;;  %v3373_v34 = vadd.f32 %v4744_v14, %v8137_v40  ;;  %v4747_v30 = vadd.f32 %v8049_v49, %v8044_v36 }
 0x494   : > { %v4819_v56 = vpop.f32.mrf.mxu1  ;;  %v3383_v36 = vadd.f32 %v4750_v44, %v8137_v40  ;;  %v4753_v49 = vadd.f32 %v8069_v62, %v8064_v16  ;;  %v3393_v16 = vadd.f32 %v4756_v48, %v8137_v40  ;;  %v4759_v62 = vadd.f32 %v8089_v47, %v8084_v60 }
 0x495   : > { %v3508_v57 = vadd.f32 %v4818_v50, %v3363_v59  ;;  %v3662_v50 = vpop.f32.mrf.mxu0  ;;  %v3378_v27 = vadd.f32 %v4747_v30, %v8137_v40  ;;  %v3403_v60 = vadd.f32 %v4762_v58, %v8137_v40  ;;  %v4765_v47 = vadd.f32 %v8109_v13, %v8104_v24 }
 0x496   : > { %v4820_v3 = vpop.f32.mrf.mxu1  ;;  %v3388_v21 = vadd.f32 %v4753_v49, %v8137_v40  ;;  %v3398_v52 = vadd.f32 %v4759_v62, %v8137_v40  ;;  %v3413_v24 = vadd.f32 %v4768_v7, %v8137_v40  ;;  %v4771_v13 = vadd.f32 %v8132_v63, %v8126_v38 }
 0x497   : > { %v8163_v37 = vadd.f32 %v3652_v35, %v3508_v57  ;;  %v4821_v26 = vadd.f32 %v4820_v3, %v4819_v56  ;;  %v3408_v9 = vadd.f32 %v4765_v47, %v8137_v40 }
 0x498   : > { %v4822_v54 = vpop.f32.mrf.mxu1  ;;  %v3418_v19 = vadd.f32 %v4771_v13, %v8137_v40 }
 0x499   : > { %v3513_v28 = vadd.f32 %v4821_v26, %v3368_v6  ;;  %v5005_v6 = vpop.f32.mrf.mxu0 }
 0x49a   : > { %v4823_v22 = vpop.f32.mrf.mxu1 }
 0x49b   : > { %v8168_v15 = vadd.f32 %v4999_v51, %v3513_v28  ;;  %v4824_v43 = vadd.f32 %v4823_v22, %v4822_v54  ;;  %v3672_v22 = vpop.f32.mrf.mxu0 }
 0x49c   : > { %v4825_v59 = vpop.f32.mrf.mxu1 }
 0x49d   : > { %v3518_v2 = vadd.f32 %v4824_v43, %v3373_v34 }
 0x49e   : > { %v4826_v0 = vpop.f32.mrf.mxu1 }
 0x49f   : > { %v8173_v56 = vadd.f32 %v3662_v50, %v3518_v2  ;;  %v4827_v57 = vadd.f32 %v4826_v0, %v4825_v59  ;;  %v5008_v2 = vpop.f32.mrf.mxu0 }
 0x4a0   : > { %v4828_v35 = vpop.f32.mrf.mxu1 }
 0x4a1   : > { %v3523_v3 = vadd.f32 %v4827_v57, %v3378_v27 }
 0x4a2   : > { %v4829_v14 = vpop.f32.mrf.mxu1 }
 0x4a3   : > { %v8178_v51 = vadd.f32 %v5002_v45, %v3523_v3  ;;  %v4830_v26 = vadd.f32 %v4829_v14, %v4828_v35  ;;  %v3682_v35 = vpop.f32.mrf.mxu0 }
 0x4a4   : > { %v4831_v54 = vpop.f32.mrf.mxu1 }
 0x4a5   : > { %v3528_v28 = vadd.f32 %v4830_v26, %v3383_v36 }
 0x4a6   : > { %v4832_v34 = vpop.f32.mrf.mxu1 }
 0x4a7   : > { %v8183_v0 = vadd.f32 %v3672_v22, %v3528_v28  ;;  %v4833_v30 = vadd.f32 %v4832_v34, %v4831_v54  ;;  %v5011_v54 = vpop.f32.mrf.mxu0 }
 0x4a8   : > { %v4834_v43 = vpop.f32.mrf.mxu1 }
 0x4a9   : > { %v3533_v59 = vadd.f32 %v4833_v30, %v3388_v21  ;;  %v3692_v48 = vpop.f32.mrf.mxu0 }
 0x4aa   : > { %v4835_v50 = vpop.f32.mrf.mxu1 }
 0x4ab   : > { %v8188_v45 = vadd.f32 %v5005_v6, %v3533_v59  ;;  %v4836_v27 = vadd.f32 %v4835_v50, %v4834_v43  ;;  %v5014_v62 = vpop.f32.mrf.mxu0 }
 0x4ac   : > { %v4837_v44 = vpop.f32.mrf.mxu1 }
 0x4ad   : > { %v3538_v57 = vadd.f32 %v4836_v27, %v3393_v16 }
 0x4ae   : > { %v4838_v3 = vpop.f32.mrf.mxu1 }
 0x4af   : > { %v8193_v14 = vadd.f32 %v3682_v35, %v3538_v57  ;;  %v4839_v36 = vadd.f32 %v4838_v3, %v4837_v44  ;;  %v3702_v3 = vpop.f32.mrf.mxu0 }
 0x4b0   : > { %v4840_v49 = vpop.f32.mrf.mxu1 }
 0x4b1   : > { %v3543_v26 = vadd.f32 %v4839_v36, %v3398_v52 }
 0x4b2   : > { %v4841_v28 = vpop.f32.mrf.mxu1 }
 0x4b3   : > { %v8198_v6 = vadd.f32 %v5008_v2, %v3543_v26  ;;  %v4842_v22 = vadd.f32 %v4841_v28, %v4840_v49 }
 0x4b4   : > { %v4843_v34 = vpop.f32.mrf.mxu1 }
 0x4b5   : > { %v3548_v21 = vadd.f32 %v4842_v22, %v3403_v60 }
 0x4b6   : > { %v4844_v30 = vpop.f32.mrf.mxu1 }
 0x4b7   : > { %v8203_v43 = vadd.f32 %v3692_v48, %v3548_v21  ;;  %v4845_v59 = vadd.f32 %v4844_v30, %v4843_v34 }
 0x4b8   : > { %v4846_v50 = vpop.f32.mrf.mxu1 }
 0x4b9   : > { %v3553_v16 = vadd.f32 %v4845_v59, %v3408_v9 }
 0x4ba   : > { %v4847_v27 = vpop.f32.mrf.mxu1 }
 0x4bb   : > { %v8208_v2 = vadd.f32 %v5011_v54, %v3553_v16  ;;  %v4848_v44 = vadd.f32 %v4847_v27, %v4846_v50 }
 0x4bc   : > { %v4849_v57 = vpop.f32.mrf.mxu1 }
 0x4bd   : > { %v3558_v35 = vadd.f32 %v4848_v44, %v3413_v24 }
 0x4be   : > { %v4850_v52 = vpop.f32.mrf.mxu1 }
 0x4bf   : > { %v8211_v8 = vadd.f32 %v3702_v3, %v3558_v35  ;;  %v4851_v58 = vadd.f32 %v4850_v52, %v4849_v57  ;;  %3714 = sbr.rel (%p573_p12) target bundleno = 1246 (0x4de), region = 92 }
 0x4c1   : > { %v3563_v36 = vadd.f32 %v4851_v58, %v3418_v19 }
 0x4c3   : > { %v8213_v49 = vadd.f32 %v5014_v62, %v3563_v36 }
 0x4c4   : > { %v3716_v63 = vmax.f32 %v7986_v53, 0.0  ;;  %v3717_v38 = vmax.f32 %v7991_v33, 0.0  ;;  %v3718_v26 = vmax.f32 %v8145_v12, 0.0  ;;  %v3719_v54 = vmax.f32 %v7994_v10, 0.0  ;;  %v8779_v19 = vld [vmem:[#allocation43_spill] sm:$0xff]  ;;  %v8780_v36 = vld [vmem:[#allocation42_spill] sm:$0xff] }
 0x4c5   : > { %v3720_v40 = vmax.f32 %v8000_v46, 0.0  ;;  %v3721_v28 = vmax.f32 %v8149_v31, 0.0  ;;  %v3722_v60 = vmax.f32 %v8003_v42, 0.0  ;;  %v3723_v47 = vmax.f32 %v8008_v18, 0.0 }
 0x4c6   : > { %v3724_v22 = vmax.f32 %v8153_v4, 0.0  ;;  %v3725_v34 = vmax.f32 %v8011_v39, 0.0  ;;  %v3726_v21 = vmax.f32 %v8016_v23, 0.0  ;;  %v3727_v48 = vmax.f32 %v8157_v55, 0.0  ;;  %3769 = vst [vmem:[%s8238_s21] sm:$0xff] %v3716_v63  ;;  %3770 = vst [vmem:[%s8238_s21 + $0x8] sm:$0xff] %v3717_v38 }
 0x4c7   : > { %v3728_v30 = vmax.f32 %v8019_v41, 0.0  ;;  %v3729_v9 = vmax.f32 %v8024_v11, 0.0  ;;  %v3730_v7 = vmax.f32 %v8163_v37, 0.0  ;;  %v3731_v59 = vmax.f32 %v8027_v1, 0.0  ;;  %3771 = vst [vmem:[%s8238_s21 + $0x10] sm:$0xff] %v3718_v26  ;;  %3772 = vst [vmem:[%s8238_s21 + $0x18] sm:$0xff] %v3719_v54 }
 0x4c8   : > { %v3732_v50 = vmax.f32 %v8032_v61, 0.0  ;;  %v3733_v16 = vmax.f32 %v8168_v15, 0.0  ;;  %v3734_v62 = vmax.f32 %v8037_v29, 0.0  ;;  %v3735_v27 = vmax.f32 %v8042_v32, 0.0  ;;  %3773 = vst [vmem:[%s8238_s21 + $0x20] sm:$0xff] %v3720_v40  ;;  %3774 = vst [vmem:[%s8238_s21 + $0x28] sm:$0xff] %v3721_v28 }
 0x4c9   : > { %3775 = vst [vmem:[%s8238_s21 + $0x30] sm:$0xff] %v3722_v60  ;;  %3776 = vst [vmem:[%s8238_s21 + $0x38] sm:$0xff] %v3723_v47  ;;  %v3736_v24 = vmax.f32 %v8173_v56, 0.0  ;;  %v3737_v13 = vmax.f32 %v8047_v17, 0.0  ;;  %v3738_v44 = vmax.f32 %v8052_v25, 0.0  ;;  %v3739_v57 = vmax.f32 %v8178_v51, 0.0 }
 0x4ca   : > { %3777 = vst [vmem:[%s8238_s21 + $0x40] sm:$0xff] %v3724_v22  ;;  %3778 = vst [vmem:[%s8238_s21 + $0x48] sm:$0xff] %v3725_v34  ;;  %v3740_v35 = vmax.f32 %v8057_v20, 0.0  ;;  %v3741_v3 = vmax.f32 %v8062_v5, 0.0  ;;  %v3742_v52 = vmax.f32 %v8183_v0, 0.0  ;;  %v3743_v58 = vmax.f32 %v8779_v19, 0.0 }
 0x4cb   : > { %3779 = vst [vmem:[%s8238_s21 + $0x50] sm:$0xff] %v3726_v21  ;;  %3780 = vst [vmem:[%s8238_s21 + $0x58] sm:$0xff] %v3727_v48  ;;  %v3744_v63 = vmax.f32 %v8780_v36, 0.0  ;;  %v3745_v38 = vmax.f32 %v8188_v45, 0.0  ;;  %v8781_v26 = vld [vmem:[#allocation44_spill] sm:$0xff]  ;;  %v8782_v40 = vld [vmem:[#allocation45_spill] sm:$0xff] }
 0x4cc   : > { %3781 = vst [vmem:[%s8238_s21 + $0x60] sm:$0xff] %v3728_v30  ;;  %3782 = vst [vmem:[%s8238_s21 + $0x68] sm:$0xff] %v3729_v9  ;;  %v3746_v54 = vmax.f32 %v8781_v26, 0.0  ;;  %v3747_v28 = vmax.f32 %v8782_v40, 0.0  ;;  %v3748_v60 = vmax.f32 %v8193_v14, 0.0  ;;  %v8783_v47 = vld [vmem:[#allocation47_spill] sm:$0xff] }
 0x4cd   : > { %3783 = vst [vmem:[%s8238_s21 + $0x70] sm:$0xff] %v3730_v7  ;;  %3784 = vst [vmem:[%s8238_s21 + $0x78] sm:$0xff] %v3731_v59  ;;  %v3749_v22 = vmax.f32 %v8783_v47, 0.0  ;;  %v8784_v34 = vld [vmem:[#allocation46_spill] sm:$0xff]  ;;  %v3751_v48 = vmax.f32 %v8198_v6, 0.0  ;;  %v8785_v30 = vld [vmem:[#allocation48_spill] sm:$0xff] }
 0x4ce   : > { %3785 = vst [vmem:[%s8238_s21 + $0x80] sm:$0xff] %v3732_v50  ;;  %3786 = vst [vmem:[%s8238_s21 + $0x88] sm:$0xff] %v3733_v16  ;;  %v3750_v21 = vmax.f32 %v8784_v34, 0.0  ;;  %v3752_v9 = vmax.f32 %v8785_v30, 0.0  ;;  %v8786_v7 = vld [vmem:[#allocation50_spill] sm:$0xff]  ;;  %v3754_v50 = vmax.f32 %v8203_v43, 0.0 }
 0x4cf   : > { %3787 = vst [vmem:[%s8238_s21 + $0x90] sm:$0xff] %v3734_v62  ;;  %3788 = vst [vmem:[%s8238_s21 + $0x98] sm:$0xff] %v3735_v27  ;;  %v3753_v59 = vmax.f32 %v8786_v7, 0.0  ;;  %v8787_v16 = vld [vmem:[#allocation49_spill] sm:$0xff]  ;;  %v8788_v27 = vld [vmem:[#allocation51_spill] sm:$0xff] }
 0x4d0   : > { %3789 = vst [vmem:[%s8238_s21 + $0xa0] sm:$0xff] %v3736_v24  ;;  %3790 = vst [vmem:[%s8238_s21 + $0xa8] sm:$0xff] %v3737_v13  ;;  %v3755_v62 = vmax.f32 %v8787_v16, 0.0  ;;  %v3756_v24 = vmax.f32 %v8788_v27, 0.0  ;;  %v3757_v13 = vmax.f32 %v8208_v2, 0.0  ;;  %v8791_v19 = vld [vmem:[#allocation54_spill] sm:$0xff] }
 0x4d1   : > { %3791 = vst [vmem:[%s8238_s21 + $0xb0] sm:$0xff] %v3738_v44  ;;  %3792 = vst [vmem:[%s8238_s21 + $0xb8] sm:$0xff] %v3739_v57  ;;  %v8789_v44 = vld [vmem:[#allocation52_spill] sm:$0xff]  ;;  %v8792_v36 = vld [vmem:[#allocation55_spill] sm:$0xff] }
 0x4d2   : > { %3793 = vst [vmem:[%s8238_s21 + $0xc0] sm:$0xff] %v3740_v35  ;;  %3794 = vst [vmem:[%s8238_s21 + $0xc8] sm:$0xff] %v3741_v3  ;;  %v3758_v57 = vmax.f32 %v8789_v44, 0.0  ;;  %v8790_v35 = vld [vmem:[#allocation53_spill] sm:$0xff] }
 0x4d3   : > { %3795 = vst [vmem:[%s8238_s21 + $0xd0] sm:$0xff] %v3742_v52  ;;  %3796 = vst [vmem:[%s8238_s21 + $0xd8] sm:$0xff] %v3743_v58  ;;  %v3759_v3 = vmax.f32 %v8790_v35, 0.0  ;;  %v3760_v52 = vmax.f32 %v8211_v8, 0.0  ;;  %v3761_v58 = vmax.f32 %v8791_v19, 0.0 }
 0x4d4   : > { %3797 = vst [vmem:[%s8238_s21 + $0xe0] sm:$0xff] %v3744_v63  ;;  %3798 = vst [vmem:[%s8238_s21 + $0xe8] sm:$0xff] %v3745_v38  ;;  %v3762_v63 = vmax.f32 %v8792_v36, 0.0  ;;  %v3763_v38 = vmax.f32 %v8213_v49, 0.0 }
 0x4d5   : > { %3799 = vst [vmem:[%s8238_s21 + $0xf0] sm:$0xff] %v3746_v54  ;;  %3800 = vst [vmem:[%s8238_s21 + $0xf8] sm:$0xff] %v3747_v28 }
 0x4d6   : > { %3801 = vst [vmem:[%s8238_s21 + $0x100] sm:$0xff] %v3748_v60  ;;  %3802 = vst [vmem:[%s8238_s21 + $0x108] sm:$0xff] %v3749_v22 }
 0x4d7   : > { %3803 = vst [vmem:[%s8238_s21 + $0x110] sm:$0xff] %v3750_v21  ;;  %3804 = vst [vmem:[%s8238_s21 + $0x118] sm:$0xff] %v3751_v48 }
 0x4d8   : > { %3805 = vst [vmem:[%s8238_s21 + $0x120] sm:$0xff] %v3752_v9  ;;  %3806 = vst [vmem:[%s8238_s21 + $0x128] sm:$0xff] %v3753_v59 }
 0x4d9   : > { %3807 = vst [vmem:[%s8238_s21 + $0x130] sm:$0xff] %v3754_v50  ;;  %3808 = vst [vmem:[%s8238_s21 + $0x138] sm:$0xff] %v3755_v62 }
 0x4da   : > { %3809 = vst [vmem:[%s8238_s21 + $0x140] sm:$0xff] %v3756_v24  ;;  %3810 = vst [vmem:[%s8238_s21 + $0x148] sm:$0xff] %v3757_v13 }
 0x4db   : > { %3811 = vst [vmem:[%s8238_s21 + $0x150] sm:$0xff] %v3758_v57  ;;  %3812 = vst [vmem:[%s8238_s21 + $0x158] sm:$0xff] %v3759_v3 }
 0x4dc   : > { %3813 = vst [vmem:[%s8238_s21 + $0x160] sm:$0xff] %v3760_v52  ;;  %3814 = vst [vmem:[%s8238_s21 + $0x168] sm:$0xff] %v3761_v58 }
 0x4dd   : > { %3815 = vst [vmem:[%s8238_s21 + $0x170] sm:$0xff] %v3762_v63  ;;  %3816 = vst [vmem:[%s8238_s21 + $0x178] sm:$0xff] %v3763_v38 }
 0x4de PF: > { %p3817_p4 = pnand %p3711_p8, %p575_p3 }
 0x4e0   : > { %3820 = sbr.rel (%p3817_p4) target bundleno = 1302 (0x516), region = 96 }
 0x4e5   : > { %v3821_v26 = vld [vmem:[#allocation3] sm:$0xff]  ;;  %v3822_v54 = vld [vmem:[#allocation3 + $0x8] sm:$0xff]  ;;  %v3823_v40 = vld [vmem:[#allocation3 + $0x10] sm:$0xff] }
 0x4e6   : > { %3917 = vst [vmem:[#allocation2 + $0x2b0] sm:$0xff] %v3821_v26  ;;  %3918 = vst [vmem:[#allocation2 + $0xd0] sm:$0xff] %v3822_v54  ;;  %v3824_v28 = vld [vmem:[#allocation3 + $0x18] sm:$0xff]  ;;  %v3825_v60 = vld [vmem:[#allocation3 + $0x20] sm:$0xff] }
 0x4e7   : > { %3919 = vst [vmem:[#allocation2 + $0x10] sm:$0xff] %v3823_v40  ;;  %v3826_v47 = vld [vmem:[#allocation3 + $0x28] sm:$0xff]  ;;  %3920 = vst [vmem:[#allocation2 + $0x48] sm:$0xff] %v3824_v28  ;;  %v3827_v22 = vld [vmem:[#allocation3 + $0x30] sm:$0xff] }
 0x4e8   : > { %3921 = vst [vmem:[#allocation2 + $0x30] sm:$0xff] %v3825_v60  ;;  %3922 = vst [vmem:[#allocation2 + $0xf0] sm:$0xff] %v3826_v47  ;;  %v3828_v34 = vld [vmem:[#allocation3 + $0x38] sm:$0xff]  ;;  %v3829_v21 = vld [vmem:[#allocation3 + $0x40] sm:$0xff] }
 0x4e9   : > { %3923 = vst [vmem:[#allocation2 + $0xf8] sm:$0xff] %v3827_v22  ;;  %3924 = vst [vmem:[#allocation2 + $0x78] sm:$0xff] %v3828_v34  ;;  %v3830_v48 = vld [vmem:[#allocation3 + $0x48] sm:$0xff]  ;;  %v3831_v30 = vld [vmem:[#allocation3 + $0x50] sm:$0xff] }
 0x4ea   : > { %3925 = vst [vmem:[#allocation2 + $0x128] sm:$0xff] %v3829_v21  ;;  %v3832_v9 = vld [vmem:[#allocation3 + $0x58] sm:$0xff]  ;;  %3926 = vst [vmem:[#allocation2 + $0xe0] sm:$0xff] %v3830_v48  ;;  %v3833_v7 = vld [vmem:[#allocation3 + $0x60] sm:$0xff] }
 0x4eb   : > { %3927 = vst [vmem:[#allocation2 + $0x2f8] sm:$0xff] %v3831_v30  ;;  %3928 = vst [vmem:[#allocation2 + $0x2b8] sm:$0xff] %v3832_v9  ;;  %v3834_v59 = vld [vmem:[#allocation3 + $0x68] sm:$0xff]  ;;  %v3835_v50 = vld [vmem:[#allocation3 + $0x70] sm:$0xff] }
 0x4ec   : > { %3929 = vst [vmem:[#allocation2 + $0x2a0] sm:$0xff] %v3833_v7  ;;  %3930 = vst [vmem:[#allocation2 + $0x168] sm:$0xff] %v3834_v59  ;;  %v3836_v16 = vld [vmem:[#allocation3 + $0x78] sm:$0xff]  ;;  %v3837_v62 = vld [vmem:[#allocation3 + $0x80] sm:$0xff] }
 0x4ed   : > { %3931 = vst [vmem:[#allocation2 + $0x178] sm:$0xff] %v3835_v50  ;;  %v3838_v27 = vld [vmem:[#allocation3 + $0x88] sm:$0xff]  ;;  %3932 = vst [vmem:[#allocation2 + $0x40] sm:$0xff] %v3836_v16  ;;  %v3839_v24 = vld [vmem:[#allocation3 + $0x90] sm:$0xff] }
 0x4ee   : > { %3933 = vst [vmem:[#allocation2] sm:$0xff] %v3837_v62  ;;  %3934 = vst [vmem:[#allocation2 + $0x248] sm:$0xff] %v3838_v27  ;;  %v3840_v13 = vld [vmem:[#allocation3 + $0x98] sm:$0xff]  ;;  %v3841_v44 = vld [vmem:[#allocation3 + $0xa0] sm:$0xff] }
 0x4ef   : > { %3935 = vst [vmem:[#allocation2 + $0xe8] sm:$0xff] %v3839_v24  ;;  %3936 = vst [vmem:[#allocation2 + $0x68] sm:$0xff] %v3840_v13  ;;  %v3842_v57 = vld [vmem:[#allocation3 + $0xa8] sm:$0xff]  ;;  %v3843_v35 = vld [vmem:[#allocation3 + $0xb0] sm:$0xff] }
 0x4f0   : > { %3937 = vst [vmem:[#allocation2 + $0x228] sm:$0xff] %v3841_v44  ;;  %v3844_v3 = vld [vmem:[#allocation3 + $0xb8] sm:$0xff]  ;;  %3938 = vst [vmem:[#allocation2 + $0xa8] sm:$0xff] %v3842_v57  ;;  %v3845_v52 = vld [vmem:[#allocation3 + $0xc0] sm:$0xff] }
 0x4f1   : > { %3939 = vst [vmem:[#allocation2 + $0x20] sm:$0xff] %v3843_v35  ;;  %3940 = vst [vmem:[#allocation2 + $0x1b0] sm:$0xff] %v3844_v3  ;;  %v3846_v19 = vld [vmem:[#allocation3 + $0xc8] sm:$0xff]  ;;  %v3847_v58 = vld [vmem:[#allocation3 + $0xd0] sm:$0xff] }
 0x4f2   : > { %3941 = vst [vmem:[#allocation2 + $0x220] sm:$0xff] %v3845_v52  ;;  %3942 = vst [vmem:[#allocation2 + $0x258] sm:$0xff] %v3846_v19  ;;  %v3848_v36 = vld [vmem:[#allocation3 + $0xd8] sm:$0xff]  ;;  %v3849_v63 = vld [vmem:[#allocation3 + $0xe0] sm:$0xff] }
 0x4f3   : > { %3943 = vst [vmem:[#allocation2 + $0x238] sm:$0xff] %v3847_v58  ;;  %v3850_v38 = vld [vmem:[#allocation3 + $0xe8] sm:$0xff]  ;;  %3944 = vst [vmem:[#allocation2 + $0x130] sm:$0xff] %v3848_v36  ;;  %v3851_v26 = vld [vmem:[#allocation3 + $0xf0] sm:$0xff] }
 0x4f4   : > { %3945 = vst [vmem:[#allocation2 + $0x158] sm:$0xff] %v3849_v63  ;;  %3946 = vst [vmem:[#allocation2 + $0x98] sm:$0xff] %v3850_v38  ;;  %v3852_v54 = vld [vmem:[#allocation3 + $0xf8] sm:$0xff]  ;;  %v3853_v40 = vld [vmem:[#allocation3 + $0x100] sm:$0xff] }
 0x4f5   : > { %3947 = vst [vmem:[#allocation2 + $0x2e0] sm:$0xff] %v3851_v26  ;;  %3948 = vst [vmem:[#allocation2 + $0x1a8] sm:$0xff] %v3852_v54  ;;  %v3854_v28 = vld [vmem:[#allocation3 + $0x108] sm:$0xff]  ;;  %v3855_v60 = vld [vmem:[#allocation3 + $0x110] sm:$0xff] }
 0x4f6   : > { %3949 = vst [vmem:[#allocation2 + $0x1b8] sm:$0xff] %v3853_v40  ;;  %v3856_v47 = vld [vmem:[#allocation3 + $0x118] sm:$0xff]  ;;  %3950 = vst [vmem:[#allocation2 + $0x80] sm:$0xff] %v3854_v28  ;;  %v3857_v22 = vld [vmem:[#allocation3 + $0x120] sm:$0xff] }
 0x4f7   : > { %3951 = vst [vmem:[#allocation2 + $0x188] sm:$0xff] %v3855_v60  ;;  %3952 = vst [vmem:[#allocation2 + $0x208] sm:$0xff] %v3856_v47  ;;  %v3858_v34 = vld [vmem:[#allocation3 + $0x128] sm:$0xff]  ;;  %v3859_v21 = vld [vmem:[#allocation3 + $0x130] sm:$0xff] }
 0x4f8   : > { %3953 = vst [vmem:[#allocation2 + $0x38] sm:$0xff] %v3857_v22  ;;  %3954 = vst [vmem:[#allocation2 + $0x190] sm:$0xff] %v3858_v34  ;;  %v3860_v48 = vld [vmem:[#allocation3 + $0x138] sm:$0xff]  ;;  %v3861_v30 = vld [vmem:[#allocation3 + $0x140] sm:$0xff] }
 0x4f9   : > { %3955 = vst [vmem:[#allocation2 + $0x218] sm:$0xff] %v3859_v21  ;;  %v3862_v9 = vld [vmem:[#allocation3 + $0x148] sm:$0xff]  ;;  %3956 = vst [vmem:[#allocation2 + $0x250] sm:$0xff] %v3860_v48  ;;  %v3863_v7 = vld [vmem:[#allocation3 + $0x150] sm:$0xff] }
 0x4fa   : > { %3957 = vst [vmem:[#allocation2 + $0x1c8] sm:$0xff] %v3861_v30  ;;  %3958 = vst [vmem:[#allocation2 + $0x280] sm:$0xff] %v3862_v9  ;;  %v3864_v59 = vld [vmem:[#allocation3 + $0x158] sm:$0xff]  ;;  %v3865_v50 = vld [vmem:[#allocation3 + $0x160] sm:$0xff] }
 0x4fb   : > { %3959 = vst [vmem:[#allocation2 + $0x100] sm:$0xff] %v3863_v7  ;;  %3960 = vst [vmem:[#allocation2 + $0xb8] sm:$0xff] %v3864_v59  ;;  %v3866_v16 = vld [vmem:[#allocation3 + $0x168] sm:$0xff]  ;;  %v3867_v62 = vld [vmem:[#allocation3 + $0x170] sm:$0xff] }
 0x4fc   : > { %3961 = vst [vmem:[#allocation2 + $0x288] sm:$0xff] %v3865_v50  ;;  %v3868_v27 = vld [vmem:[#allocation3 + $0x178] sm:$0xff]  ;;  %3962 = vst [vmem:[#allocation2 + $0x60] sm:$0xff] %v3866_v16  ;;  %v3869_v24 = vld [vmem:[#allocation3 + $0x180] sm:$0xff] }
 0x4fd   : > { %3963 = vst [vmem:[#allocation2 + $0x210] sm:$0xff] %v3867_v62  ;;  %3964 = vst [vmem:[#allocation2 + $0x50] sm:$0xff] %v3868_v27  ;;  %v3870_v13 = vld [vmem:[#allocation3 + $0x188] sm:$0xff]  ;;  %v3871_v44 = vld [vmem:[#allocation3 + $0x190] sm:$0xff] }
 0x4fe   : > { %3965 = vst [vmem:[#allocation2 + $0x1e8] sm:$0xff] %v3869_v24  ;;  %3966 = vst [vmem:[#allocation2 + $0x2d0] sm:$0xff] %v3870_v13  ;;  %v3872_v57 = vld [vmem:[#allocation3 + $0x198] sm:$0xff]  ;;  %v3873_v35 = vld [vmem:[#allocation3 + $0x1a0] sm:$0xff] }
 0x4ff   : > { %3967 = vst [vmem:[#allocation2 + $0x1f0] sm:$0xff] %v3871_v44  ;;  %v3874_v3 = vld [vmem:[#allocation3 + $0x1a8] sm:$0xff]  ;;  %3968 = vst [vmem:[#allocation2 + $0x28] sm:$0xff] %v3872_v57  ;;  %v3875_v52 = vld [vmem:[#allocation3 + $0x1b0] sm:$0xff] }
 0x500   : > { %3969 = vst [vmem:[#allocation2 + $0x138] sm:$0xff] %v3873_v35  ;;  %3970 = vst [vmem:[#allocation2 + $0xc8] sm:$0xff] %v3874_v3  ;;  %v3876_v19 = vld [vmem:[#allocation3 + $0x1b8] sm:$0xff]  ;;  %v3877_v58 = vld [vmem:[#allocation3 + $0x1c0] sm:$0xff] }
 0x501   : > { %3971 = vst [vmem:[#allocation2 + $0x58] sm:$0xff] %v3875_v52  ;;  %3972 = vst [vmem:[#allocation2 + $0x1c0] sm:$0xff] %v3876_v19  ;;  %v3878_v36 = vld [vmem:[#allocation3 + $0x1c8] sm:$0xff]  ;;  %v3879_v63 = vld [vmem:[#allocation3 + $0x1d0] sm:$0xff] }
 0x502   : > { %3973 = vst [vmem:[#allocation2 + $0x298] sm:$0xff] %v3877_v58  ;;  %v3880_v38 = vld [vmem:[#allocation3 + $0x1d8] sm:$0xff]  ;;  %3974 = vst [vmem:[#allocation2 + $0x70] sm:$0xff] %v3878_v36  ;;  %v3881_v26 = vld [vmem:[#allocation3 + $0x1e0] sm:$0xff] }
 0x503   : > { %3975 = vst [vmem:[#allocation2 + $0x18] sm:$0xff] %v3879_v63  ;;  %3976 = vst [vmem:[#allocation2 + $0x120] sm:$0xff] %v3880_v38  ;;  %v3882_v54 = vld [vmem:[#allocation3 + $0x1e8] sm:$0xff]  ;;  %v3883_v40 = vld [vmem:[#allocation3 + $0x1f0] sm:$0xff] }
 0x504   : > { %3977 = vst [vmem:[#allocation2 + $0x240] sm:$0xff] %v3881_v26  ;;  %3978 = vst [vmem:[#allocation2 + $0x180] sm:$0xff] %v3882_v54  ;;  %v3884_v28 = vld [vmem:[#allocation3 + $0x1f8] sm:$0xff]  ;;  %v3885_v60 = vld [vmem:[#allocation3 + $0x200] sm:$0xff] }
 0x505   : > { %3979 = vst [vmem:[#allocation2 + $0x1f8] sm:$0xff] %v3883_v40  ;;  %v3886_v47 = vld [vmem:[#allocation3 + $0x208] sm:$0xff]  ;;  %3980 = vst [vmem:[#allocation2 + $0x1a0] sm:$0xff] %v3884_v28  ;;  %v3887_v22 = vld [vmem:[#allocation3 + $0x210] sm:$0xff] }
 0x506   : > { %3981 = vst [vmem:[#allocation2 + $0xa0] sm:$0xff] %v3885_v60  ;;  %3982 = vst [vmem:[#allocation2 + $0x278] sm:$0xff] %v3886_v47  ;;  %v3888_v34 = vld [vmem:[#allocation3 + $0x218] sm:$0xff]  ;;  %v3889_v21 = vld [vmem:[#allocation3 + $0x220] sm:$0xff] }
 0x507   : > { %3983 = vst [vmem:[#allocation2 + $0x8] sm:$0xff] %v3887_v22  ;;  %3984 = vst [vmem:[#allocation2 + $0x2c0] sm:$0xff] %v3888_v34  ;;  %v3890_v48 = vld [vmem:[#allocation3 + $0x228] sm:$0xff]  ;;  %v3891_v30 = vld [vmem:[#allocation3 + $0x230] sm:$0xff] }
 0x508   : > { %3985 = vst [vmem:[#allocation2 + $0x270] sm:$0xff] %v3889_v21  ;;  %v3892_v9 = vld [vmem:[#allocation3 + $0x238] sm:$0xff]  ;;  %3986 = vst [vmem:[#allocation2 + $0x290] sm:$0xff] %v3890_v48  ;;  %v3893_v7 = vld [vmem:[#allocation3 + $0x240] sm:$0xff] }
 0x509   : > { %3987 = vst [vmem:[#allocation2 + $0x2a8] sm:$0xff] %v3891_v30  ;;  %3988 = vst [vmem:[#allocation2 + $0x2f0] sm:$0xff] %v3892_v9  ;;  %v3894_v59 = vld [vmem:[#allocation3 + $0x248] sm:$0xff]  ;;  %v3895_v50 = vld [vmem:[#allocation3 + $0x250] sm:$0xff] }
 0x50a   : > { %3989 = vst [vmem:[#allocation2 + $0x1e0] sm:$0xff] %v3893_v7  ;;  %3990 = vst [vmem:[#allocation2 + $0x150] sm:$0xff] %v3894_v59  ;;  %v3896_v16 = vld [vmem:[#allocation3 + $0x258] sm:$0xff]  ;;  %v3897_v62 = vld [vmem:[#allocation3 + $0x260] sm:$0xff] }
 0x50b   : > { %3991 = vst [vmem:[#allocation2 + $0x2c8] sm:$0xff] %v3895_v50  ;;  %v3898_v27 = vld [vmem:[#allocation3 + $0x268] sm:$0xff]  ;;  %3992 = vst [vmem:[#allocation2 + $0x1d0] sm:$0xff] %v3896_v16  ;;  %v3899_v24 = vld [vmem:[#allocation3 + $0x270] sm:$0xff] }
 0x50c   : > { %3993 = vst [vmem:[#allocation2 + $0x140] sm:$0xff] %v3897_v62  ;;  %3994 = vst [vmem:[#allocation2 + $0x230] sm:$0xff] %v3898_v27  ;;  %v3900_v13 = vld [vmem:[#allocation3 + $0x278] sm:$0xff]  ;;  %v3901_v44 = vld [vmem:[#allocation3 + $0x280] sm:$0xff] }
 0x50d   : > { %3995 = vst [vmem:[#allocation2 + $0x160] sm:$0xff] %v3899_v24  ;;  %3996 = vst [vmem:[#allocation2 + $0x2d8] sm:$0xff] %v3900_v13  ;;  %v3902_v57 = vld [vmem:[#allocation3 + $0x288] sm:$0xff]  ;;  %v3903_v35 = vld [vmem:[#allocation3 + $0x290] sm:$0xff] }
 0x50e   : > { %3997 = vst [vmem:[#allocation2 + $0xc0] sm:$0xff] %v3901_v44  ;;  %v3904_v3 = vld [vmem:[#allocation3 + $0x298] sm:$0xff]  ;;  %3998 = vst [vmem:[#allocation2 + $0x170] sm:$0xff] %v3902_v57  ;;  %v3905_v52 = vld [vmem:[#allocation3 + $0x2a0] sm:$0xff] }
 0x50f   : > { %3999 = vst [vmem:[#allocation2 + $0x90] sm:$0xff] %v3903_v35  ;;  %4000 = vst [vmem:[#allocation2 + $0xb0] sm:$0xff] %v3904_v3  ;;  %v3906_v19 = vld [vmem:[#allocation3 + $0x2a8] sm:$0xff]  ;;  %v3907_v58 = vld [vmem:[#allocation3 + $0x2b0] sm:$0xff] }
 0x510   : > { %4001 = vst [vmem:[#allocation2 + $0x200] sm:$0xff] %v3905_v52  ;;  %4002 = vst [vmem:[#allocation2 + $0xd8] sm:$0xff] %v3906_v19  ;;  %v3908_v36 = vld [vmem:[#allocation3 + $0x2b8] sm:$0xff]  ;;  %v3909_v63 = vld [vmem:[#allocation3 + $0x2c0] sm:$0xff] }
 0x511   : > { %4003 = vst [vmem:[#allocation2 + $0x1d8] sm:$0xff] %v3907_v58  ;;  %v3910_v38 = vld [vmem:[#allocation3 + $0x2c8] sm:$0xff]  ;;  %4004 = vst [vmem:[#allocation2 + $0x2e8] sm:$0xff] %v3908_v36  ;;  %v3911_v26 = vld [vmem:[#allocation3 + $0x2d0] sm:$0xff] }
 0x512   : > { %4005 = vst [vmem:[#allocation2 + $0x260] sm:$0xff] %v3909_v63  ;;  %4006 = vst [vmem:[#allocation2 + $0x268] sm:$0xff] %v3910_v38  ;;  %v3912_v54 = vld [vmem:[#allocation3 + $0x2d8] sm:$0xff]  ;;  %v3913_v40 = vld [vmem:[#allocation3 + $0x2e0] sm:$0xff] }
 0x513   : > { %4007 = vst [vmem:[#allocation2 + $0x88] sm:$0xff] %v3911_v26  ;;  %4008 = vst [vmem:[#allocation2 + $0x110] sm:$0xff] %v3912_v54  ;;  %v3914_v28 = vld [vmem:[#allocation3 + $0x2e8] sm:$0xff]  ;;  %v3915_v60 = vld [vmem:[#allocation3 + $0x2f0] sm:$0xff] }
 0x514   : > { %4009 = vst [vmem:[#allocation2 + $0x108] sm:$0xff] %v3913_v40  ;;  %v3916_v47 = vld [vmem:[#allocation3 + $0x2f8] sm:$0xff]  ;;  %4010 = vst [vmem:[#allocation2 + $0x198] sm:$0xff] %v3914_v28 }
 0x515   : > { %4011 = vst [vmem:[#allocation2 + $0x148] sm:$0xff] %v3915_v60  ;;  %4012 = vst [vmem:[#allocation2 + $0x118] sm:$0xff] %v3916_v47 }
 0x516 PF: > { %p4013_p13 = pnand %p574_p5, %p573_p12 }
 0x518   : > { %4016 = sbr.rel (%p4013_p13) target bundleno = 1315 (0x523), region = 100 }
 0x51d   : > { %v5658_v22 = vmov 0.0  }
 0x51e   : > { %4017 = vst [vmem:[#allocation4 + $0x40] sm:$0xff] %v5658_v22  ;;  %4018 = vst [vmem:[#allocation4 + $0x8] sm:$0xff] %v5658_v22 }
 0x51f   : > { %4019 = vst [vmem:[#allocation4 + $0x20] sm:$0xff] %v5658_v22  ;;  %4020 = vst [vmem:[#allocation4 + $0x18] sm:$0xff] %v5658_v22 }
 0x520   : > { %4021 = vst [vmem:[#allocation4 + $0x28] sm:$0xff] %v5658_v22  ;;  %4022 = vst [vmem:[#allocation4 + $0x38] sm:$0xff] %v5658_v22 }
 0x521   : > { %4023 = vst [vmem:[#allocation4] sm:$0xff] %v5658_v22  ;;  %4024 = vst [vmem:[#allocation4 + $0x30] sm:$0xff] %v5658_v22 }
 0x522   : > { %4025 = vst [vmem:[#allocation4 + $0x10] sm:$0xff] %v5658_v22 }
 0x523 PF: > { %4028 = sbr.rel (%p3711_p8) target bundleno = 1559 (0x617), region = 104 }
 0x528   : > { %v8798_v34 = vld [vmem:[#allocation55_spill] sm:$0xff]  ;;  %v8799_v21 = vld [vmem:[#allocation54_spill] sm:$0xff]  ;;  %v5659_v48 = vmov 0.0   ;;  %v8800_v30 = vld [vmem:[#allocation53_spill] sm:$0xff]  ;;  %vm5660_vm0 = vmmov 0  }
 0x529   : > { %4041 = vmatprep.subr.mxu0 %v8798_v34  ;;  %5015 = vmatprep.subr.mxu1 %v5659_v48  ;;  %v8801_v9 = vld [vmem:[#allocation52_spill] sm:$0xff]  ;;  %v8802_v7 = vld [vmem:[#allocation51_spill] sm:$0xff]  ;;  %v8803_v59 = vld [vmem:[#allocation49_spill] sm:$0xff] }
 0x52a   : > { %4042 = vmatpush1.msra.mxu0 %v8799_v21  ;;  %5016 = vmatpush3.msra.mxu1 %v8213_v49  ;;  %v8804_v50 = vld [vmem:[#allocation50_spill] sm:$0xff]  ;;  %v8805_v16 = vld [vmem:[#allocation48_spill] sm:$0xff]  ;;  %v8807_v62 = vld [vmem:[#allocation47_spill] sm:$0xff] }
 0x52b   : > { %4043 = vmatprep.subr.mxu0 %v8800_v30  ;;  %5017 = vmatprep.subr.mxu1 %v5659_v48  ;;  %v8806_v49 = vld [vmem:[#allocation46_spill] sm:$0xff]  ;;  %v8809_v27 = vld [vmem:[#allocation44_spill] sm:$0xff]  ;;  %v8811_v24 = vld [vmem:[#allocation43_spill] sm:$0xff] }
 0x52c   : > { %4044 = vmatpush1.msra.mxu0 %v8801_v9  ;;  %5018 = vmatpush3.msra.mxu1 %v8211_v8  ;;  %v8808_v8 = vld [vmem:[#allocation45_spill] sm:$0xff] }
 0x52d   : > { %4045 = vmatprep.subr.mxu0 %v8802_v7  ;;  %5019 = vmatprep.subr.mxu1 %v5659_v48 }
 0x52e   : > { %4046 = vmatpush1.msra.mxu0 %v8803_v59  ;;  %5020 = vmatpush3.msra.mxu1 %v8208_v2  ;;  %v8810_v2 = vld [vmem:[#allocation42_spill] sm:$0xff] }
 0x52f   : > { %4047 = vmatprep.subr.mxu0 %v8804_v50  ;;  %5021 = vmatprep.subr.mxu1 %v5659_v48 }
 0x530   : > { %4048 = vmatpush1.msra.mxu0 %v8805_v16  ;;  %5022 = vmatpush3.msra.mxu1 %v8203_v43 }
 0x531   : > { %4049 = vmatprep.subr.mxu0 %v8806_v49  ;;  %5023 = vmatprep.subr.mxu1 %v5659_v48 }
 0x532   : > { %4050 = vmatpush1.msra.mxu0 %v8807_v62  ;;  %5024 = vmatpush3.msra.mxu1 %v8198_v6 }
 0x533   : > { %4051 = vmatprep.subr.mxu0 %v8808_v8  ;;  %5025 = vmatprep.subr.mxu1 %v5659_v48 }
 0x534   : > { %4052 = vmatpush1.msra.mxu0 %v8809_v27  ;;  %5026 = vmatpush3.msra.mxu1 %v8193_v14 }
 0x535   : > { %4053 = vmatprep.subr.mxu0 %v8810_v2  ;;  %5027 = vmatprep.subr.mxu1 %v5659_v48 }
 0x536   : > { %4054 = vmatpush1.msra.mxu0 %v8811_v24  ;;  %5028 = vmatpush3.msra.mxu1 %v8188_v45 }
 0x537   : > { %4055 = vmatprep.subr.mxu0 %v8062_v5  ;;  %5029 = vmatprep.subr.mxu1 %v5659_v48 }
 0x538   : > { %4056 = vmatpush1.msra.mxu0 %v8057_v20  ;;  %5030 = vmatpush3.msra.mxu1 %v8183_v0  ;;  %v4033_v20 = vld [vmem:[#allocation4 + $0x28] sm:$0xff]  ;;  %v4036_v0 = vld [vmem:[#allocation4 + $0x30] sm:$0xff] }
 0x539   : > { %4057 = vmatprep.subr.mxu0 %v8052_v25  ;;  %5031 = vmatprep.subr.mxu1 %v5659_v48  ;;  %v4034_v25 = vld [vmem:[#allocation4 + $0x38] sm:$0xff] }
 0x53a   : > { %4058 = vmatpush1.msra.mxu0 %v8047_v17  ;;  %5032 = vmatpush3.msra.mxu1 %v8178_v51  ;;  %v4037_v51 = vld [vmem:[#allocation4 + $0x10] sm:$0xff] }
 0x53b   : > { %4059 = vmatprep.subr.mxu0 %v8042_v32  ;;  %5033 = vmatprep.subr.mxu1 %v5659_v48 }
 0x53c   : > { %4060 = vmatpush1.msra.mxu0 %v8037_v29  ;;  %5034 = vmatpush3.msra.mxu1 %v8173_v56 }
 0x53d   : > { %4061 = vmatprep.subr.mxu0 %v8032_v61  ;;  %5035 = vmatprep.subr.mxu1 %v5659_v48 }
 0x53e   : > { %4062 = vmatpush1.msra.mxu0 %v8027_v1  ;;  %5036 = vmatpush3.msra.mxu1 %v8168_v15  ;;  %v4032_v1 = vld [vmem:[#allocation4 + $0x18] sm:$0xff] }
 0x53f   : > { %4063 = vmatprep.subr.mxu0 %v8024_v11  ;;  %5037 = vmatprep.subr.mxu1 %v5659_v48 }
 0x540   : > { %4064 = vmatpush1.msra.mxu0 %v8019_v41  ;;  %5038 = vmatpush3.msra.mxu1 %v8163_v37 }
 0x541   : > { %4065 = vmatprep.subr.mxu0 %v8016_v23  ;;  %5039 = vmatprep.subr.mxu1 %v5659_v48 }
 0x542   : > { %4066 = vmatpush1.msra.mxu0 %v8011_v39  ;;  %5040 = vmatpush3.msra.mxu1 %v8157_v55  ;;  %v4038_v39 = vld [vmem:[%s6055_s20] sm:$0xff] }
 0x543   : > { %4067 = vmatprep.subr.mxu0 %v8008_v18  ;;  %5041 = vmatprep.subr.mxu1 %v5659_v48  ;;  %v4030_v18 = vld [vmem:[#allocation4 + $0x8] sm:$0xff] }
 0x544   : > { %4068 = vmatpush1.msra.mxu0 %v8003_v42  ;;  %5042 = vmatpush3.msra.mxu1 %v8153_v4  ;;  %v4031_v42 = vld [vmem:[#allocation4 + $0x20] sm:$0xff] }
 0x545   : > { %4069 = vmatprep.subr.mxu0 %v8000_v46  ;;  %5043 = vmatprep.subr.mxu1 %v5659_v48  ;;  %v4035_v4 = vld [vmem:[#allocation4] sm:$0xff] }
 0x546   : > { %4070 = vmatpush1.msra.mxu0 %v7994_v10  ;;  %5044 = vmatpush3.msra.mxu1 %v8149_v31  ;;  %v4039_v10 = vld [vmem:[%s6055_s20 + $0x8] sm:$0xff] }
 0x547   : > { %4071 = vmatprep.subr.mxu0 %v7991_v33  ;;  %4105 = vmatprep.mubr.f32.mxu0 %v5659_v48  ;;  %v4029_v33 = vld [vmem:[#allocation4 + $0x40] sm:$0xff] }
 0x548   : > { %4072 = vmatpush1.msra.mxu0 %v7986_v53  ;;  %5045 = vmatprep.subr.mxu1 %v5659_v48  ;;  %v4040_v53 = vld [vmem:[%s6055_s20 + $0x10] sm:$0xff] }
 0x549   : > { %4106 = vmatmul.mubr.f32.vlgmr.msra.gmra.mxu0 %v4038_v39  ;;  %5046 = vmatpush3.msra.mxu1 %v8145_v12 }
 0x54a   : > { %5047 = vmatprep.mubr.msk.f32.mxu1 %vm5660_vm0, %v5659_v48  ;;  %4111 = vmatprep.mubr.f32.mxu0 %v5659_v48 }
 0x54b   : > { %5048 = vmatmul.mubr.f32.vlgmr.msra.gmra.mxu1 %v4038_v39 }
 0x54c   : > { %5050 = vmatprep.mubr.msk.f32.mxu1 %vm5660_vm0, %v5659_v48 }
 0x54d   : > { %4112 = vmatmul.mubr.f32.gmra.mxu0 %v4039_v10 }
 0x54e   : > { %4117 = vmatprep.mubr.f32.mxu0 %v5659_v48 }
 0x54f   : > { %5051 = vmatmul.mubr.f32.gmra.mxu1 %v4039_v10 }
 0x550   : > { %5053 = vmatprep.mubr.msk.f32.mxu1 %vm5660_vm0, %v5659_v48 }
 0x551   : > { %4118 = vmatmul.mubr.f32.gmra.mxu0 %v4040_v53 }
 0x553   : > { %5054 = vmatmul.mubr.f32.gmra.mxu1 %v4040_v53 }
 0x609   : > { %v4107_v46 = vpop.f32.mrf.mxu0 }
 0x60a   : > { %v4204_v23 = vadd.f32 %v4107_v46, %v4029_v33 }
 0x60b   : > { %v4190_v41 = vpop.f32.mrf.mxu1  ;;  %v4109_v11 = vpop.f32.mrf.mxu0 }
 0x60c   : > { %4213 = vst [vmem:[#allocation4 + $0x40] sm:$0xff] %v4204_v23  ;;  %v4206_v61 = vadd.f32 %v4190_v41, %v4031_v42  ;;  %v4205_v29 = vadd.f32 %v4109_v11, %v4030_v18 }
 0x60d   : > { %v5049_v32 = vpop.f32.mrf.mxu1  ;;  %v4113_v17 = vpop.f32.mrf.mxu0 }
 0x60e   : > { %4215 = vst [vmem:[#allocation4 + $0x20] sm:$0xff] %v4206_v61  ;;  %4214 = vst [vmem:[#allocation4 + $0x8] sm:$0xff] %v4205_v29  ;;  %v4207_v5 = vadd.f32 %v4113_v17, %v4032_v1 }
 0x60f   : > { %v4195_v31 = vpop.f32.mrf.mxu1  ;;  %v4115_v12 = vpop.f32.mrf.mxu0 }
 0x610   : > { %4216 = vst [vmem:[#allocation4 + $0x18] sm:$0xff] %v4207_v5  ;;  %v4209_v55 = vadd.f32 %v4195_v31, %v4034_v25  ;;  %v4208_v37 = vadd.f32 %v4115_v12, %v4033_v20 }
 0x611   : > { %v5052_v15 = vpop.f32.mrf.mxu1  ;;  %v4119_v56 = vpop.f32.mrf.mxu0 }
 0x612   : > { %4218 = vst [vmem:[#allocation4 + $0x38] sm:$0xff] %v4209_v55  ;;  %4217 = vst [vmem:[#allocation4 + $0x28] sm:$0xff] %v4208_v37  ;;  %v4210_v45 = vadd.f32 %v4119_v56, %v4035_v4 }
 0x613   : > { %v4200_v14 = vpop.f32.mrf.mxu1  ;;  %v4121_v6 = vpop.f32.mrf.mxu0 }
 0x614   : > { %4219 = vst [vmem:[#allocation4] sm:$0xff] %v4210_v45  ;;  %v4212_v43 = vadd.f32 %v4200_v14, %v4037_v51  ;;  %v4211_v13 = vadd.f32 %v4121_v6, %v4036_v0 }
 0x615   : > { %v5055_v44 = vpop.f32.mrf.mxu1 }
 0x616   : > { %4221 = vst [vmem:[#allocation4 + $0x10] sm:$0xff] %v4212_v43  ;;  %4220 = vst [vmem:[#allocation4 + $0x30] sm:$0xff] %v4211_v13 }
 0x617 PF: > { %p4222_p1 = pnand %p575_p3, %p573_p12 }
 0x619   : > { %4225 = sbr.rel (%p4222_p1) target bundleno = 1574 (0x626), region = 108 }
 0x61e   : > { %v4226_v57 = vld [vmem:[#allocation4 + $0x40] sm:$0xff]  ;;  %v4227_v35 = vld [vmem:[#allocation4 + $0x8] sm:$0xff]  ;;  %v4229_v36 = vld [vmem:[#allocation4 + $0x18] sm:$0xff] }
 0x61f   : > { %v4228_v3 = vld [vmem:[#allocation4 + $0x20] sm:$0xff]  ;;  %v4235_v52 = vmax.f32 %v4226_v57, 0.0  ;;  %v4236_v19 = vmax.f32 %v4227_v35, 0.0  ;;  %v4230_v63 = vld [vmem:[#allocation4 + $0x28] sm:$0xff]  ;;  %v4231_v38 = vld [vmem:[#allocation4 + $0x38] sm:$0xff]  ;;  %v4238_v26 = vmax.f32 %v4229_v36, 0.0 }
 0x620   : > { %v4237_v58 = vmax.f32 %v4228_v3, 0.0  ;;  %v4239_v54 = vmax.f32 %v4230_v63, 0.0  ;;  %v4240_v40 = vmax.f32 %v4231_v38, 0.0  ;;  %v4232_v28 = vld [vmem:[#allocation4] sm:$0xff]  ;;  %v4233_v60 = vld [vmem:[#allocation4 + $0x30] sm:$0xff] }
 0x621   : > { %v4234_v47 = vld [vmem:[#allocation4 + $0x10] sm:$0xff]  ;;  %4244 = vst [vmem:[#allocation19] sm:$0xff] %v4235_v52  ;;  %4245 = vst [vmem:[#allocation19 + $0x8] sm:$0xff] %v4236_v19  ;;  %v4241_v22 = vmax.f32 %v4232_v28, 0.0  ;;  %v4242_v34 = vmax.f32 %v4233_v60, 0.0 }
 0x622   : > { %4246 = vst [vmem:[#allocation19 + $0x10] sm:$0xff] %v4237_v58  ;;  %v4243_v21 = vmax.f32 %v4234_v47, 0.0  ;;  %4247 = vst [vmem:[#allocation19 + $0x18] sm:$0xff] %v4238_v26 }
 0x623   : > { %4248 = vst [vmem:[#allocation19 + $0x20] sm:$0xff] %v4239_v54  ;;  %4249 = vst [vmem:[#allocation19 + $0x28] sm:$0xff] %v4240_v40 }
 0x624   : > { %4250 = vst [vmem:[#allocation19 + $0x30] sm:$0xff] %v4241_v22  ;;  %4251 = vst [vmem:[#allocation19 + $0x38] sm:$0xff] %v4242_v34 }
 0x625   : > { %4252 = vst [vmem:[#allocation19 + $0x40] sm:$0xff] %v4243_v21 }
 0x626 PF: > { %p5124_p9 = scmp.eq.s32.totalorder %s5900_s2, 9  ;;  %s5661_s24 = smov [#allocation19]  }
 0x627   : > { %s4259_s4 = sshll.u32 %s5661_s24, 4  ;;  %s4260_s4 = int_to_ptr.vmem [resolvable:$true] %s4259_s4 }
 0x628   : > { %s5477_s7 = scalar_lea.vmem %s4260_s4, 1152  ;;  %p5484_p7 = scmp.lt.s32.totalorder %s4260_s4, %s4260_s4 }
 0x629   : > { %p5478_p6 = scmp.ne.s32.totalorder %s4260_s4, %s5477_s7  ;;  %p5485_p12 = scmp.lt.s32.totalorder %s5477_s7, %s5477_s7 }
 0x62b   : > { %p5479_p11 = pnand %p5478_p6, %p5124_p9  ;;  %p5486_p5 = por %p5485_p12, %p5484_p7 }
 0x62d   : > { %p5480_p0 = pneg %p5479_p11 }
 0x62f   : > { %p5487_p3 = pnand %p5486_p5, %p5480_p0 }
 0x631   : > { %5490 = shalt.err (!%p5487_p3)
}
 0x632   : > { %s5662_s29 = smov 384   ;;  %s5663_s0 = smov 24  }
 0x633   : > { %s8814_s6 = sld [smem:[#allocation70_spill]] }
 0x639   : > { %5092 = dma.vmem_to_hbm [thread:$0]  (%p5124_p9), %s4260_s4, 1152, %s8814_s6, [#allocation7], %s5662_s29, %s5662_s29, %s5663_s0  }
 0x63a   : > { %5582 = dma.done.wait (%p5124_p9), [#allocation7], 1152  }
 0x63b   : > { %5584 = vsyncadd (%p5124_p9), [#allocation7], 4294966144 }
 0x63c PF: > { %s8815_s22 = sld [smem:[#allocation34_spill]]  ;;  %s8827_s27 = smov %s5591_s28 }
 0x63d   : > { %s8817_s8 = sld [smem:[#allocation27_spill]]  ;;  %s8829_s30 = smov %s5603_s9 }
 0x63e   : > { %s8818_s29 = sld [smem:[#allocation40_spill]]  ;;  %s8831_s11 = smov %s5615_s12 }
 0x63f   : > { %s8819_s20 = sld [smem:[#allocation28_spill]] }
 0x640   : > { %s8820_s10 = sld [smem:[#allocation41_spill]] }
 0x641   : > { %s8821_s5 = sld [smem:[#allocation29_spill]] }
 0x642   : > { %s32_s18 = sadd.s32 1, %s8815_s22   ;;  %s8822_s13 = sld [smem:[#allocation37_spill]] }
 0x643   : > { %p8416_p2 = scmp.ge.s32.totalorder %s32_s18, 12   ;;  %s8823_s14 = sld [smem:[#allocation32_spill]] }
 0x644   : > { %s8824_s15 = sld [smem:[#allocation33_spill]]  ;;  %s8828_s28 = smov %s8817_s8 }
 0x645   : > { %s8825_s16 = sld [smem:[#allocation35_spill]]  ;;  %s8830_s9 = smov %s8819_s20 }
 0x646   : > { %s8826_s17 = sld [smem:[#allocation36_spill]]  ;;  %31 = sbr.rel (!%p8416_p2) target bundleno = 26 (0x1a), region = 191 }
 0x647   : > { %s8832_s12 = smov %s8821_s5 }
 0x64b   :  { %4275 = vsyncpa [#allocation6], 1 }
 0x64c   :  { %4277 = vsyncpa [#allocation6 + $0x1], 1 }
 0x64d   :  { %4278 = vsyncpa [#allocation9], 1 }
 0x64e   :  { %4280 = vsyncpa [#allocation9 + $0x1], 1 }
 0x64f   :  { %4281 = vsyncpa [#allocation12], 1 }
 0x650   :  { %4283 = vsyncpa [#allocation12 + $0x1], 1 }
 0x651   :  { %4284 = vsyncpa [#allocation15], 1 }
 0x652   :  { %4286 = vsyncpa [#allocation15 + $0x1], 1 }
 0x653   :  { %4287 = vsyncpa [#allocation18], 1 }
 0x654   :  { %4289 = vsyncpa [#allocation18 + $0x1], 1 }
 0x655   :  { %4290 = vsyncpa [#allocation7], 1 }
 0x656   :  { %4292 = vsyncpa [#allocation7 + $0x1], 1 }

</bundles_post_ra>
